<compile_context>
chip_gen: v7x
topology: tpu7x:2x2x1
jax: 0.10.0
libtpu: 0.0.40
codegen_flags: <defaults>
</compile_context>

<pallas_src>
import math

import jax
import jax.numpy as jnp
from jax.experimental import pallas as pl
from jax.experimental.pallas import tpu as pltpu

# ---- small, module-consistent configuration --------------------------------
N_LAYERS = 2       # N
D_MODEL  = 32      # d_model (512 in the original defaults)
N_HEADS  = 4       # h
D_K      = 8
D_V      = 8
D_FF     = 64      # d_ff
SEQ      = 8
EPS      = 1e-5    # torch.nn.LayerNorm default
_QKV     = 3 * N_HEADS * D_K


# ---------------------------------------------------------------------------
# in-kernel helpers (all f32 element-wise math)
# ---------------------------------------------------------------------------
def _layernorm(x, g, b):
    mu  = jnp.mean(x, axis=-1, keepdims=True)
    var = jnp.mean(jnp.square(x - mu), axis=-1, keepdims=True)   # biased, like torch
    return (x - mu) * jax.lax.rsqrt(var + EPS) * g + b


def _softmax_last(x):
    m = jnp.max(x, axis=-1, keepdims=True)
    e = jnp.exp(x - m)
    return e * pl.reciprocal(jnp.sum(e, axis=-1, keepdims=True), approx=True)


# ---------------------------------------------------------------------------
# the Pallas kernel: TB batch elements per grid step
# ---------------------------------------------------------------------------
def encoder_kernel(x_ref, mask_ref,
                   wqkv_ref, bqkv_ref, wo_ref, bo_ref, gm_ref, bm_ref,
                   w1_ref, b1_ref, w2_ref, b2_ref, gf_ref, bf_ref,
                   out_ref):
    tb   = x_ref.shape[0]                       # static block batch size
    bf16 = jnp.bfloat16

    x3 = x_ref[...]                             # (TB, SEQ, D_MODEL) f32
    # hoisted mask bias: mask > 0 means "masked out"; finite bias avoids -inf NaNs
    mask_bias = jnp.where(mask_ref[...] > 0, -1e30, 0.0).astype(jnp.float32)

    out2  = x3.reshape(tb * SEQ, D_MODEL)       # token-major 2-D slab for matmuls
    scale = 1.0 / math.sqrt(D_K)

    layer_outs = []
    for l in range(N_LAYERS):
        # ---------------- MultiHeadAttention --------------------------------
        wqkv = wqkv_ref[l]                      # (D_MODEL, 3*H*D_K) bf16
        wo   = wo_ref[l]                        # (H*D_V, D_MODEL)   bf16
        qkv  = jnp.dot(out2.astype(bf16), wqkv,
                       preferred_element_type=jnp.float32) + bqkv_ref[l]
        qkv3 = qkv.reshape(tb, SEQ, _QKV)       # (TB, SEQ, 3*H*D_K)

        o2 = jnp.zeros((tb * SEQ, D_MODEL), jnp.float32)
        for hi in range(N_HEADS):
            qh = qkv3[:, :, hi * D_K:(hi + 1) * D_K]
            kh = qkv3[:, :, N_HEADS * D_K + hi * D_K:
                            N_HEADS * D_K + (hi + 1) * D_K]
            vh = qkv3[:, :, 2 * N_HEADS * D_K + hi * D_V:
                            2 * N_HEADS * D_K + (hi + 1) * D_V]
            att = jnp.einsum('bqd,bkd->bqk', qh.astype(bf16), kh.astype(bf16),
                             preferred_element_type=jnp.float32)
            att = _softmax_last(att * scale + mask_bias)
            hv  = jnp.einsum('bqk,bkd->bqd', att.astype(bf16), vh.astype(bf16),
                             preferred_element_type=jnp.float32)   # (TB, SEQ, D_V)
            # concat(heads) @ Wo  ==  sum_h head_h @ Wo[h*D_V:(h+1)*D_V]
            o2 = o2 + jnp.dot(hv.reshape(tb * SEQ, D_V).astype(bf16),
                              wo[hi * D_V:(hi + 1) * D_V, :],
                              preferred_element_type=jnp.float32)
        o2   = o2 + bo_ref[l]
        out2 = _layernorm(out2 + o2, gm_ref[l], bm_ref[l])          # residual + LN

        # ---------------- PositionWiseFeedForward ---------------------------
        f = jnp.dot(out2.astype(bf16), w1_ref[l],
                    preferred_element_type=jnp.float32) + b1_ref[l]
        f = jnp.maximum(f, 0.0)
        f = jnp.dot(f.astype(bf16), w2_ref[l],
                    preferred_element_type=jnp.float32) + b2_ref[l]
        out2 = _layernorm(out2 + f, gf_ref[l], bf_ref[l])           # residual + LN

        layer_outs.append(out2.reshape(tb, SEQ, D_MODEL))

    # single coalesced store of all layers' outputs for this batch block
    out_ref[...] = jnp.stack(layer_outs, axis=1).astype(out_ref.dtype)


# ---------------------------------------------------------------------------
# wrapper
# ---------------------------------------------------------------------------
def _pack_weights(p):
    """Fuse Q/K/V weights; pre-cast matmul weights to bf16 (f32 accumulation)."""
    wqkv = jnp.concatenate([p["wq"], p["wk"], p["wv"]], axis=-1).astype(jnp.bfloat16)
    bqkv = jnp.concatenate([p["bq"], p["bk"], p["bv"]], axis=-1)
    return [wqkv, bqkv,
            p["wo"].astype(jnp.bfloat16), p["bo"], p["gm"], p["bm"],
            p["w1"].astype(jnp.bfloat16), p["b1"],
            p["w2"].astype(jnp.bfloat16), p["b2"], p["gf"], p["bf"]]


def multi_level_encoder(x, attention_mask, params, tb=None):
    B, S, D = x.shape
    assert S == SEQ and D == D_MODEL

    # batch-block size: aim for >= 128 sublane rows per step (TB*SEQ >= 128),
    # clamped to B and forced to divide B.
    if tb is None:
        tb = min(B, max(1, 128 // SEQ))
    tb = max(1, min(tb, B))
    while B % tb:
        tb -= 1

    weights = _pack_weights(params)

    def fixed_spec(arr):                       # full-array, grid-resident weights
        zeros = (0,) * arr.ndim
        return pl.BlockSpec(arr.shape, lambda b, _z=zeros: _z)

    in_specs = ([pl.BlockSpec((tb, SEQ, D_MODEL), lambda b: (b, 0, 0)),
                 pl.BlockSpec((tb, SEQ, SEQ), lambda b: (b, 0, 0))]
                + [fixed_spec(w) for w in weights])
    out_spec = pl.BlockSpec((tb, N_LAYERS, SEQ, D_MODEL), lambda b: (b, 0, 0, 0))

    return pl.pallas_call(
        encoder_kernel,
        out_shape=jax.ShapeDtypeStruct((B, N_LAYERS, SEQ, D_MODEL), jnp.float32),
        grid=(B // tb,),
        in_specs=in_specs,
        out_specs=out_spec,
        compiler_params=pltpu.CompilerParams(dimension_semantics=("parallel",)),
    )(x, attention_mask, *weights)


# ---------------------------------------------------------------------------
# deterministic parameter construction (synthetic weights, f32 master copy)
# ---------------------------------------------------------------------------
def init_params(key):
    ks = iter(jax.random.split(key, 24))
    nrm = lambda shape, s=0.05: jax.random.normal(next(ks), shape, jnp.float32) * s
    p = {}
    p["wq"] = nrm((N_LAYERS, D_MODEL, N_HEADS * D_K))
    p["bq"] = nrm((N_LAYERS, 1, N_HEADS * D_K), 0.02)
    p["wk"] = nrm((N_LAYERS, D_MODEL, N_HEADS * D_K))
    p["bk"] = nrm((N_LAYERS, 1, N_HEADS * D_K), 0.02)
    p["wv"] = nrm((N_LAYERS, D_MODEL, N_HEADS * D_V))
    p["bv"] = nrm((N_LAYERS, 1, N_HEADS * D_V), 0.02)
    p["wo"] = nrm((N_LAYERS, N_HEADS * D_V, D_MODEL))
    p["bo"] = nrm((N_LAYERS, 1, D_MODEL), 0.02)
    p["gm"] = jnp.ones((N_LAYERS, 1, D_MODEL), jnp.float32)
    p["bm"] = jnp.zeros((N_LAYERS, 1, D_MODEL), jnp.float32)
    p["w1"] = nrm((N_LAYERS, D_MODEL, D_FF))
    p["b1"] = nrm((N_LAYERS, 1, D_FF), 0.02)
    p["w2"] = nrm((N_LAYERS, D_FF, D_MODEL))
    p["b2"] = nrm((N_LAYERS, 1, D_MODEL), 0.02)
    p["gf"] = jnp.ones((N_LAYERS, 1, D_MODEL), jnp.float32)
    p["bf"] = jnp.zeros((N_LAYERS, 1, D_MODEL), jnp.float32)
    return p


# ---------------------------------------------------------------------------
# pure-JAX f32 reference (mirrors the PyTorch forward, eval mode)
# ---------------------------------------------------------------------------
def reference(x, mask, p):
    def ln(t, g, b):
        mu = t.mean(-1, keepdims=True)
        var = ((t - mu) ** 2).mean(-1, keepdims=True)
        return (t - mu) / jnp.sqrt(var + EPS) * g + b

    B = x.shape[0]
    out = x
    outs = []
    for l in range(N_LAYERS):
        q = out @ p["wq"][l] + p["bq"][l]
        k = out @ p["wk"][l] + p["bk"][l]
        v = out @ p["wv"][l] + p["bv"][l]
        q = q.reshape(B, SEQ, N_HEADS, D_K).transpose(0, 2, 1, 3)
        k = k.reshape(B, SEQ, N_HEADS, D_K).transpose(0, 2, 3, 1)
        v = v.reshape(B, SEQ, N_HEADS, D_V).transpose(0, 2, 1, 3)
        att = (q @ k) / math.sqrt(D_K)
        att = jnp.where(mask[:, None] > 0, -jnp.inf, att)
        att = jax.nn.softmax(att, axis=-1)
        o = (att @ v).transpose(0, 2, 1, 3).reshape(B, SEQ, N_HEADS * D_V)
        o = o @ p["wo"][l] + p["bo"][l]
        out = ln(out + o, p["gm"][l], p["bm"][l])

        f = jax.nn.relu(out @ p["w1"][l] + p["b1"][l])
        f = f @ p["w2"][l] + p["b2"][l]
        out = ln(out + f, p["gf"][l], p["bf"][l])
        outs.append(out)
    return jnp.stack(outs, axis=1)


if __name__ == "__main__":
    key = jax.random.PRNGKey(0)
    k_x, k_p = jax.random.split(key)

    B = 4
    x = jax.random.normal(k_x, (B, SEQ, D_MODEL), jnp.float32)

    # padding-style mask: last two key positions masked (>0) for the second half
    # of the batch; no query row is fully masked.
    key_pad = jnp.zeros((B, SEQ), jnp.float32).at[B // 2:, SEQ - 2:].set(1.0)
    attention_mask = jnp.broadcast_to(key_pad[:, None, :], (B, SEQ, SEQ))

    params = init_params(k_p)

    # tb=2 -> 2 "parallel" grid steps so both v7x TensorCores get work even at
    # this toy batch; production sizes would use the default (TB*SEQ >= 128).
    y = multi_level_encoder(x, attention_mask, params, tb=2)
    y = jax.block_until_ready(y)

    y_ref = reference(x, attention_mask, params)
    assert y.shape == (B, N_LAYERS, SEQ, D_MODEL)
    # bf16 matmul operands (f32 accumulation) vs. the pure-f32 reference
    assert jnp.allclose(y, y_ref, atol=2e-2, rtol=2e-2), "mismatch vs JAX reference"

    print("KERNEL_OK")
</pallas_src>

<mosaic_0001>
module attributes {stable_mosaic.version = 11 : i64} {
  func.func @encoder_kernel(%arg0: i32, %arg1: memref<2x8x32xf32, #tpu.memory_space<vmem>>, %arg2: memref<2x8x8xf32, #tpu.memory_space<vmem>>, %arg3: memref<2x32x96xbf16, #tpu.memory_space<vmem>>, %arg4: memref<2x1x96xf32, #tpu.memory_space<vmem>>, %arg5: memref<2x32x32xbf16, #tpu.memory_space<vmem>>, %arg6: memref<2x1x32xf32, #tpu.memory_space<vmem>>, %arg7: memref<2x1x32xf32, #tpu.memory_space<vmem>>, %arg8: memref<2x1x32xf32, #tpu.memory_space<vmem>>, %arg9: memref<2x32x64xbf16, #tpu.memory_space<vmem>>, %arg10: memref<2x1x64xf32, #tpu.memory_space<vmem>>, %arg11: memref<2x64x32xbf16, #tpu.memory_space<vmem>>, %arg12: memref<2x1x32xf32, #tpu.memory_space<vmem>>, %arg13: memref<2x1x32xf32, #tpu.memory_space<vmem>>, %arg14: memref<2x1x32xf32, #tpu.memory_space<vmem>>, %arg15: memref<2x2x8x32xf32, #tpu.memory_space<vmem>>) attributes {dimension_semantics = [#tpu.dimension_semantics<parallel>], iteration_bounds = array<i64: 2>, scalar_prefetch = 0 : i64, scratch_operands = 0 : i64, tpu.core_type = #tpu.core_type<tc>, window_params = [{transform_indices = @transform_0, window_bounds = array<i64: 2, 8, 32>}, {transform_indices = @transform_1, window_bounds = array<i64: 2, 8, 8>}, {pipeline_mode = #tpu.pipeline_mode<synchronous>, transform_indices = @transform_2, window_bounds = array<i64: 2, 32, 96>}, {pipeline_mode = #tpu.pipeline_mode<synchronous>, transform_indices = @transform_3, window_bounds = array<i64: 2, 1, 96>}, {pipeline_mode = #tpu.pipeline_mode<synchronous>, transform_indices = @transform_4, window_bounds = array<i64: 2, 32, 32>}, {pipeline_mode = #tpu.pipeline_mode<synchronous>, transform_indices = @transform_5, window_bounds = array<i64: 2, 1, 32>}, {pipeline_mode = #tpu.pipeline_mode<synchronous>, transform_indices = @transform_6, window_bounds = array<i64: 2, 1, 32>}, {pipeline_mode = #tpu.pipeline_mode<synchronous>, transform_indices = @transform_7, window_bounds = array<i64: 2, 1, 32>}, {pipeline_mode = #tpu.pipeline_mode<synchronous>, transform_indices = @transform_8, window_bounds = array<i64: 2, 32, 64>}, {pipeline_mode = #tpu.pipeline_mode<synchronous>, transform_indices = @transform_9, window_bounds = array<i64: 2, 1, 64>}, {pipeline_mode = #tpu.pipeline_mode<synchronous>, transform_indices = @transform_10, window_bounds = array<i64: 2, 64, 32>}, {pipeline_mode = #tpu.pipeline_mode<synchronous>, transform_indices = @transform_11, window_bounds = array<i64: 2, 1, 32>}, {pipeline_mode = #tpu.pipeline_mode<synchronous>, transform_indices = @transform_12, window_bounds = array<i64: 2, 1, 32>}, {pipeline_mode = #tpu.pipeline_mode<synchronous>, transform_indices = @transform_13, window_bounds = array<i64: 2, 1, 32>}, {transform_indices = @transform_14, window_bounds = array<i64: 2, 2, 8, 32>}]} {
    %c0 = arith.constant 0 : index
    %c0_0 = arith.constant 0 : index
    %c0_1 = arith.constant 0 : index
    %0 = vector.load %arg1[%c0, %c0_0, %c0_1] : memref<2x8x32xf32, #tpu.memory_space<vmem>>, vector<2x8x32xf32>
    %c0_2 = arith.constant 0 : index
    %c0_3 = arith.constant 0 : index
    %c0_4 = arith.constant 0 : index
    %1 = vector.load %arg2[%c0_2, %c0_3, %c0_4] : memref<2x8x8xf32, #tpu.memory_space<vmem>>, vector<2x8x8xf32>
    %cst = arith.constant 0.000000e+00 : f32
    %2 = vector.broadcast %cst : f32 to vector<2x8x8xf32>
    %3 = arith.cmpf ogt, %1, %2 : vector<2x8x8xf32>
    %cst_5 = arith.constant -1.000000e+30 : f32
    %cst_6 = arith.constant 0.000000e+00 : f32
    %4 = vector.broadcast %cst_5 : f32 to vector<2x8x8xf32>
    %5 = vector.broadcast %cst_6 : f32 to vector<2x8x8xf32>
    %6 = arith.select %3, %4, %5 : vector<2x8x8xi1>, vector<2x8x8xf32>
    %7 = vector.shape_cast %0 : vector<2x8x32xf32> to vector<16x32xf32>
    %c0_7 = arith.constant 0 : index
    %c0_8 = arith.constant 0 : index
    %c0_9 = arith.constant 0 : index
    %8 = vector.load %arg3[%c0_7, %c0_8, %c0_9] : memref<2x32x96xbf16, #tpu.memory_space<vmem>>, vector<1x32x96xbf16>
    %9 = vector.shape_cast %8 : vector<1x32x96xbf16> to vector<32x96xbf16>
    %c0_10 = arith.constant 0 : index
    %c0_11 = arith.constant 0 : index
    %c0_12 = arith.constant 0 : index
    %10 = vector.load %arg5[%c0_10, %c0_11, %c0_12] : memref<2x32x32xbf16, #tpu.memory_space<vmem>>, vector<1x32x32xbf16>
    %11 = vector.shape_cast %10 : vector<1x32x32xbf16> to vector<32x32xbf16>
    %12 = arith.truncf %7 : vector<16x32xf32> to vector<16x32xbf16>
    %cst_13 = arith.constant dense<0.000000e+00> : vector<16x96xf32>
    %13 = tpu.matmul %12, %9, %cst_13 {dimension_numbers = #tpu.dot_dimension_numbers<[1], [0], [0], [1], [0, 0, 1, 1], [], []>} : vector<16x32xbf16>, vector<32x96xbf16>, vector<16x96xf32> -> vector<16x96xf32>
    %c0_14 = arith.constant 0 : index
    %c0_15 = arith.constant 0 : index
    %c0_16 = arith.constant 0 : index
    %14 = vector.load %arg4[%c0_14, %c0_15, %c0_16] : memref<2x1x96xf32, #tpu.memory_space<vmem>>, vector<1x1x96xf32>
    %15 = vector.shape_cast %14 : vector<1x1x96xf32> to vector<1x96xf32>
    %16 = vector.broadcast %15 : vector<1x96xf32> to vector<16x96xf32>
    %17 = arith.addf %13, %16 : vector<16x96xf32>
    %18 = vector.shape_cast %17 : vector<16x96xf32> to vector<2x8x96xf32>
    %cst_17 = arith.constant 0.000000e+00 : f32
    %19 = vector.broadcast %cst_17 : f32 to vector<16x32xf32>
    %20 = vector.extract_strided_slice %18 {offsets = [0, 0, 0], sizes = [2, 8, 8], strides = [1, 1, 1]} : vector<2x8x96xf32> to vector<2x8x8xf32>
    %21 = vector.extract_strided_slice %18 {offsets = [0, 0, 32], sizes = [2, 8, 8], strides = [1, 1, 1]} : vector<2x8x96xf32> to vector<2x8x8xf32>
    %22 = vector.extract_strided_slice %18 {offsets = [0, 0, 64], sizes = [2, 8, 8], strides = [1, 1, 1]} : vector<2x8x96xf32> to vector<2x8x8xf32>
    %23 = arith.truncf %20 : vector<2x8x8xf32> to vector<2x8x8xbf16>
    %24 = arith.truncf %21 : vector<2x8x8xf32> to vector<2x8x8xbf16>
    "tpu.trace_start"() <{level = 10 : i32, message = "bqd,bkd->bqk"}> : () -> ()
    %cst_18 = arith.constant dense<0.000000e+00> : vector<2x8x8xf32>
    %25 = tpu.matmul %23, %24, %cst_18 {dimension_numbers = #tpu.dot_dimension_numbers<[2], [2], [1], [1], [0, 0, 0, 1, 1, 1], [0], [0]>} : vector<2x8x8xbf16>, vector<2x8x8xbf16>, vector<2x8x8xf32> -> vector<2x8x8xf32>
    "tpu.trace_stop"() : () -> ()
    %cst_19 = arith.constant 0.353553385 : f32
    %26 = vector.broadcast %cst_19 : f32 to vector<2x8x8xf32>
    %27 = arith.mulf %25, %26 : vector<2x8x8xf32>
    %28 = arith.addf %27, %6 : vector<2x8x8xf32>
    %cst_20 = arith.constant dense<0xFF800000> : vector<2x8xf32>
    %29 = vector.multi_reduction <maximumf>, %28, %cst_20 [2] : vector<2x8x8xf32> to vector<2x8xf32>
    %30 = vector.shape_cast %29 : vector<2x8xf32> to vector<2x8x1xf32>
    %31 = vector.broadcast %30 : vector<2x8x1xf32> to vector<2x8x8xf32>
    %32 = arith.subf %28, %31 : vector<2x8x8xf32>
    %33 = math.exp %32 : vector<2x8x8xf32>
    %cst_21 = arith.constant dense<0.000000e+00> : vector<2x8xf32>
    %34 = vector.multi_reduction <add>, %33, %cst_21 [2] : vector<2x8x8xf32> to vector<2x8xf32>
    %35 = vector.shape_cast %34 : vector<2x8xf32> to vector<2x8x1xf32>
    %36 = tpu.reciprocal %35 {approx = true} : vector<2x8x1xf32> -> vector<2x8x1xf32>
    %37 = vector.broadcast %36 : vector<2x8x1xf32> to vector<2x8x8xf32>
    %38 = arith.mulf %33, %37 : vector<2x8x8xf32>
    %39 = arith.truncf %38 : vector<2x8x8xf32> to vector<2x8x8xbf16>
    %40 = arith.truncf %22 : vector<2x8x8xf32> to vector<2x8x8xbf16>
    "tpu.trace_start"() <{level = 10 : i32, message = "bqk,bkd->bqd"}> : () -> ()
    %cst_22 = arith.constant dense<0.000000e+00> : vector<2x8x8xf32>
    %41 = tpu.matmul %39, %40, %cst_22 {dimension_numbers = #tpu.dot_dimension_numbers<[2], [1], [1], [2], [0, 0, 0, 1, 1, 2], [0], [0]>} : vector<2x8x8xbf16>, vector<2x8x8xbf16>, vector<2x8x8xf32> -> vector<2x8x8xf32>
    "tpu.trace_stop"() : () -> ()
    %42 = vector.shape_cast %41 : vector<2x8x8xf32> to vector<16x8xf32>
    %43 = arith.truncf %42 : vector<16x8xf32> to vector<16x8xbf16>
    %44 = vector.extract_strided_slice %11 {offsets = [0, 0], sizes = [8, 32], strides = [1, 1]} : vector<32x32xbf16> to vector<8x32xbf16>
    %cst_23 = arith.constant dense<0.000000e+00> : vector<16x32xf32>
    %45 = tpu.matmul %43, %44, %cst_23 {dimension_numbers = #tpu.dot_dimension_numbers<[1], [0], [0], [1], [0, 0, 1, 1], [], []>} : vector<16x8xbf16>, vector<8x32xbf16>, vector<16x32xf32> -> vector<16x32xf32>
    %46 = arith.addf %19, %45 : vector<16x32xf32>
    %47 = vector.extract_strided_slice %18 {offsets = [0, 0, 8], sizes = [2, 8, 8], strides = [1, 1, 1]} : vector<2x8x96xf32> to vector<2x8x8xf32>
    %48 = vector.extract_strided_slice %18 {offsets = [0, 0, 40], sizes = [2, 8, 8], strides = [1, 1, 1]} : vector<2x8x96xf32> to vector<2x8x8xf32>
    %49 = vector.extract_strided_slice %18 {offsets = [0, 0, 72], sizes = [2, 8, 8], strides = [1, 1, 1]} : vector<2x8x96xf32> to vector<2x8x8xf32>
    %50 = arith.truncf %47 : vector<2x8x8xf32> to vector<2x8x8xbf16>
    %51 = arith.truncf %48 : vector<2x8x8xf32> to vector<2x8x8xbf16>
    "tpu.trace_start"() <{level = 10 : i32, message = "bqd,bkd->bqk"}> : () -> ()
    %cst_24 = arith.constant dense<0.000000e+00> : vector<2x8x8xf32>
    %52 = tpu.matmul %50, %51, %cst_24 {dimension_numbers = #tpu.dot_dimension_numbers<[2], [2], [1], [1], [0, 0, 0, 1, 1, 1], [0], [0]>} : vector<2x8x8xbf16>, vector<2x8x8xbf16>, vector<2x8x8xf32> -> vector<2x8x8xf32>
    "tpu.trace_stop"() : () -> ()
    %cst_25 = arith.constant 0.353553385 : f32
    %53 = vector.broadcast %cst_25 : f32 to vector<2x8x8xf32>
    %54 = arith.mulf %52, %53 : vector<2x8x8xf32>
    %55 = arith.addf %54, %6 : vector<2x8x8xf32>
    %cst_26 = arith.constant dense<0xFF800000> : vector<2x8xf32>
    %56 = vector.multi_reduction <maximumf>, %55, %cst_26 [2] : vector<2x8x8xf32> to vector<2x8xf32>
    %57 = vector.shape_cast %56 : vector<2x8xf32> to vector<2x8x1xf32>
    %58 = vector.broadcast %57 : vector<2x8x1xf32> to vector<2x8x8xf32>
    %59 = arith.subf %55, %58 : vector<2x8x8xf32>
    %60 = math.exp %59 : vector<2x8x8xf32>
    %cst_27 = arith.constant dense<0.000000e+00> : vector<2x8xf32>
    %61 = vector.multi_reduction <add>, %60, %cst_27 [2] : vector<2x8x8xf32> to vector<2x8xf32>
    %62 = vector.shape_cast %61 : vector<2x8xf32> to vector<2x8x1xf32>
    %63 = tpu.reciprocal %62 {approx = true} : vector<2x8x1xf32> -> vector<2x8x1xf32>
    %64 = vector.broadcast %63 : vector<2x8x1xf32> to vector<2x8x8xf32>
    %65 = arith.mulf %60, %64 : vector<2x8x8xf32>
    %66 = arith.truncf %65 : vector<2x8x8xf32> to vector<2x8x8xbf16>
    %67 = arith.truncf %49 : vector<2x8x8xf32> to vector<2x8x8xbf16>
    "tpu.trace_start"() <{level = 10 : i32, message = "bqk,bkd->bqd"}> : () -> ()
    %cst_28 = arith.constant dense<0.000000e+00> : vector<2x8x8xf32>
    %68 = tpu.matmul %66, %67, %cst_28 {dimension_numbers = #tpu.dot_dimension_numbers<[2], [1], [1], [2], [0, 0, 0, 1, 1, 2], [0], [0]>} : vector<2x8x8xbf16>, vector<2x8x8xbf16>, vector<2x8x8xf32> -> vector<2x8x8xf32>
    "tpu.trace_stop"() : () -> ()
    %69 = vector.shape_cast %68 : vector<2x8x8xf32> to vector<16x8xf32>
    %70 = arith.truncf %69 : vector<16x8xf32> to vector<16x8xbf16>
    %71 = vector.extract_strided_slice %11 {offsets = [8, 0], sizes = [8, 32], strides = [1, 1]} : vector<32x32xbf16> to vector<8x32xbf16>
    %cst_29 = arith.constant dense<0.000000e+00> : vector<16x32xf32>
    %72 = tpu.matmul %70, %71, %cst_29 {dimension_numbers = #tpu.dot_dimension_numbers<[1], [0], [0], [1], [0, 0, 1, 1], [], []>} : vector<16x8xbf16>, vector<8x32xbf16>, vector<16x32xf32> -> vector<16x32xf32>
    %73 = arith.addf %46, %72 : vector<16x32xf32>
    %74 = vector.extract_strided_slice %18 {offsets = [0, 0, 16], sizes = [2, 8, 8], strides = [1, 1, 1]} : vector<2x8x96xf32> to vector<2x8x8xf32>
    %75 = vector.extract_strided_slice %18 {offsets = [0, 0, 48], sizes = [2, 8, 8], strides = [1, 1, 1]} : vector<2x8x96xf32> to vector<2x8x8xf32>
    %76 = vector.extract_strided_slice %18 {offsets = [0, 0, 80], sizes = [2, 8, 8], strides = [1, 1, 1]} : vector<2x8x96xf32> to vector<2x8x8xf32>
    %77 = arith.truncf %74 : vector<2x8x8xf32> to vector<2x8x8xbf16>
    %78 = arith.truncf %75 : vector<2x8x8xf32> to vector<2x8x8xbf16>
    "tpu.trace_start"() <{level = 10 : i32, message = "bqd,bkd->bqk"}> : () -> ()
    %cst_30 = arith.constant dense<0.000000e+00> : vector<2x8x8xf32>
    %79 = tpu.matmul %77, %78, %cst_30 {dimension_numbers = #tpu.dot_dimension_numbers<[2], [2], [1], [1], [0, 0, 0, 1, 1, 1], [0], [0]>} : vector<2x8x8xbf16>, vector<2x8x8xbf16>, vector<2x8x8xf32> -> vector<2x8x8xf32>
    "tpu.trace_stop"() : () -> ()
    %cst_31 = arith.constant 0.353553385 : f32
    %80 = vector.broadcast %cst_31 : f32 to vector<2x8x8xf32>
    %81 = arith.mulf %79, %80 : vector<2x8x8xf32>
    %82 = arith.addf %81, %6 : vector<2x8x8xf32>
    %cst_32 = arith.constant dense<0xFF800000> : vector<2x8xf32>
    %83 = vector.multi_reduction <maximumf>, %82, %cst_32 [2] : vector<2x8x8xf32> to vector<2x8xf32>
    %84 = vector.shape_cast %83 : vector<2x8xf32> to vector<2x8x1xf32>
    %85 = vector.broadcast %84 : vector<2x8x1xf32> to vector<2x8x8xf32>
    %86 = arith.subf %82, %85 : vector<2x8x8xf32>
    %87 = math.exp %86 : vector<2x8x8xf32>
    %cst_33 = arith.constant dense<0.000000e+00> : vector<2x8xf32>
    %88 = vector.multi_reduction <add>, %87, %cst_33 [2] : vector<2x8x8xf32> to vector<2x8xf32>
    %89 = vector.shape_cast %88 : vector<2x8xf32> to vector<2x8x1xf32>
    %90 = tpu.reciprocal %89 {approx = true} : vector<2x8x1xf32> -> vector<2x8x1xf32>
    %91 = vector.broadcast %90 : vector<2x8x1xf32> to vector<2x8x8xf32>
    %92 = arith.mulf %87, %91 : vector<2x8x8xf32>
    %93 = arith.truncf %92 : vector<2x8x8xf32> to vector<2x8x8xbf16>
    %94 = arith.truncf %76 : vector<2x8x8xf32> to vector<2x8x8xbf16>
    "tpu.trace_start"() <{level = 10 : i32, message = "bqk,bkd->bqd"}> : () -> ()
    %cst_34 = arith.constant dense<0.000000e+00> : vector<2x8x8xf32>
    %95 = tpu.matmul %93, %94, %cst_34 {dimension_numbers = #tpu.dot_dimension_numbers<[2], [1], [1], [2], [0, 0, 0, 1, 1, 2], [0], [0]>} : vector<2x8x8xbf16>, vector<2x8x8xbf16>, vector<2x8x8xf32> -> vector<2x8x8xf32>
    "tpu.trace_stop"() : () -> ()
    %96 = vector.shape_cast %95 : vector<2x8x8xf32> to vector<16x8xf32>
    %97 = arith.truncf %96 : vector<16x8xf32> to vector<16x8xbf16>
    %98 = vector.extract_strided_slice %11 {offsets = [16, 0], sizes = [8, 32], strides = [1, 1]} : vector<32x32xbf16> to vector<8x32xbf16>
    %cst_35 = arith.constant dense<0.000000e+00> : vector<16x32xf32>
    %99 = tpu.matmul %97, %98, %cst_35 {dimension_numbers = #tpu.dot_dimension_numbers<[1], [0], [0], [1], [0, 0, 1, 1], [], []>} : vector<16x8xbf16>, vector<8x32xbf16>, vector<16x32xf32> -> vector<16x32xf32>
    %100 = arith.addf %73, %99 : vector<16x32xf32>
    %101 = vector.extract_strided_slice %18 {offsets = [0, 0, 24], sizes = [2, 8, 8], strides = [1, 1, 1]} : vector<2x8x96xf32> to vector<2x8x8xf32>
    %102 = vector.extract_strided_slice %18 {offsets = [0, 0, 56], sizes = [2, 8, 8], strides = [1, 1, 1]} : vector<2x8x96xf32> to vector<2x8x8xf32>
    %103 = vector.extract_strided_slice %18 {offsets = [0, 0, 88], sizes = [2, 8, 8], strides = [1, 1, 1]} : vector<2x8x96xf32> to vector<2x8x8xf32>
    %104 = arith.truncf %101 : vector<2x8x8xf32> to vector<2x8x8xbf16>
    %105 = arith.truncf %102 : vector<2x8x8xf32> to vector<2x8x8xbf16>
    "tpu.trace_start"() <{level = 10 : i32, message = "bqd,bkd->bqk"}> : () -> ()
    %cst_36 = arith.constant dense<0.000000e+00> : vector<2x8x8xf32>
    %106 = tpu.matmul %104, %105, %cst_36 {dimension_numbers = #tpu.dot_dimension_numbers<[2], [2], [1], [1], [0, 0, 0, 1, 1, 1], [0], [0]>} : vector<2x8x8xbf16>, vector<2x8x8xbf16>, vector<2x8x8xf32> -> vector<2x8x8xf32>
    "tpu.trace_stop"() : () -> ()
    %cst_37 = arith.constant 0.353553385 : f32
    %107 = vector.broadcast %cst_37 : f32 to vector<2x8x8xf32>
    %108 = arith.mulf %106, %107 : vector<2x8x8xf32>
    %109 = arith.addf %108, %6 : vector<2x8x8xf32>
    %cst_38 = arith.constant dense<0xFF800000> : vector<2x8xf32>
    %110 = vector.multi_reduction <maximumf>, %109, %cst_38 [2] : vector<2x8x8xf32> to vector<2x8xf32>
    %111 = vector.shape_cast %110 : vector<2x8xf32> to vector<2x8x1xf32>
    %112 = vector.broadcast %111 : vector<2x8x1xf32> to vector<2x8x8xf32>
    %113 = arith.subf %109, %112 : vector<2x8x8xf32>
    %114 = math.exp %113 : vector<2x8x8xf32>
    %cst_39 = arith.constant dense<0.000000e+00> : vector<2x8xf32>
    %115 = vector.multi_reduction <add>, %114, %cst_39 [2] : vector<2x8x8xf32> to vector<2x8xf32>
    %116 = vector.shape_cast %115 : vector<2x8xf32> to vector<2x8x1xf32>
    %117 = tpu.reciprocal %116 {approx = true} : vector<2x8x1xf32> -> vector<2x8x1xf32>
    %118 = vector.broadcast %117 : vector<2x8x1xf32> to vector<2x8x8xf32>
    %119 = arith.mulf %114, %118 : vector<2x8x8xf32>
    %120 = arith.truncf %119 : vector<2x8x8xf32> to vector<2x8x8xbf16>
    %121 = arith.truncf %103 : vector<2x8x8xf32> to vector<2x8x8xbf16>
    "tpu.trace_start"() <{level = 10 : i32, message = "bqk,bkd->bqd"}> : () -> ()
    %cst_40 = arith.constant dense<0.000000e+00> : vector<2x8x8xf32>
    %122 = tpu.matmul %120, %121, %cst_40 {dimension_numbers = #tpu.dot_dimension_numbers<[2], [1], [1], [2], [0, 0, 0, 1, 1, 2], [0], [0]>} : vector<2x8x8xbf16>, vector<2x8x8xbf16>, vector<2x8x8xf32> -> vector<2x8x8xf32>
    "tpu.trace_stop"() : () -> ()
    %123 = vector.shape_cast %122 : vector<2x8x8xf32> to vector<16x8xf32>
    %124 = arith.truncf %123 : vector<16x8xf32> to vector<16x8xbf16>
    %125 = vector.extract_strided_slice %11 {offsets = [24, 0], sizes = [8, 32], strides = [1, 1]} : vector<32x32xbf16> to vector<8x32xbf16>
    %cst_41 = arith.constant dense<0.000000e+00> : vector<16x32xf32>
    %126 = tpu.matmul %124, %125, %cst_41 {dimension_numbers = #tpu.dot_dimension_numbers<[1], [0], [0], [1], [0, 0, 1, 1], [], []>} : vector<16x8xbf16>, vector<8x32xbf16>, vector<16x32xf32> -> vector<16x32xf32>
    %127 = arith.addf %100, %126 : vector<16x32xf32>
    %c0_42 = arith.constant 0 : index
    %c0_43 = arith.constant 0 : index
    %c0_44 = arith.constant 0 : index
    %128 = vector.load %arg6[%c0_42, %c0_43, %c0_44] : memref<2x1x32xf32, #tpu.memory_space<vmem>>, vector<1x1x32xf32>
    %129 = vector.shape_cast %128 : vector<1x1x32xf32> to vector<1x32xf32>
    %130 = vector.broadcast %129 : vector<1x32xf32> to vector<16x32xf32>
    %131 = arith.addf %127, %130 : vector<16x32xf32>
    %132 = arith.addf %7, %131 : vector<16x32xf32>
    %c0_45 = arith.constant 0 : index
    %c0_46 = arith.constant 0 : index
    %c0_47 = arith.constant 0 : index
    %133 = vector.load %arg7[%c0_45, %c0_46, %c0_47] : memref<2x1x32xf32, #tpu.memory_space<vmem>>, vector<1x1x32xf32>
    %134 = vector.shape_cast %133 : vector<1x1x32xf32> to vector<1x32xf32>
    %c0_48 = arith.constant 0 : index
    %c0_49 = arith.constant 0 : index
    %c0_50 = arith.constant 0 : index
    %135 = vector.load %arg8[%c0_48, %c0_49, %c0_50] : memref<2x1x32xf32, #tpu.memory_space<vmem>>, vector<1x1x32xf32>
    %136 = vector.shape_cast %135 : vector<1x1x32xf32> to vector<1x32xf32>
    %cst_51 = arith.constant dense<0.000000e+00> : vector<16xf32>
    %137 = vector.multi_reduction <add>, %132, %cst_51 [1] : vector<16x32xf32> to vector<16xf32>
    %138 = vector.shape_cast %137 : vector<16xf32> to vector<16x1xf32>
    %cst_52 = arith.constant 3.200000e+01 : f32
    %139 = vector.broadcast %cst_52 : f32 to vector<16x1xf32>
    %140 = arith.divf %138, %139 : vector<16x1xf32>
    %141 = vector.broadcast %140 : vector<16x1xf32> to vector<16x32xf32>
    %142 = arith.subf %132, %141 : vector<16x32xf32>
    %143 = arith.mulf %142, %142 : vector<16x32xf32>
    %cst_53 = arith.constant dense<0.000000e+00> : vector<16xf32>
    %144 = vector.multi_reduction <add>, %143, %cst_53 [1] : vector<16x32xf32> to vector<16xf32>
    %145 = vector.shape_cast %144 : vector<16xf32> to vector<16x1xf32>
    %cst_54 = arith.constant 3.200000e+01 : f32
    %146 = vector.broadcast %cst_54 : f32 to vector<16x1xf32>
    %147 = arith.divf %145, %146 : vector<16x1xf32>
    %148 = vector.broadcast %140 : vector<16x1xf32> to vector<16x32xf32>
    %149 = arith.subf %132, %148 : vector<16x32xf32>
    %cst_55 = arith.constant 9.99999974E-6 : f32
    %150 = vector.broadcast %cst_55 : f32 to vector<16x1xf32>
    %151 = arith.addf %147, %150 : vector<16x1xf32>
    %152 = math.rsqrt %151 : vector<16x1xf32>
    %153 = vector.broadcast %152 : vector<16x1xf32> to vector<16x32xf32>
    %154 = arith.mulf %149, %153 : vector<16x32xf32>
    %155 = vector.broadcast %134 : vector<1x32xf32> to vector<16x32xf32>
    %156 = arith.mulf %154, %155 : vector<16x32xf32>
    %157 = vector.broadcast %136 : vector<1x32xf32> to vector<16x32xf32>
    %158 = arith.addf %156, %157 : vector<16x32xf32>
    %159 = arith.truncf %158 : vector<16x32xf32> to vector<16x32xbf16>
    %c0_56 = arith.constant 0 : index
    %c0_57 = arith.constant 0 : index
    %c0_58 = arith.constant 0 : index
    %160 = vector.load %arg9[%c0_56, %c0_57, %c0_58] : memref<2x32x64xbf16, #tpu.memory_space<vmem>>, vector<1x32x64xbf16>
    %161 = vector.shape_cast %160 : vector<1x32x64xbf16> to vector<32x64xbf16>
    %cst_59 = arith.constant dense<0.000000e+00> : vector<16x64xf32>
    %162 = tpu.matmul %159, %161, %cst_59 {dimension_numbers = #tpu.dot_dimension_numbers<[1], [0], [0], [1], [0, 0, 1, 1], [], []>} : vector<16x32xbf16>, vector<32x64xbf16>, vector<16x64xf32> -> vector<16x64xf32>
    %c0_60 = arith.constant 0 : index
    %c0_61 = arith.constant 0 : index
    %c0_62 = arith.constant 0 : index
    %163 = vector.load %arg10[%c0_60, %c0_61, %c0_62] : memref<2x1x64xf32, #tpu.memory_space<vmem>>, vector<1x1x64xf32>
    %164 = vector.shape_cast %163 : vector<1x1x64xf32> to vector<1x64xf32>
    %165 = vector.broadcast %164 : vector<1x64xf32> to vector<16x64xf32>
    %166 = arith.addf %162, %165 : vector<16x64xf32>
    %cst_63 = arith.constant 0.000000e+00 : f32
    %167 = vector.broadcast %cst_63 : f32 to vector<16x64xf32>
    %168 = arith.maximumf %166, %167 : vector<16x64xf32>
    %169 = arith.truncf %168 : vector<16x64xf32> to vector<16x64xbf16>
    %c0_64 = arith.constant 0 : index
    %c0_65 = arith.constant 0 : index
    %c0_66 = arith.constant 0 : index
    %170 = vector.load %arg11[%c0_64, %c0_65, %c0_66] : memref<2x64x32xbf16, #tpu.memory_space<vmem>>, vector<1x64x32xbf16>
    %171 = vector.shape_cast %170 : vector<1x64x32xbf16> to vector<64x32xbf16>
    %cst_67 = arith.constant dense<0.000000e+00> : vector<16x32xf32>
    %172 = tpu.matmul %169, %171, %cst_67 {dimension_numbers = #tpu.dot_dimension_numbers<[1], [0], [0], [1], [0, 0, 1, 1], [], []>} : vector<16x64xbf16>, vector<64x32xbf16>, vector<16x32xf32> -> vector<16x32xf32>
    %c0_68 = arith.constant 0 : index
    %c0_69 = arith.constant 0 : index
    %c0_70 = arith.constant 0 : index
    %173 = vector.load %arg12[%c0_68, %c0_69, %c0_70] : memref<2x1x32xf32, #tpu.memory_space<vmem>>, vector<1x1x32xf32>
    %174 = vector.shape_cast %173 : vector<1x1x32xf32> to vector<1x32xf32>
    %175 = vector.broadcast %174 : vector<1x32xf32> to vector<16x32xf32>
    %176 = arith.addf %172, %175 : vector<16x32xf32>
    %177 = arith.addf %158, %176 : vector<16x32xf32>
    %c0_71 = arith.constant 0 : index
    %c0_72 = arith.constant 0 : index
    %c0_73 = arith.constant 0 : index
    %178 = vector.load %arg13[%c0_71, %c0_72, %c0_73] : memref<2x1x32xf32, #tpu.memory_space<vmem>>, vector<1x1x32xf32>
    %179 = vector.shape_cast %178 : vector<1x1x32xf32> to vector<1x32xf32>
    %c0_74 = arith.constant 0 : index
    %c0_75 = arith.constant 0 : index
    %c0_76 = arith.constant 0 : index
    %180 = vector.load %arg14[%c0_74, %c0_75, %c0_76] : memref<2x1x32xf32, #tpu.memory_space<vmem>>, vector<1x1x32xf32>
    %181 = vector.shape_cast %180 : vector<1x1x32xf32> to vector<1x32xf32>
    %cst_77 = arith.constant dense<0.000000e+00> : vector<16xf32>
    %182 = vector.multi_reduction <add>, %177, %cst_77 [1] : vector<16x32xf32> to vector<16xf32>
    %183 = vector.shape_cast %182 : vector<16xf32> to vector<16x1xf32>
    %cst_78 = arith.constant 3.200000e+01 : f32
    %184 = vector.broadcast %cst_78 : f32 to vector<16x1xf32>
    %185 = arith.divf %183, %184 : vector<16x1xf32>
    %186 = vector.broadcast %185 : vector<16x1xf32> to vector<16x32xf32>
    %187 = arith.subf %177, %186 : vector<16x32xf32>
    %188 = arith.mulf %187, %187 : vector<16x32xf32>
    %cst_79 = arith.constant dense<0.000000e+00> : vector<16xf32>
    %189 = vector.multi_reduction <add>, %188, %cst_79 [1] : vector<16x32xf32> to vector<16xf32>
    %190 = vector.shape_cast %189 : vector<16xf32> to vector<16x1xf32>
    %cst_80 = arith.constant 3.200000e+01 : f32
    %191 = vector.broadcast %cst_80 : f32 to vector<16x1xf32>
    %192 = arith.divf %190, %191 : vector<16x1xf32>
    %193 = vector.broadcast %185 : vector<16x1xf32> to vector<16x32xf32>
    %194 = arith.subf %177, %193 : vector<16x32xf32>
    %cst_81 = arith.constant 9.99999974E-6 : f32
    %195 = vector.broadcast %cst_81 : f32 to vector<16x1xf32>
    %196 = arith.addf %192, %195 : vector<16x1xf32>
    %197 = math.rsqrt %196 : vector<16x1xf32>
    %198 = vector.broadcast %197 : vector<16x1xf32> to vector<16x32xf32>
    %199 = arith.mulf %194, %198 : vector<16x32xf32>
    %200 = vector.broadcast %179 : vector<1x32xf32> to vector<16x32xf32>
    %201 = arith.mulf %199, %200 : vector<16x32xf32>
    %202 = vector.broadcast %181 : vector<1x32xf32> to vector<16x32xf32>
    %203 = arith.addf %201, %202 : vector<16x32xf32>
    %204 = vector.shape_cast %203 : vector<16x32xf32> to vector<2x8x32xf32>
    %c1 = arith.constant 1 : index
    %c0_82 = arith.constant 0 : index
    %c0_83 = arith.constant 0 : index
    %205 = vector.load %arg3[%c1, %c0_82, %c0_83] : memref<2x32x96xbf16, #tpu.memory_space<vmem>>, vector<1x32x96xbf16>
    %206 = vector.shape_cast %205 : vector<1x32x96xbf16> to vector<32x96xbf16>
    %c1_84 = arith.constant 1 : index
    %c0_85 = arith.constant 0 : index
    %c0_86 = arith.constant 0 : index
    %207 = vector.load %arg5[%c1_84, %c0_85, %c0_86] : memref<2x32x32xbf16, #tpu.memory_space<vmem>>, vector<1x32x32xbf16>
    %208 = vector.shape_cast %207 : vector<1x32x32xbf16> to vector<32x32xbf16>
    %209 = arith.truncf %203 : vector<16x32xf32> to vector<16x32xbf16>
    %cst_87 = arith.constant dense<0.000000e+00> : vector<16x96xf32>
    %210 = tpu.matmul %209, %206, %cst_87 {dimension_numbers = #tpu.dot_dimension_numbers<[1], [0], [0], [1], [0, 0, 1, 1], [], []>} : vector<16x32xbf16>, vector<32x96xbf16>, vector<16x96xf32> -> vector<16x96xf32>
    %c1_88 = arith.constant 1 : index
    %c0_89 = arith.constant 0 : index
    %c0_90 = arith.constant 0 : index
    %211 = vector.load %arg4[%c1_88, %c0_89, %c0_90] : memref<2x1x96xf32, #tpu.memory_space<vmem>>, vector<1x1x96xf32>
    %212 = vector.shape_cast %211 : vector<1x1x96xf32> to vector<1x96xf32>
    %213 = vector.broadcast %212 : vector<1x96xf32> to vector<16x96xf32>
    %214 = arith.addf %210, %213 : vector<16x96xf32>
    %215 = vector.shape_cast %214 : vector<16x96xf32> to vector<2x8x96xf32>
    %cst_91 = arith.constant 0.000000e+00 : f32
    %216 = vector.broadcast %cst_91 : f32 to vector<16x32xf32>
    %217 = vector.extract_strided_slice %215 {offsets = [0, 0, 0], sizes = [2, 8, 8], strides = [1, 1, 1]} : vector<2x8x96xf32> to vector<2x8x8xf32>
    %218 = vector.extract_strided_slice %215 {offsets = [0, 0, 32], sizes = [2, 8, 8], strides = [1, 1, 1]} : vector<2x8x96xf32> to vector<2x8x8xf32>
    %219 = vector.extract_strided_slice %215 {offsets = [0, 0, 64], sizes = [2, 8, 8], strides = [1, 1, 1]} : vector<2x8x96xf32> to vector<2x8x8xf32>
    %220 = arith.truncf %217 : vector<2x8x8xf32> to vector<2x8x8xbf16>
    %221 = arith.truncf %218 : vector<2x8x8xf32> to vector<2x8x8xbf16>
    "tpu.trace_start"() <{level = 10 : i32, message = "bqd,bkd->bqk"}> : () -> ()
    %cst_92 = arith.constant dense<0.000000e+00> : vector<2x8x8xf32>
    %222 = tpu.matmul %220, %221, %cst_92 {dimension_numbers = #tpu.dot_dimension_numbers<[2], [2], [1], [1], [0, 0, 0, 1, 1, 1], [0], [0]>} : vector<2x8x8xbf16>, vector<2x8x8xbf16>, vector<2x8x8xf32> -> vector<2x8x8xf32>
    "tpu.trace_stop"() : () -> ()
    %cst_93 = arith.constant 0.353553385 : f32
    %223 = vector.broadcast %cst_93 : f32 to vector<2x8x8xf32>
    %224 = arith.mulf %222, %223 : vector<2x8x8xf32>
    %225 = arith.addf %224, %6 : vector<2x8x8xf32>
    %cst_94 = arith.constant dense<0xFF800000> : vector<2x8xf32>
    %226 = vector.multi_reduction <maximumf>, %225, %cst_94 [2] : vector<2x8x8xf32> to vector<2x8xf32>
    %227 = vector.shape_cast %226 : vector<2x8xf32> to vector<2x8x1xf32>
    %228 = vector.broadcast %227 : vector<2x8x1xf32> to vector<2x8x8xf32>
    %229 = arith.subf %225, %228 : vector<2x8x8xf32>
    %230 = math.exp %229 : vector<2x8x8xf32>
    %cst_95 = arith.constant dense<0.000000e+00> : vector<2x8xf32>
    %231 = vector.multi_reduction <add>, %230, %cst_95 [2] : vector<2x8x8xf32> to vector<2x8xf32>
    %232 = vector.shape_cast %231 : vector<2x8xf32> to vector<2x8x1xf32>
    %233 = tpu.reciprocal %232 {approx = true} : vector<2x8x1xf32> -> vector<2x8x1xf32>
    %234 = vector.broadcast %233 : vector<2x8x1xf32> to vector<2x8x8xf32>
    %235 = arith.mulf %230, %234 : vector<2x8x8xf32>
    %236 = arith.truncf %235 : vector<2x8x8xf32> to vector<2x8x8xbf16>
    %237 = arith.truncf %219 : vector<2x8x8xf32> to vector<2x8x8xbf16>
    "tpu.trace_start"() <{level = 10 : i32, message = "bqk,bkd->bqd"}> : () -> ()
    %cst_96 = arith.constant dense<0.000000e+00> : vector<2x8x8xf32>
    %238 = tpu.matmul %236, %237, %cst_96 {dimension_numbers = #tpu.dot_dimension_numbers<[2], [1], [1], [2], [0, 0, 0, 1, 1, 2], [0], [0]>} : vector<2x8x8xbf16>, vector<2x8x8xbf16>, vector<2x8x8xf32> -> vector<2x8x8xf32>
    "tpu.trace_stop"() : () -> ()
    %239 = vector.shape_cast %238 : vector<2x8x8xf32> to vector<16x8xf32>
    %240 = arith.truncf %239 : vector<16x8xf32> to vector<16x8xbf16>
    %241 = vector.extract_strided_slice %208 {offsets = [0, 0], sizes = [8, 32], strides = [1, 1]} : vector<32x32xbf16> to vector<8x32xbf16>
    %cst_97 = arith.constant dense<0.000000e+00> : vector<16x32xf32>
    %242 = tpu.matmul %240, %241, %cst_97 {dimension_numbers = #tpu.dot_dimension_numbers<[1], [0], [0], [1], [0, 0, 1, 1], [], []>} : vector<16x8xbf16>, vector<8x32xbf16>, vector<16x32xf32> -> vector<16x32xf32>
    %243 = arith.addf %216, %242 : vector<16x32xf32>
    %244 = vector.extract_strided_slice %215 {offsets = [0, 0, 8], sizes = [2, 8, 8], strides = [1, 1, 1]} : vector<2x8x96xf32> to vector<2x8x8xf32>
    %245 = vector.extract_strided_slice %215 {offsets = [0, 0, 40], sizes = [2, 8, 8], strides = [1, 1, 1]} : vector<2x8x96xf32> to vector<2x8x8xf32>
    %246 = vector.extract_strided_slice %215 {offsets = [0, 0, 72], sizes = [2, 8, 8], strides = [1, 1, 1]} : vector<2x8x96xf32> to vector<2x8x8xf32>
    %247 = arith.truncf %244 : vector<2x8x8xf32> to vector<2x8x8xbf16>
    %248 = arith.truncf %245 : vector<2x8x8xf32> to vector<2x8x8xbf16>
    "tpu.trace_start"() <{level = 10 : i32, message = "bqd,bkd->bqk"}> : () -> ()
    %cst_98 = arith.constant dense<0.000000e+00> : vector<2x8x8xf32>
    %249 = tpu.matmul %247, %248, %cst_98 {dimension_numbers = #tpu.dot_dimension_numbers<[2], [2], [1], [1], [0, 0, 0, 1, 1, 1], [0], [0]>} : vector<2x8x8xbf16>, vector<2x8x8xbf16>, vector<2x8x8xf32> -> vector<2x8x8xf32>
    "tpu.trace_stop"() : () -> ()
    %cst_99 = arith.constant 0.353553385 : f32
    %250 = vector.broadcast %cst_99 : f32 to vector<2x8x8xf32>
    %251 = arith.mulf %249, %250 : vector<2x8x8xf32>
    %252 = arith.addf %251, %6 : vector<2x8x8xf32>
    %cst_100 = arith.constant dense<0xFF800000> : vector<2x8xf32>
    %253 = vector.multi_reduction <maximumf>, %252, %cst_100 [2] : vector<2x8x8xf32> to vector<2x8xf32>
    %254 = vector.shape_cast %253 : vector<2x8xf32> to vector<2x8x1xf32>
    %255 = vector.broadcast %254 : vector<2x8x1xf32> to vector<2x8x8xf32>
    %256 = arith.subf %252, %255 : vector<2x8x8xf32>
    %257 = math.exp %256 : vector<2x8x8xf32>
    %cst_101 = arith.constant dense<0.000000e+00> : vector<2x8xf32>
    %258 = vector.multi_reduction <add>, %257, %cst_101 [2] : vector<2x8x8xf32> to vector<2x8xf32>
    %259 = vector.shape_cast %258 : vector<2x8xf32> to vector<2x8x1xf32>
    %260 = tpu.reciprocal %259 {approx = true} : vector<2x8x1xf32> -> vector<2x8x1xf32>
    %261 = vector.broadcast %260 : vector<2x8x1xf32> to vector<2x8x8xf32>
    %262 = arith.mulf %257, %261 : vector<2x8x8xf32>
    %263 = arith.truncf %262 : vector<2x8x8xf32> to vector<2x8x8xbf16>
    %264 = arith.truncf %246 : vector<2x8x8xf32> to vector<2x8x8xbf16>
    "tpu.trace_start"() <{level = 10 : i32, message = "bqk,bkd->bqd"}> : () -> ()
    %cst_102 = arith.constant dense<0.000000e+00> : vector<2x8x8xf32>
    %265 = tpu.matmul %263, %264, %cst_102 {dimension_numbers = #tpu.dot_dimension_numbers<[2], [1], [1], [2], [0, 0, 0, 1, 1, 2], [0], [0]>} : vector<2x8x8xbf16>, vector<2x8x8xbf16>, vector<2x8x8xf32> -> vector<2x8x8xf32>
    "tpu.trace_stop"() : () -> ()
    %266 = vector.shape_cast %265 : vector<2x8x8xf32> to vector<16x8xf32>
    %267 = arith.truncf %266 : vector<16x8xf32> to vector<16x8xbf16>
    %268 = vector.extract_strided_slice %208 {offsets = [8, 0], sizes = [8, 32], strides = [1, 1]} : vector<32x32xbf16> to vector<8x32xbf16>
    %cst_103 = arith.constant dense<0.000000e+00> : vector<16x32xf32>
    %269 = tpu.matmul %267, %268, %cst_103 {dimension_numbers = #tpu.dot_dimension_numbers<[1], [0], [0], [1], [0, 0, 1, 1], [], []>} : vector<16x8xbf16>, vector<8x32xbf16>, vector<16x32xf32> -> vector<16x32xf32>
    %270 = arith.addf %243, %269 : vector<16x32xf32>
    %271 = vector.extract_strided_slice %215 {offsets = [0, 0, 16], sizes = [2, 8, 8], strides = [1, 1, 1]} : vector<2x8x96xf32> to vector<2x8x8xf32>
    %272 = vector.extract_strided_slice %215 {offsets = [0, 0, 48], sizes = [2, 8, 8], strides = [1, 1, 1]} : vector<2x8x96xf32> to vector<2x8x8xf32>
    %273 = vector.extract_strided_slice %215 {offsets = [0, 0, 80], sizes = [2, 8, 8], strides = [1, 1, 1]} : vector<2x8x96xf32> to vector<2x8x8xf32>
    %274 = arith.truncf %271 : vector<2x8x8xf32> to vector<2x8x8xbf16>
    %275 = arith.truncf %272 : vector<2x8x8xf32> to vector<2x8x8xbf16>
    "tpu.trace_start"() <{level = 10 : i32, message = "bqd,bkd->bqk"}> : () -> ()
    %cst_104 = arith.constant dense<0.000000e+00> : vector<2x8x8xf32>
    %276 = tpu.matmul %274, %275, %cst_104 {dimension_numbers = #tpu.dot_dimension_numbers<[2], [2], [1], [1], [0, 0, 0, 1, 1, 1], [0], [0]>} : vector<2x8x8xbf16>, vector<2x8x8xbf16>, vector<2x8x8xf32> -> vector<2x8x8xf32>
    "tpu.trace_stop"() : () -> ()
    %cst_105 = arith.constant 0.353553385 : f32
    %277 = vector.broadcast %cst_105 : f32 to vector<2x8x8xf32>
    %278 = arith.mulf %276, %277 : vector<2x8x8xf32>
    %279 = arith.addf %278, %6 : vector<2x8x8xf32>
    %cst_106 = arith.constant dense<0xFF800000> : vector<2x8xf32>
    %280 = vector.multi_reduction <maximumf>, %279, %cst_106 [2] : vector<2x8x8xf32> to vector<2x8xf32>
    %281 = vector.shape_cast %280 : vector<2x8xf32> to vector<2x8x1xf32>
    %282 = vector.broadcast %281 : vector<2x8x1xf32> to vector<2x8x8xf32>
    %283 = arith.subf %279, %282 : vector<2x8x8xf32>
    %284 = math.exp %283 : vector<2x8x8xf32>
    %cst_107 = arith.constant dense<0.000000e+00> : vector<2x8xf32>
    %285 = vector.multi_reduction <add>, %284, %cst_107 [2] : vector<2x8x8xf32> to vector<2x8xf32>
    %286 = vector.shape_cast %285 : vector<2x8xf32> to vector<2x8x1xf32>
    %287 = tpu.reciprocal %286 {approx = true} : vector<2x8x1xf32> -> vector<2x8x1xf32>
    %288 = vector.broadcast %287 : vector<2x8x1xf32> to vector<2x8x8xf32>
    %289 = arith.mulf %284, %288 : vector<2x8x8xf32>
    %290 = arith.truncf %289 : vector<2x8x8xf32> to vector<2x8x8xbf16>
    %291 = arith.truncf %273 : vector<2x8x8xf32> to vector<2x8x8xbf16>
    "tpu.trace_start"() <{level = 10 : i32, message = "bqk,bkd->bqd"}> : () -> ()
    %cst_108 = arith.constant dense<0.000000e+00> : vector<2x8x8xf32>
    %292 = tpu.matmul %290, %291, %cst_108 {dimension_numbers = #tpu.dot_dimension_numbers<[2], [1], [1], [2], [0, 0, 0, 1, 1, 2], [0], [0]>} : vector<2x8x8xbf16>, vector<2x8x8xbf16>, vector<2x8x8xf32> -> vector<2x8x8xf32>
    "tpu.trace_stop"() : () -> ()
    %293 = vector.shape_cast %292 : vector<2x8x8xf32> to vector<16x8xf32>
    %294 = arith.truncf %293 : vector<16x8xf32> to vector<16x8xbf16>
    %295 = vector.extract_strided_slice %208 {offsets = [16, 0], sizes = [8, 32], strides = [1, 1]} : vector<32x32xbf16> to vector<8x32xbf16>
    %cst_109 = arith.constant dense<0.000000e+00> : vector<16x32xf32>
    %296 = tpu.matmul %294, %295, %cst_109 {dimension_numbers = #tpu.dot_dimension_numbers<[1], [0], [0], [1], [0, 0, 1, 1], [], []>} : vector<16x8xbf16>, vector<8x32xbf16>, vector<16x32xf32> -> vector<16x32xf32>
    %297 = arith.addf %270, %296 : vector<16x32xf32>
    %298 = vector.extract_strided_slice %215 {offsets = [0, 0, 24], sizes = [2, 8, 8], strides = [1, 1, 1]} : vector<2x8x96xf32> to vector<2x8x8xf32>
    %299 = vector.extract_strided_slice %215 {offsets = [0, 0, 56], sizes = [2, 8, 8], strides = [1, 1, 1]} : vector<2x8x96xf32> to vector<2x8x8xf32>
    %300 = vector.extract_strided_slice %215 {offsets = [0, 0, 88], sizes = [2, 8, 8], strides = [1, 1, 1]} : vector<2x8x96xf32> to vector<2x8x8xf32>
    %301 = arith.truncf %298 : vector<2x8x8xf32> to vector<2x8x8xbf16>
    %302 = arith.truncf %299 : vector<2x8x8xf32> to vector<2x8x8xbf16>
    "tpu.trace_start"() <{level = 10 : i32, message = "bqd,bkd->bqk"}> : () -> ()
    %cst_110 = arith.constant dense<0.000000e+00> : vector<2x8x8xf32>
    %303 = tpu.matmul %301, %302, %cst_110 {dimension_numbers = #tpu.dot_dimension_numbers<[2], [2], [1], [1], [0, 0, 0, 1, 1, 1], [0], [0]>} : vector<2x8x8xbf16>, vector<2x8x8xbf16>, vector<2x8x8xf32> -> vector<2x8x8xf32>
    "tpu.trace_stop"() : () -> ()
    %cst_111 = arith.constant 0.353553385 : f32
    %304 = vector.broadcast %cst_111 : f32 to vector<2x8x8xf32>
    %305 = arith.mulf %303, %304 : vector<2x8x8xf32>
    %306 = arith.addf %305, %6 : vector<2x8x8xf32>
    %cst_112 = arith.constant dense<0xFF800000> : vector<2x8xf32>
    %307 = vector.multi_reduction <maximumf>, %306, %cst_112 [2] : vector<2x8x8xf32> to vector<2x8xf32>
    %308 = vector.shape_cast %307 : vector<2x8xf32> to vector<2x8x1xf32>
    %309 = vector.broadcast %308 : vector<2x8x1xf32> to vector<2x8x8xf32>
    %310 = arith.subf %306, %309 : vector<2x8x8xf32>
    %311 = math.exp %310 : vector<2x8x8xf32>
    %cst_113 = arith.constant dense<0.000000e+00> : vector<2x8xf32>
    %312 = vector.multi_reduction <add>, %311, %cst_113 [2] : vector<2x8x8xf32> to vector<2x8xf32>
    %313 = vector.shape_cast %312 : vector<2x8xf32> to vector<2x8x1xf32>
    %314 = tpu.reciprocal %313 {approx = true} : vector<2x8x1xf32> -> vector<2x8x1xf32>
    %315 = vector.broadcast %314 : vector<2x8x1xf32> to vector<2x8x8xf32>
    %316 = arith.mulf %311, %315 : vector<2x8x8xf32>
    %317 = arith.truncf %316 : vector<2x8x8xf32> to vector<2x8x8xbf16>
    %318 = arith.truncf %300 : vector<2x8x8xf32> to vector<2x8x8xbf16>
    "tpu.trace_start"() <{level = 10 : i32, message = "bqk,bkd->bqd"}> : () -> ()
    %cst_114 = arith.constant dense<0.000000e+00> : vector<2x8x8xf32>
    %319 = tpu.matmul %317, %318, %cst_114 {dimension_numbers = #tpu.dot_dimension_numbers<[2], [1], [1], [2], [0, 0, 0, 1, 1, 2], [0], [0]>} : vector<2x8x8xbf16>, vector<2x8x8xbf16>, vector<2x8x8xf32> -> vector<2x8x8xf32>
    "tpu.trace_stop"() : () -> ()
    %320 = vector.shape_cast %319 : vector<2x8x8xf32> to vector<16x8xf32>
    %321 = arith.truncf %320 : vector<16x8xf32> to vector<16x8xbf16>
    %322 = vector.extract_strided_slice %208 {offsets = [24, 0], sizes = [8, 32], strides = [1, 1]} : vector<32x32xbf16> to vector<8x32xbf16>
    %cst_115 = arith.constant dense<0.000000e+00> : vector<16x32xf32>
    %323 = tpu.matmul %321, %322, %cst_115 {dimension_numbers = #tpu.dot_dimension_numbers<[1], [0], [0], [1], [0, 0, 1, 1], [], []>} : vector<16x8xbf16>, vector<8x32xbf16>, vector<16x32xf32> -> vector<16x32xf32>
    %324 = arith.addf %297, %323 : vector<16x32xf32>
    %c1_116 = arith.constant 1 : index
    %c0_117 = arith.constant 0 : index
    %c0_118 = arith.constant 0 : index
    %325 = vector.load %arg6[%c1_116, %c0_117, %c0_118] : memref<2x1x32xf32, #tpu.memory_space<vmem>>, vector<1x1x32xf32>
    %326 = vector.shape_cast %325 : vector<1x1x32xf32> to vector<1x32xf32>
    %327 = vector.broadcast %326 : vector<1x32xf32> to vector<16x32xf32>
    %328 = arith.addf %324, %327 : vector<16x32xf32>
    %329 = arith.addf %203, %328 : vector<16x32xf32>
    %c1_119 = arith.constant 1 : index
    %c0_120 = arith.constant 0 : index
    %c0_121 = arith.constant 0 : index
    %330 = vector.load %arg7[%c1_119, %c0_120, %c0_121] : memref<2x1x32xf32, #tpu.memory_space<vmem>>, vector<1x1x32xf32>
    %331 = vector.shape_cast %330 : vector<1x1x32xf32> to vector<1x32xf32>
    %c1_122 = arith.constant 1 : index
    %c0_123 = arith.constant 0 : index
    %c0_124 = arith.constant 0 : index
    %332 = vector.load %arg8[%c1_122, %c0_123, %c0_124] : memref<2x1x32xf32, #tpu.memory_space<vmem>>, vector<1x1x32xf32>
    %333 = vector.shape_cast %332 : vector<1x1x32xf32> to vector<1x32xf32>
    %cst_125 = arith.constant dense<0.000000e+00> : vector<16xf32>
    %334 = vector.multi_reduction <add>, %329, %cst_125 [1] : vector<16x32xf32> to vector<16xf32>
    %335 = vector.shape_cast %334 : vector<16xf32> to vector<16x1xf32>
    %cst_126 = arith.constant 3.200000e+01 : f32
    %336 = vector.broadcast %cst_126 : f32 to vector<16x1xf32>
    %337 = arith.divf %335, %336 : vector<16x1xf32>
    %338 = vector.broadcast %337 : vector<16x1xf32> to vector<16x32xf32>
    %339 = arith.subf %329, %338 : vector<16x32xf32>
    %340 = arith.mulf %339, %339 : vector<16x32xf32>
    %cst_127 = arith.constant dense<0.000000e+00> : vector<16xf32>
    %341 = vector.multi_reduction <add>, %340, %cst_127 [1] : vector<16x32xf32> to vector<16xf32>
    %342 = vector.shape_cast %341 : vector<16xf32> to vector<16x1xf32>
    %cst_128 = arith.constant 3.200000e+01 : f32
    %343 = vector.broadcast %cst_128 : f32 to vector<16x1xf32>
    %344 = arith.divf %342, %343 : vector<16x1xf32>
    %345 = vector.broadcast %337 : vector<16x1xf32> to vector<16x32xf32>
    %346 = arith.subf %329, %345 : vector<16x32xf32>
    %cst_129 = arith.constant 9.99999974E-6 : f32
    %347 = vector.broadcast %cst_129 : f32 to vector<16x1xf32>
    %348 = arith.addf %344, %347 : vector<16x1xf32>
    %349 = math.rsqrt %348 : vector<16x1xf32>
    %350 = vector.broadcast %349 : vector<16x1xf32> to vector<16x32xf32>
    %351 = arith.mulf %346, %350 : vector<16x32xf32>
    %352 = vector.broadcast %331 : vector<1x32xf32> to vector<16x32xf32>
    %353 = arith.mulf %351, %352 : vector<16x32xf32>
    %354 = vector.broadcast %333 : vector<1x32xf32> to vector<16x32xf32>
    %355 = arith.addf %353, %354 : vector<16x32xf32>
    %356 = arith.truncf %355 : vector<16x32xf32> to vector<16x32xbf16>
    %c1_130 = arith.constant 1 : index
    %c0_131 = arith.constant 0 : index
    %c0_132 = arith.constant 0 : index
    %357 = vector.load %arg9[%c1_130, %c0_131, %c0_132] : memref<2x32x64xbf16, #tpu.memory_space<vmem>>, vector<1x32x64xbf16>
    %358 = vector.shape_cast %357 : vector<1x32x64xbf16> to vector<32x64xbf16>
    %cst_133 = arith.constant dense<0.000000e+00> : vector<16x64xf32>
    %359 = tpu.matmul %356, %358, %cst_133 {dimension_numbers = #tpu.dot_dimension_numbers<[1], [0], [0], [1], [0, 0, 1, 1], [], []>} : vector<16x32xbf16>, vector<32x64xbf16>, vector<16x64xf32> -> vector<16x64xf32>
    %c1_134 = arith.constant 1 : index
    %c0_135 = arith.constant 0 : index
    %c0_136 = arith.constant 0 : index
    %360 = vector.load %arg10[%c1_134, %c0_135, %c0_136] : memref<2x1x64xf32, #tpu.memory_space<vmem>>, vector<1x1x64xf32>
    %361 = vector.shape_cast %360 : vector<1x1x64xf32> to vector<1x64xf32>
    %362 = vector.broadcast %361 : vector<1x64xf32> to vector<16x64xf32>
    %363 = arith.addf %359, %362 : vector<16x64xf32>
    %cst_137 = arith.constant 0.000000e+00 : f32
    %364 = vector.broadcast %cst_137 : f32 to vector<16x64xf32>
    %365 = arith.maximumf %363, %364 : vector<16x64xf32>
    %366 = arith.truncf %365 : vector<16x64xf32> to vector<16x64xbf16>
    %c1_138 = arith.constant 1 : index
    %c0_139 = arith.constant 0 : index
    %c0_140 = arith.constant 0 : index
    %367 = vector.load %arg11[%c1_138, %c0_139, %c0_140] : memref<2x64x32xbf16, #tpu.memory_space<vmem>>, vector<1x64x32xbf16>
    %368 = vector.shape_cast %367 : vector<1x64x32xbf16> to vector<64x32xbf16>
    %cst_141 = arith.constant dense<0.000000e+00> : vector<16x32xf32>
    %369 = tpu.matmul %366, %368, %cst_141 {dimension_numbers = #tpu.dot_dimension_numbers<[1], [0], [0], [1], [0, 0, 1, 1], [], []>} : vector<16x64xbf16>, vector<64x32xbf16>, vector<16x32xf32> -> vector<16x32xf32>
    %c1_142 = arith.constant 1 : index
    %c0_143 = arith.constant 0 : index
    %c0_144 = arith.constant 0 : index
    %370 = vector.load %arg12[%c1_142, %c0_143, %c0_144] : memref<2x1x32xf32, #tpu.memory_space<vmem>>, vector<1x1x32xf32>
    %371 = vector.shape_cast %370 : vector<1x1x32xf32> to vector<1x32xf32>
    %372 = vector.broadcast %371 : vector<1x32xf32> to vector<16x32xf32>
    %373 = arith.addf %369, %372 : vector<16x32xf32>
    %374 = arith.addf %355, %373 : vector<16x32xf32>
    %c1_145 = arith.constant 1 : index
    %c0_146 = arith.constant 0 : index
    %c0_147 = arith.constant 0 : index
    %375 = vector.load %arg13[%c1_145, %c0_146, %c0_147] : memref<2x1x32xf32, #tpu.memory_space<vmem>>, vector<1x1x32xf32>
    %376 = vector.shape_cast %375 : vector<1x1x32xf32> to vector<1x32xf32>
    %c1_148 = arith.constant 1 : index
    %c0_149 = arith.constant 0 : index
    %c0_150 = arith.constant 0 : index
    %377 = vector.load %arg14[%c1_148, %c0_149, %c0_150] : memref<2x1x32xf32, #tpu.memory_space<vmem>>, vector<1x1x32xf32>
    %378 = vector.shape_cast %377 : vector<1x1x32xf32> to vector<1x32xf32>
    %cst_151 = arith.constant dense<0.000000e+00> : vector<16xf32>
    %379 = vector.multi_reduction <add>, %374, %cst_151 [1] : vector<16x32xf32> to vector<16xf32>
    %380 = vector.shape_cast %379 : vector<16xf32> to vector<16x1xf32>
    %cst_152 = arith.constant 3.200000e+01 : f32
    %381 = vector.broadcast %cst_152 : f32 to vector<16x1xf32>
    %382 = arith.divf %380, %381 : vector<16x1xf32>
    %383 = vector.broadcast %382 : vector<16x1xf32> to vector<16x32xf32>
    %384 = arith.subf %374, %383 : vector<16x32xf32>
    %385 = arith.mulf %384, %384 : vector<16x32xf32>
    %cst_153 = arith.constant dense<0.000000e+00> : vector<16xf32>
    %386 = vector.multi_reduction <add>, %385, %cst_153 [1] : vector<16x32xf32> to vector<16xf32>
    %387 = vector.shape_cast %386 : vector<16xf32> to vector<16x1xf32>
    %cst_154 = arith.constant 3.200000e+01 : f32
    %388 = vector.broadcast %cst_154 : f32 to vector<16x1xf32>
    %389 = arith.divf %387, %388 : vector<16x1xf32>
    %390 = vector.broadcast %382 : vector<16x1xf32> to vector<16x32xf32>
    %391 = arith.subf %374, %390 : vector<16x32xf32>
    %cst_155 = arith.constant 9.99999974E-6 : f32
    %392 = vector.broadcast %cst_155 : f32 to vector<16x1xf32>
    %393 = arith.addf %389, %392 : vector<16x1xf32>
    %394 = math.rsqrt %393 : vector<16x1xf32>
    %395 = vector.broadcast %394 : vector<16x1xf32> to vector<16x32xf32>
    %396 = arith.mulf %391, %395 : vector<16x32xf32>
    %397 = vector.broadcast %376 : vector<1x32xf32> to vector<16x32xf32>
    %398 = arith.mulf %396, %397 : vector<16x32xf32>
    %399 = vector.broadcast %378 : vector<1x32xf32> to vector<16x32xf32>
    %400 = arith.addf %398, %399 : vector<16x32xf32>
    %401 = vector.shape_cast %400 : vector<16x32xf32> to vector<2x8x32xf32>
    %402 = vector.shape_cast %204 : vector<2x8x32xf32> to vector<2x1x8x32xf32>
    %403 = vector.shape_cast %401 : vector<2x8x32xf32> to vector<2x1x8x32xf32>
    %404 = tpu.concatenate %402, %403 in 1 : vector<2x1x8x32xf32>, vector<2x1x8x32xf32> -> vector<2x2x8x32xf32>
    %c0_156 = arith.constant 0 : index
    %c0_157 = arith.constant 0 : index
    %c0_158 = arith.constant 0 : index
    %c0_159 = arith.constant 0 : index
    %405 = vector.load %arg15[%c0_156, %c0_157, %c0_158, %c0_159] : memref<2x2x8x32xf32, #tpu.memory_space<vmem>>, vector<2x2x8x32xf32>
    tpu.vector_store %arg15[%c0_156, %c0_157, %c0_158, %c0_159], %404 {strides = array<i32>} : memref<2x2x8x32xf32, #tpu.memory_space<vmem>>, vector<2x2x8x32xf32>,
    return
  }
  func.func @transform_0(%arg0: i32) -> (i32, i32, i32) {
    %c0_i32 = arith.constant 0 : i32
    %c0_i32_0 = arith.constant 0 : i32
    %c0_i32_1 = arith.constant 0 : i32
    return %arg0, %c0_i32, %c0_i32_0 : i32, i32, i32
  }
  func.func @transform_1(%arg0: i32) -> (i32, i32, i32) {
    %c0_i32 = arith.constant 0 : i32
    %c0_i32_0 = arith.constant 0 : i32
    %c0_i32_1 = arith.constant 0 : i32
    return %arg0, %c0_i32, %c0_i32_0 : i32, i32, i32
  }
  func.func @transform_2(%arg0: i32) -> (i32, i32, i32) {
    %c0_i32 = arith.constant 0 : i32
    %c0_i32_0 = arith.constant 0 : i32
    %c0_i32_1 = arith.constant 0 : i32
    %c0_i32_2 = arith.constant 0 : i32
    return %c0_i32, %c0_i32_0, %c0_i32_1 : i32, i32, i32
  }
  func.func @transform_3(%arg0: i32) -> (i32, i32, i32) {
    %c0_i32 = arith.constant 0 : i32
    %c0_i32_0 = arith.constant 0 : i32
    %c0_i32_1 = arith.constant 0 : i32
    %c0_i32_2 = arith.constant 0 : i32
    return %c0_i32, %c0_i32_0, %c0_i32_1 : i32, i32, i32
  }
  func.func @transform_4(%arg0: i32) -> (i32, i32, i32) {
    %c0_i32 = arith.constant 0 : i32
    %c0_i32_0 = arith.constant 0 : i32
    %c0_i32_1 = arith.constant 0 : i32
    %c0_i32_2 = arith.constant 0 : i32
    return %c0_i32, %c0_i32_0, %c0_i32_1 : i32, i32, i32
  }
  func.func @transform_5(%arg0: i32) -> (i32, i32, i32) {
    %c0_i32 = arith.constant 0 : i32
    %c0_i32_0 = arith.constant 0 : i32
    %c0_i32_1 = arith.constant 0 : i32
    %c0_i32_2 = arith.constant 0 : i32
    return %c0_i32, %c0_i32_0, %c0_i32_1 : i32, i32, i32
  }
  func.func @transform_6(%arg0: i32) -> (i32, i32, i32) {
    %c0_i32 = arith.constant 0 : i32
    %c0_i32_0 = arith.constant 0 : i32
    %c0_i32_1 = arith.constant 0 : i32
    %c0_i32_2 = arith.constant 0 : i32
    return %c0_i32, %c0_i32_0, %c0_i32_1 : i32, i32, i32
  }
  func.func @transform_7(%arg0: i32) -> (i32, i32, i32) {
    %c0_i32 = arith.constant 0 : i32
    %c0_i32_0 = arith.constant 0 : i32
    %c0_i32_1 = arith.constant 0 : i32
    %c0_i32_2 = arith.constant 0 : i32
    return %c0_i32, %c0_i32_0, %c0_i32_1 : i32, i32, i32
  }
  func.func @transform_8(%arg0: i32) -> (i32, i32, i32) {
    %c0_i32 = arith.constant 0 : i32
    %c0_i32_0 = arith.constant 0 : i32
    %c0_i32_1 = arith.constant 0 : i32
    %c0_i32_2 = arith.constant 0 : i32
    return %c0_i32, %c0_i32_0, %c0_i32_1 : i32, i32, i32
  }
  func.func @transform_9(%arg0: i32) -> (i32, i32, i32) {
    %c0_i32 = arith.constant 0 : i32
    %c0_i32_0 = arith.constant 0 : i32
    %c0_i32_1 = arith.constant 0 : i32
    %c0_i32_2 = arith.constant 0 : i32
    return %c0_i32, %c0_i32_0, %c0_i32_1 : i32, i32, i32
  }
  func.func @transform_10(%arg0: i32) -> (i32, i32, i32) {
    %c0_i32 = arith.constant 0 : i32
    %c0_i32_0 = arith.constant 0 : i32
    %c0_i32_1 = arith.constant 0 : i32
    %c0_i32_2 = arith.constant 0 : i32
    return %c0_i32, %c0_i32_0, %c0_i32_1 : i32, i32, i32
  }
  func.func @transform_11(%arg0: i32) -> (i32, i32, i32) {
    %c0_i32 = arith.constant 0 : i32
    %c0_i32_0 = arith.constant 0 : i32
    %c0_i32_1 = arith.constant 0 : i32
    %c0_i32_2 = arith.constant 0 : i32
    return %c0_i32, %c0_i32_0, %c0_i32_1 : i32, i32, i32
  }
  func.func @transform_12(%arg0: i32) -> (i32, i32, i32) {
    %c0_i32 = arith.constant 0 : i32
    %c0_i32_0 = arith.constant 0 : i32
    %c0_i32_1 = arith.constant 0 : i32
    %c0_i32_2 = arith.constant 0 : i32
    return %c0_i32, %c0_i32_0, %c0_i32_1 : i32, i32, i32
  }
  func.func @transform_13(%arg0: i32) -> (i32, i32, i32) {
    %c0_i32 = arith.constant 0 : i32
    %c0_i32_0 = arith.constant 0 : i32
    %c0_i32_1 = arith.constant 0 : i32
    %c0_i32_2 = arith.constant 0 : i32
    return %c0_i32, %c0_i32_0, %c0_i32_1 : i32, i32, i32
  }
  func.func @transform_14(%arg0: i32) -> (i32, i32, i32, i32) {
    %c0_i32 = arith.constant 0 : i32
    %c0_i32_0 = arith.constant 0 : i32
    %c0_i32_1 = arith.constant 0 : i32
    %c0_i32_2 = arith.constant 0 : i32
    return %arg0, %c0_i32, %c0_i32_0, %c0_i32_1 : i32, i32, i32, i32
  }
}

</mosaic_0001>

<bundles_post_ra>
// kernel: tpu_custom_call.1
= control target key start
LH: loop header
LB: loop body
LE: loop exit
PB: predicated region body
PF: predicated region fallthrough
CT: control target
= control target key end

     0   :  { %s5392_s0 = inlined_call_operand.vmem [shape: f32[4,8,32], index: 0, kind: input, shape index: {}]   ;;  %s5393_s1 = inlined_call_operand.vmem [shape: f32[4,8,8], index: 1, kind: input, shape index: {}]   ;;  %s5394_s2 = inlined_call_operand.vmem [shape: bf16[2,32,96], index: 2, kind: input, shape index: {}]   ;;  %s5395_s3 = inlined_call_operand.vmem [shape: f32[2,1,96], index: 3, kind: input, shape index: {}]   ;;  %s5396_s4 = inlined_call_operand.hbm [shape: bf16[2,32,32], index: 4, kind: input, shape index: {}]   ;;  %s5397_s5 = inlined_call_operand.vmem [shape: f32[2,1,32], index: 5, kind: input, shape index: {}]   ;;  %s5398_s6 = inlined_call_operand.hbm [shape: f32[2,1,32], index: 6, kind: input, shape index: {}]   ;;  %s5399_s7 = inlined_call_operand.hbm [shape: f32[2,1,32], index: 7, kind: input, shape index: {}]   ;;  %s5400_s8 = inlined_call_operand.hbm [shape: bf16[2,32,64], index: 8, kind: input, shape index: {}]   ;;  %s5401_s9 = inlined_call_operand.hbm [shape: f32[2,1,64], index: 9, kind: input, shape index: {}]   ;;  %s5402_s10 = inlined_call_operand.vmem [shape: bf16[2,64,32], index: 10, kind: input, shape index: {}]   ;;  %s5403_s11 = inlined_call_operand.vmem [shape: f32[2,1,32], index: 11, kind: input, shape index: {}]   ;;  %s5404_s12 = inlined_call_operand.vmem [shape: f32[2,1,32], index: 12, kind: input, shape index: {}]   ;;  %s5405_s13 = inlined_call_operand.vmem [shape: f32[2,1,32], index: 13, kind: input, shape index: {}]   ;;  %s5406_s14 = inlined_call_operand.hbm [shape: f32[4,2,8,32], index: 14, kind: output, shape index: {}]  }
   0x1   :  { %5433 = sst [smem:[#allocation24_spill]] %s5404_s12 }
   0x2   :  { %5434 = sst [smem:[#allocation25_spill]] %s5405_s13 }
   0x3   :  { %5435 = sst [smem:[#allocation26_spill]] %s5406_s14 }
   0x4   :  { %19 = vsyncpa [#allocation3], 0 }
   0x5   :  { %20 = vsyncpa [#allocation6], 0 }
   0x6   :  { %21 = vsyncpa [#allocation9], 0 }
   0x7   :  { %22 = vsyncpa [#allocation4], 0 }
   0x8   :  { %24 = vsyncpa [#allocation4 + $0x1], 0  ;;  %s4612_s29 = smov 0   ;;  %s4614_s30 = smov 0  }
   0x9   :  { %s4616_s15 = smov 0   ;;  %s4618_s16 = smov 0  }
   0xa LB: > { %5436 = sst [smem:[#allocation16_spill]] %s4498_s29  ;;  %s4633_s17 = sadd.s32 4294967295, %s4510_s16   ;;  %s4510_s16 = sphi %s4618_s16, %s5471_s16   ;;  %s4506_s15 = sphi %s4616_s15, %s5474_s15   ;;  %s4502_s30 = sphi %s4614_s30, %s5473_s30   ;;  %s4498_s29 = sphi %s4612_s29, %s5472_s29  }
   0xb   : > { %5437 = sst [smem:[#allocation17_spill]] %s4502_s30  ;;  %s3571_s18 = sadd.s32 4294967294, %s4510_s16  }
   0xc   : > { %5438 = sst [smem:[#allocation18_spill]] %s4506_s15  ;;  %s4637_s19 = sadd.s32 1, %s4510_s16  }
   0xd   : > { %5439 = sst [smem:[#allocation19_spill]] %s4510_s16  ;;  %s341_s20 = sadd.s32 1, %s4506_s15 }
   0xe   : > { %5440 = sst [smem:[#allocation20_spill]] %s4637_s19  ;;  %s338_s21 = ssub.s32 %s4510_s16, %s4637_s19 }
   0xf   : > { %p351_p0 = scmp.ne.s32.totalorder %s4506_s15, %s4502_s30  ;;  %p339_p1 = scmp.eq.s32.totalorder %s338_s21, 0 }
  0x10   : > { %p352_p2 = scmp.eq.s32.totalorder %s4633_s17, 1  ;;  %p357_p3 = scmp.ne.s32.totalorder %s4502_s30, %s4498_s29 }
  0x11   : > { %p358_p4 = scmp.eq.s32.totalorder %s3571_s18, 1  ;;  %p3572_p7 = scmp.ge.s32.totalorder %s4510_s16, 1 }
  0x12   : > { %s4648_s22 = scalar_select %p339_p1, %s4506_s15, %s341_s20  }
  0x13   : > { %p4650_p5 = por %p352_p2, %p351_p0  ;;  %p4654_p6 = por %p358_p4, %p357_p3 }
  0x14   : > { %5441 = sst [smem:[#allocation21_spill]] %s4648_s22  ;;  %p365_p8 = scmp.lt.s32.totalorder %s4510_s16, 3 }
  0x15   : > { %s5442_s23 = scalar_select %p4650_p5, 1, 0 }
  0x16   : > { %s5444_s24 = scalar_select %p4654_p6, 1, 0 }
  0x17   : > { %5443 = sst [smem:[#allocation22_spill]] %s5442_s23  ;;  %p5413_p9 = scmp.eq.s32.totalorder %s4633_s17, 0 }
  0x18   : > { %5445 = sst [smem:[#allocation23_spill]] %s5444_s24  ;;  %p4661_p10 = pnand %p3572_p7, %p365_p8 }
  0x19   : > { %s4512_s26 = smov [#allocation5]   ;;  %s4513_s18 = smov [#allocation8]  }
  0x1a   : > { %s5446_s25 = scalar_select %p4661_p10, 1, 0 }
  0x1b   : > { %s399_s27 = sshll.u32 %s4512_s26, 4  ;;  %p4113_p11 = pneg %p4661_p10  ;;  %s400_s27 = int_to_ptr.vmem [resolvable:$true] %s399_s27 }
  0x1c   : > { %s425_s20 = sshll.u32 %s4513_s18, 4  ;;  %s4296_s15 = scalar_lea.hbm %s5398_s6, 32  ;;  %s426_s20 = int_to_ptr.vmem [resolvable:$true] %s425_s20 }
  0x1d   : > { %p4669_p12 = pnand %p5413_p9, %p4113_p11  ;;  %p4297_p13 = scmp.ne.s32.totalorder %s5398_s6, %s4296_s15 }
  0x1e   : > { %p4303_p3 = scmp.lt.u32.totalorder %s4296_s15, %s5398_s6 }
  0x1f   : > { %p4681_p0 = pneg %p4669_p12 }
  0x21   : > { %p4299_p1 = pnand %p4681_p0, %p4297_p13 }
  0x23   : > { %p4300_p2 = pneg %p4299_p1 }
  0x25   : > { %p4305_p4 = pnand %p4303_p3, %p4300_p2 }
  0x27   : > { %4308 = shalt.err (!%p4305_p4)
}
  0x28   : > { %s4309_s22 = scalar_lea.vmem %s400_s27, 32  ;;  %p4317_p9 = scmp.lt.s32.totalorder %s400_s27, %s400_s27 }
  0x29   : > { %p4310_p7 = scmp.ne.s32.totalorder %s400_s27, %s4309_s22  ;;  %p4318_p6 = scmp.lt.s32.totalorder %s4309_s22, %s4309_s22 }
  0x2b   : > { %p4312_p8 = pnand %p4310_p7, %p4681_p0  ;;  %p4319_p5 = por %p4318_p6, %p4317_p9 }
  0x2d   : > { %p4313_p11 = pneg %p4312_p8 }
  0x2f   : > { %p4320_p10 = pnand %p4319_p5, %p4313_p11 }
  0x31   : > { %4323 = shalt.err (!%p4320_p10)
}
  0x32   : > { %s5423_s19 = smov 16   ;;  %s5425_s24 = smov 1  }
  0x33   : > { %4119 = dma.hbm_to_vmem [thread:$0]  (!%p4669_p12), %s5398_s6, 32, %s400_s27, [#allocation6], %s5423_s19, %s5423_s19, %s5425_s24  }
  0x34   : > { %s4516_s16 = smov [#allocation2]   ;;  %s4324_s14 = scalar_lea.hbm %s5400_s8, 512 }
  0x35   : > { %s383_s18 = sshll.u32 %s4516_s16, 4  ;;  %p4325_p5 = scmp.ne.s32.totalorder %s5400_s8, %s4324_s14  ;;  %s384_s18 = int_to_ptr.vmem [resolvable:$true] %s383_s18 }
  0x36   : > { %p4331_p10 = scmp.lt.u32.totalorder %s4324_s14, %s5400_s8 }
  0x37   : > { %p4327_p6 = pnand %p4325_p5, %p4681_p0 }
  0x39   : > { %p4328_p9 = pneg %p4327_p6 }
  0x3b   : > { %p4333_p13 = pnand %p4331_p10, %p4328_p9 }
  0x3d   : > { %4336 = shalt.err (!%p4333_p13)
}
  0x3e   : > { %s4337_s27 = scalar_lea.vmem %s426_s20, 512  ;;  %p4345_p4 = scmp.lt.s32.totalorder %s426_s20, %s426_s20 }
  0x3f   : > { %p4338_p1 = scmp.ne.s32.totalorder %s426_s20, %s4337_s27  ;;  %p4346_p7 = scmp.lt.s32.totalorder %s4337_s27, %s4337_s27 }
  0x41   : > { %p4340_p2 = pnand %p4338_p1, %p4681_p0  ;;  %p4347_p8 = por %p4346_p7, %p4345_p4 }
  0x43   : > { %p4341_p3 = pneg %p4340_p2 }
  0x45   : > { %p4348_p11 = pnand %p4347_p8, %p4341_p3 }
  0x47   : > { %4351 = shalt.err (!%p4348_p11)
}
  0x48   : > { %s4517_s13 = smov 64   ;;  %s4518_s23 = smov 4  }
  0x49   : > { %4125 = dma.hbm_to_vmem [thread:$0]  (!%p4669_p12), %s5400_s8, 512, %s426_s20, [#allocation9], %s4517_s13, %s4517_s13, %s4518_s23  }
  0x4a   : > { %s4352_s15 = scalar_lea.hbm %s5396_s4, 512 }
  0x4b   : > { %p4353_p5 = scmp.ne.s32.totalorder %s5396_s4, %s4352_s15  ;;  %p4359_p10 = scmp.lt.u32.totalorder %s4352_s15, %s5396_s4 }
  0x4d   : > { %p4355_p6 = pnand %p4353_p5, %p4681_p0 }
  0x4f   : > { %p4356_p9 = pneg %p4355_p6 }
  0x51   : > { %p4361_p13 = pnand %p4359_p10, %p4356_p9 }
  0x53   : > { %4364 = shalt.err (!%p4361_p13)
}
  0x54   : > { %s4365_s12 = scalar_lea.vmem %s384_s18, 512  ;;  %p4373_p4 = scmp.lt.s32.totalorder %s384_s18, %s384_s18 }
  0x55   : > { %p4366_p1 = scmp.ne.s32.totalorder %s384_s18, %s4365_s12  ;;  %p4374_p7 = scmp.lt.s32.totalorder %s4365_s12, %s4365_s12 }
  0x57   : > { %p4368_p2 = pnand %p4366_p1, %p4681_p0  ;;  %p4375_p8 = por %p4374_p7, %p4373_p4 }
  0x59   : > { %p4369_p3 = pneg %p4368_p2 }
  0x5b   : > { %p4376_p11 = pnand %p4375_p8, %p4369_p3 }
  0x5d   : > { %4379 = shalt.err (!%p4376_p11)
}
  0x5e   : > { %4116 = dma.hbm_to_vmem [thread:$0]  (!%p4669_p12), %s5396_s4, 512, %s384_s18, [#allocation3], %s4517_s13, %s4517_s13, %s4518_s23  }
  0x5f   : > { %s4519_s30 = smov [#allocation7]   ;;  %s4520_s15 = smov [#allocation10]  }
  0x60   : > { %s412_s29 = sshll.u32 %s4519_s30, 4  ;;  %s438_s16 = sshll.u32 %s4520_s15, 4  ;;  %s413_s29 = int_to_ptr.vmem [resolvable:$true] %s412_s29  ;;  %s439_s16 = int_to_ptr.vmem [resolvable:$true] %s438_s16 }
  0x61   : > { %s4380_s27 = scalar_lea.hbm %s5399_s7, 32 }
  0x62   : > { %p4381_p5 = scmp.ne.s32.totalorder %s5399_s7, %s4380_s27  ;;  %p4387_p10 = scmp.lt.u32.totalorder %s4380_s27, %s5399_s7 }
  0x64   : > { %p4383_p6 = pnand %p4381_p5, %p4681_p0 }
  0x66   : > { %p4384_p9 = pneg %p4383_p6 }
  0x68   : > { %p4389_p13 = pnand %p4387_p10, %p4384_p9 }
  0x6a   : > { %4392 = shalt.err (!%p4389_p13)
}
  0x6b   : > { %s4393_s18 = scalar_lea.vmem %s413_s29, 32  ;;  %p4401_p4 = scmp.lt.s32.totalorder %s413_s29, %s413_s29 }
  0x6c   : > { %p4394_p1 = scmp.ne.s32.totalorder %s413_s29, %s4393_s18  ;;  %p4402_p7 = scmp.lt.s32.totalorder %s4393_s18, %s4393_s18 }
  0x6e   : > { %p4396_p2 = pnand %p4394_p1, %p4681_p0  ;;  %p4403_p8 = por %p4402_p7, %p4401_p4 }
  0x70   : > { %p4397_p3 = pneg %p4396_p2 }
  0x72   : > { %p4404_p11 = pnand %p4403_p8, %p4397_p3 }
  0x74   : > { %4407 = shalt.err (!%p4404_p11)
}
  0x75   : > { %s5449_s19 = smov 1   ;;  %s5450_s13 = smov 16  }
  0x76   : > { %4122 = dma.hbm_to_vmem [thread:$0]  (!%p4669_p12), %s5399_s7, 32, %s413_s29, [#allocation6], %s5450_s13, %s5450_s13, %s5449_s19  }
  0x77   : > { %s4408_s15 = scalar_lea.hbm %s5401_s9, 32 }
  0x78   : > { %p4409_p5 = scmp.ne.s32.totalorder %s5401_s9, %s4408_s15  ;;  %p4415_p10 = scmp.lt.u32.totalorder %s4408_s15, %s5401_s9 }
  0x7a   : > { %p4411_p6 = pnand %p4409_p5, %p4681_p0 }
  0x7c   : > { %p4412_p9 = pneg %p4411_p6 }
  0x7e   : > { %p4417_p13 = pnand %p4415_p10, %p4412_p9 }
  0x80   : > { %4420 = shalt.err (!%p4417_p13)
}
  0x81   : > { %s4421_s20 = scalar_lea.vmem %s439_s16, 32  ;;  %p4429_p4 = scmp.lt.s32.totalorder %s439_s16, %s439_s16 }
  0x82   : > { %p4422_p1 = scmp.ne.s32.totalorder %s439_s16, %s4421_s20  ;;  %p4430_p7 = scmp.lt.s32.totalorder %s4421_s20, %s4421_s20 }
  0x84   : > { %p4424_p2 = pnand %p4422_p1, %p4681_p0  ;;  %p4431_p8 = por %p4430_p7, %p4429_p4 }
  0x86   : > { %p4425_p3 = pneg %p4424_p2 }
  0x88   : > { %p4432_p11 = pnand %p4431_p8, %p4425_p3 }
  0x8a   : > { %4435 = shalt.err (!%p4432_p11)
}
  0x8b   : > { %4128 = dma.hbm_to_vmem [thread:$0]  (!%p4669_p12), %s5401_s9, 32, %s439_s16, [#allocation9], %s5450_s13, %s5450_s13, %s5449_s19  }
  0x8c   : > { %p5451_p5 = scmp.ne.s32.totalorder %s5446_s25, 0 }
  0x8d   : > { %p5452_p0 = scmp.eq.s32.totalorder (!%p5451_p5), %s4633_s17, 0 }
  0x8e   : > { %484 = sbr.rel (%p5451_p5) target bundleno = 9029 (0x2345), region = 76 }
  0x95   : > { %4481 = dma.done.wait (%p5452_p0), [#allocation3], 512   ;;  %p5453_p6 = pmov %p5452_p0 }
  0x96   : > { %p5454_p9 = pmov %p5452_p0 }
  0x97   : > { %4483 = vsyncadd (%p5453_p6), [#allocation3], 4294966784 }
  0x98   : > { %4485 = dma.done.wait (%p5454_p9), [#allocation6], 64   ;;  %p5455_p10 = pmov %p5452_p0 }
  0x99   : > { %p5456_p13 = pmov %p5452_p0 }
  0x9a   : > { %4487 = vsyncadd (%p5455_p10), [#allocation6], 4294967232 }
  0x9b   : > { %4489 = dma.done.wait (%p5456_p13), [#allocation9], 544   ;;  %p5457_p12 = pmov %p5452_p0 }
  0x9c   : > { %s3586_s25 = sshll.u32 %s4633_s17, 1  ;;  %v4521_v0 = vmov 0.0   ;;  %vm4522_vm0 = vmmov 0   ;;  %v4200_v1 = vld [vmem:[%s5394_s2] sm:$0xff]   ;;  %v4201_v2 = vld [vmem:[%s5394_s2 + $0x8] sm:$0xff]   ;;  %vm601_vm1 = vcmask 261120  }
  0x9d   : > { %4491 = vsyncadd (%p5457_p12), [#allocation9], 4294966752  ;;  %3795 = vmatprep.subr.bf16.mxu1 %v4521_v0  ;;  %3799 = vmatprep.mubr.msk.bf16.mxu1 %vm4522_vm0, %v4521_v0  ;;  %p552_p1 = scmp.lt.s32.totalorder %s3586_s25, 3  ;;  %v3590_v6 = vld [vmem:[%s5395_s3] ss:$0 sm:$0xff]  ;;  %s4523_s21 = smov 96  }
  0x9e   : > { %3809 = vmatprep.subr.bf16.mxu0 %v4521_v0  ;;  %3811 = vmatprep.mubr.msk.bf16.mxu0 %vm4522_vm0, %v4521_v0  ;;  %vm651_vm2 = vcmask 64512   ;;  %s4524_s20 = smov 64   ;;  %s4525_s29 = smov 88   ;;  %vm780_vm5 = vcmask 1043456   ;;  %vm1906_vm6 = vcmask 523264  }
  0x9f   : > { %s5476_s25 = smov (!%p552_p1, %s3586_s25), 3  ;;  %3796 = vmatpush3.bf16.msra.mxu1 %v4200_v1  ;;  %s4526_s18 = smov 120  }
  0xa0   : > { %s3587_s28 = sshll.u32 %s5476_s25, 3  ;;  %3797 = vmatprep.subr.bf16.mxu1 %v4521_v0  ;;  %s4527_s25 = smov 56  }
  0xa1   : > { %s555_s19 = scalar_lea.vmem %s5392_s0, %s3587_s28  ;;  %s561_s12 = scalar_lea.vmem %s5393_s1, %s3587_s28 }
  0xa2   : > { %v4813_v3 = vld [vmem:[%s555_s19] sm:$0xff]  ;;  %v4815_v4 = vld [vmem:[%s555_s19 + $0x8] sm:$0xff]  ;;  %s4528_s28 = smov 112   ;;  %s4529_s26 = smov 80  }
  0xa3   : > { %v581_v5 = vpack.c.bf16 %v4815_v4, %v4813_v3  ;;  %3798 = vmatpush3.bf16.msra.mxu1 %v4201_v2  ;;  %v567_v19 = vld [vmem:[%s561_s12] sm:$0xff]  ;;  %v568_v20 = vld [vmem:[%s561_s12 + $0x8] sm:$0xff]  ;;  %s4530_s16 = smov 48   ;;  %s5431_s19 = smov 72  }
  0xa4   : > { %3803 = vmatprep.subr.bf16.mxu1 %v4521_v0  ;;  %vm569_vm3 = vcmp.gt.f32.partialorder %v567_v19, 0.0  ;;  %vm570_vm4 = vcmp.gt.f32.partialorder %v568_v20, 0.0  ;;  %s5429_s13 = smov 104   ;;  %s5427_s24 = smov 40  }
  0xa5   : > { %v4853_v21 = vsel %vm569_vm3, -1e+30, %v4521_v0  ;;  %v4857_v28 = vsel %vm570_vm4, -1e+30, %v4521_v0  ;;  %s5458_s27 = sld [smem:[#allocation17_spill]]  ;;  %s5459_s23 = sld [smem:[#allocation24_spill]] }
  0xa6   : > { %3800 = vmatmul.mubr.msk.bf16.vlgmr.msra.gmra.mrb[0].mxu1 %vm601_vm1, %v581_v5 }
  0xa7   : > { %3805 = vmatprep.mubr.msk.bf16.mxu1 %vm4522_vm0, %v4521_v0 }
  0xab   : > { %s548_s15 = sand.u32 1, %s5458_s27  }
  0xac   : > { %s3585_s14 = sshll.u32 %s548_s15, 5 }
 0x179   : > { %v639_v7 = vpop.f32.mrb[0].mxu1 }
 0x17a   : > { %v640_v8 = vadd.f32 %v3590_v6, %v639_v7  ;;  %v3801_v9 = vpop.f32.mrb[1].mxu1 }
 0x17b   : > { %v642_v10 = vpop.f32.mrb[2].mxu1 }
 0x17c   : > { %v4827_v11 = vpack.c.bf16 %v640_v8, %v640_v8  ;;  %v643_v12 = vadd.f32 %v3590_v6, %v642_v10  ;;  %v3802_v13 = vpop.f32.mrb[3].mxu1 }
 0x17e   : > { %649 = vrot.lane.b32.xlu0 %v4827_v11, %s4523_s21  ;;  %v4831_v14 = vpack.c.bf16 %v643_v12, %v643_v12 }
 0x182   : > { %699 = vrot.lane.b32.xlu0 %v4831_v14, %s4523_s21 }
 0x1f0   : > { %v650_v15 = vpop.permute.xlu0 %649 }
 0x1f1   : > { %v656_v16 = vsel %vm651_vm2, %v650_v15, 0 }
 0x1f2   : > { %3804 = vmatpush3.bf16.xpose.msra.mxu1 %v656_v16 }
 0x1f3   : > { %3815 = vmatprep.subr.bf16.mxu1 %v4521_v0 }
 0x1f4   : > { %v700_v17 = vpop.permute.xlu0 %699 }
 0x1f5   : > { %v705_v18 = vsel %vm651_vm2, %v700_v17, 0 }
 0x1f6   : > { %3810 = vmatpush3.bf16.xpose.msra.mxu0 %v705_v18 }
 0x1f7   : > { %3821 = vmatprep.subr.bf16.mxu0 %v4521_v0 }
 0x1f9   : > { %3806 = vmatmul.mubr.msk.bf16.vlgmr.msra.gmra.mrb[4].mxu1 %vm651_vm2, %v4827_v11 }
 0x1fa   : > { %3817 = vmatprep.mubr.msk.bf16.mxu1 %vm4522_vm0, %v4521_v0 }
 0x1fd   : > { %3812 = vmatmul.mubr.msk.bf16.vlgmr.msra.gmra.mrb[0].mxu0 %vm651_vm2, %v4831_v14 }
 0x1fe   : > { %3823 = vmatprep.mubr.msk.bf16.mxu0 %vm4522_vm0, %v4521_v0 }
 0x2cc   : > { %v692_v22 = vpop.f32.mrb[4].mxu1 }
 0x2cd   : > { %v747_v23 = vmul.f32 0.35355338, %v692_v22  ;;  %v3807_v24 = vpop.f32.mrb[5].mxu1 }
 0x2ce   : > { %v695_v25 = vpop.f32.mrb[6].mxu1 }
 0x2cf   : > { %v3808_v26 = vpop.f32.mrb[7].mxu1  ;;  %v749_v27 = vadd.f32 %v747_v23, %v4853_v21 }
 0x2d0   : > { %v741_v29 = vpop.f32.mrb[0].mxu0 }
 0x2d1   : > { %v748_v30 = vmul.f32 0.35355338, %v741_v29  ;;  %v3813_v31 = vpop.f32.mrb[1].mxu0  ;;  %v751_v32 = vsel %vm651_vm2, %v749_v27, -inf }
 0x2d2   : > { %v744_v33 = vpop.f32.mrb[2].mxu0  ;;  %752 = vmax.xlane.f32.xlu1 %v751_v32 }
 0x2d3   : > { %v3814_v34 = vpop.f32.mrb[3].mxu0  ;;  %v750_v35 = vadd.f32 %v748_v30, %v4857_v28 }
 0x2d5   : > { %v754_v36 = vsel %vm651_vm2, %v750_v35, -inf }
 0x2d6   : > { %755 = vmax.xlane.f32.xlu1 %v754_v36 }
 0x2e7   : > { %775 = vrot.lane.b32.xlu1 %v4827_v11, %s4524_s20 }
 0x2eb   : > { %824 = vrot.lane.b32.xlu1 %v4831_v14, %s4524_s20 }
 0x2ef   : > { %875 = vrot.lane.b32.xlu1 %v4827_v11, %s4525_s29 }
 0x35f   : > { %v753_v37 = vpop.xlane.xlu1 %752 }
 0x360   : > { %v757_v38 = vsub.f32 %v749_v27, %v753_v37 }
 0x362   : > { %v759_v39 = vmul.f32 1.442695, %v757_v38 }
 0x363   : > { %v756_v40 = vpop.xlane.xlu1 %755 }
 0x364   : > { %4216 = vpow2.f32 %v759_v39  ;;  %v758_v41 = vsub.f32 %v750_v35, %v756_v40 }
 0x366   : > { %v761_v42 = vmul.f32 1.442695, %v758_v41 }
 0x367   : > { %v776_v43 = vpop.permute.xlu1 %775 }
 0x368   : > { %4218 = vpow2.f32 %v761_v42  ;;  %v782_v44 = vsel %vm780_vm5, %v776_v43, 0 }
 0x369   : > { %3816 = vmatpush3.bf16.msra.mxu1 %v782_v44 }
 0x36a   : > { %3827 = vmatprep.subr.bf16.mxu1 %v4521_v0 }
 0x36b   : > { %v825_v45 = vpop.permute.xlu1 %824 }
 0x36c   : > { %v830_v46 = vsel %vm780_vm5, %v825_v45, 0 }
 0x36d   : > { %3822 = vmatpush3.bf16.msra.mxu0 %v830_v46 }
 0x36e   : > { %v4217_v47 = vpop.eup %4216  ;;  %3833 = vmatprep.subr.bf16.mxu0 %v4521_v0 }
 0x36f   : > { %v763_v48 = vsel %vm651_vm2, %v4217_v47, 0.0  ;;  %v876_v51 = vpop.permute.xlu1 %875 }
 0x370   : > { %764 = vadd.xlane.f32.xlu0 %v763_v48  ;;  %v881_v58 = vsel %vm651_vm2, %v876_v51, 0  ;;  %v578_v48 = vld [vmem:[#allocation2 + $0x4] sm:$0xf] }
 0x371   : > { %v1102_v51 = vsel %vm780_vm5, %v578_v48, 0 }
 0x372   : > { %v4219_v49 = vpop.eup %4218 }
 0x373   : > { %v766_v50 = vsel %vm651_vm2, %v4219_v49, 0.0 }
 0x374   : > { %767 = vadd.xlane.f32.xlu1 %v766_v50 }
 0x385   : > { %925 = vrot.lane.b32.xlu1 %v4831_v14, %s4525_s29 }
 0x386   : > { %873 = vrot.lane.b32.xlu0 %v4827_v11, %s4526_s18 }
 0x389   : > { %923 = vrot.lane.b32.xlu1 %v4831_v14, %s4526_s18 }
 0x3fd   : > { %v765_v52 = vpop.xlane.xlu0 %764 }
 0x3fe   : > { %4220 = vrcp.f32 %v765_v52 }
 0x401   : > { %v768_v53 = vpop.xlane.xlu1 %767  ;;  %v874_v63 = vpop.permute.xlu0 %873 }
 0x402   : > { %4222 = vrcp.f32 %v768_v53  ;;  %v577_v53 = vld [vmem:[#allocation2] sm:$0xf] }
 0x405   : > { %v926_v60 = vpop.permute.xlu1 %925 }
 0x406   : > { %v931_v62 = vsel %vm651_vm2, %v926_v60, 0 }
 0x408   : > { %v4221_v54 = vpop.eup %4220 }
 0x409   : > { %v771_v55 = vmul.f32 %v4221_v54, %v4217_v47  ;;  %v924_v1 = vpop.permute.xlu1 %923 }
 0x40b   : > { %v773_v56 = vpack.c.bf16 %v771_v55, %v771_v55 }
 0x40c   : > { %v4223_v57 = vpop.eup %4222 }
 0x40d   : > { %v772_v59 = vmul.f32 %v4223_v57, %v4219_v49  ;;  %3818 = vmatmul.mubr.msk.bf16.vlgmr.msra.gmra.mrb[8].mxu1 %vm651_vm2, %v773_v56  ;;  %v1149_v56 = vsel %vm780_vm5, %v577_v53, 0 }
 0x40e   : > { %3828 = vmatpush3.bf16.xpose.msra.mxu1 %v881_v58  ;;  %3829 = vmatprep.mubr.msk.bf16.mxu1 %vm4522_vm0, %v4521_v0 }
 0x40f   : > { %v774_v61 = vpack.c.bf16 %v772_v59, %v772_v59  ;;  %3839 = vmatprep.subr.bf16.mxu1 %v4521_v0 }
 0x411   : > { %3824 = vmatmul.mubr.msk.bf16.vlgmr.msra.gmra.mrb[4].mxu0 %vm651_vm2, %v774_v61 }
 0x412   : > { %3834 = vmatpush3.bf16.xpose.msra.mxu0 %v931_v62  ;;  %3835 = vmatprep.mubr.msk.bf16.mxu0 %vm4522_vm0, %v4521_v0 }
 0x413   : > { %3845 = vmatprep.subr.bf16.mxu0 %v4521_v0 }
 0x415   : > { %3830 = vmatmul.mubr.msk.bf16.vlgmr.msra.gmra.mrb[12].mxu1 %vm651_vm2, %v874_v63 }
 0x416   : > { %3841 = vmatprep.mubr.msk.bf16.mxu1 %vm4522_vm0, %v4521_v0 }
 0x419   : > { %3836 = vmatmul.mubr.msk.bf16.vlgmr.msra.gmra.mrb[8].mxu0 %vm651_vm2, %v924_v1 }
 0x41a   : > { %3847 = vmatprep.mubr.msk.bf16.mxu0 %vm4522_vm0, %v4521_v0 }
 0x4e0   : > { %v4896_v2 = vpop.f32.mrb[8].mxu1 }
 0x4e1   : > { %v3819_v5 = vpop.f32.mrb[9].mxu1 }
 0x4e2   : > { %v821_v6 = vpop.f32.mrb[10].mxu1 }
 0x4e3   : > { %v3820_v7 = vpop.f32.mrb[11].mxu1 }
 0x4e4   : > { %v4898_v8 = vpop.f32.mrb[4].mxu0 }
 0x4e5   : > { %v872_v9 = vpack.c.bf16 %v4898_v8, %v4896_v2  ;;  %v3825_v10 = vpop.f32.mrb[5].mxu0 }
 0x4e6   : > { %v869_v12 = vpop.f32.mrb[6].mxu0 }
 0x4e7   : > { %v3826_v13 = vpop.f32.mrb[7].mxu0 }
 0x4e8   : > { %v917_v15 = vpop.f32.mrb[12].mxu1 }
 0x4e9   : > { %v973_v16 = vmul.f32 0.35355338, %v917_v15  ;;  %v3831_v17 = vpop.f32.mrb[13].mxu1 }
 0x4ea   : > { %v920_v18 = vpop.f32.mrb[14].mxu1 }
 0x4eb   : > { %v3832_v19 = vpop.f32.mrb[15].mxu1  ;;  %v975_v20 = vadd.f32 %v973_v16, %v4853_v21 }
 0x4ec   : > { %v967_v22 = vpop.f32.mrb[8].mxu0 }
 0x4ed   : > { %v974_v23 = vmul.f32 0.35355338, %v967_v22  ;;  %v3837_v24 = vpop.f32.mrb[9].mxu0  ;;  %v977_v25 = vsel %vm651_vm2, %v975_v20, -inf }
 0x4ee   : > { %v970_v26 = vpop.f32.mrb[10].mxu0  ;;  %978 = vmax.xlane.f32.xlu1 %v977_v25 }
 0x4ef   : > { %v3838_v27 = vpop.f32.mrb[11].mxu0  ;;  %v976_v29 = vadd.f32 %v974_v23, %v4857_v28 }
 0x4f1   : > { %v980_v30 = vsel %vm651_vm2, %v976_v29, -inf }
 0x4f2   : > { %981 = vmax.xlane.f32.xlu0 %v980_v30 }
 0x508   : > { %1049 = vrot.lane.b32.xlu0 %v4831_v14, %s4527_s25 }
 0x50c   : > { %1192 = vrot.lane.b32.xlu0 %v4827_v11, %s4528_s28 }
 0x57b   : > { %v979_v31 = vpop.xlane.xlu1 %978 }
 0x57c   : > { %v983_v32 = vsub.f32 %v975_v20, %v979_v31 }
 0x57e   : > { %v985_v33 = vmul.f32 1.442695, %v983_v32 }
 0x57f   : > { %v982_v34 = vpop.xlane.xlu0 %981 }
 0x580   : > { %4224 = vpow2.f32 %v985_v33  ;;  %v984_v35 = vsub.f32 %v976_v29, %v982_v34 }
 0x582   : > { %v987_v36 = vmul.f32 1.442695, %v984_v35 }
 0x583   : > { %v1050_v37 = vpop.permute.xlu0 %1049 }
 0x584   : > { %4226 = vpow2.f32 %v987_v36  ;;  %v1055_v38 = vsel %vm780_vm5, %v1050_v37, 0 }
 0x585   : > { %3846 = vmatpush3.bf16.msra.mxu0 %v1055_v38 }
 0x586   : > { %3857 = vmatprep.subr.bf16.mxu0 %v4521_v0 }
 0x587   : > { %v1193_v13 = vpop.permute.xlu0 %1192 }
 0x58a   : > { %v4225_v39 = vpop.eup %4224 }
 0x58b   : > { %v989_v40 = vsel %vm651_vm2, %v4225_v39, 0.0 }
 0x58c   : > { %990 = vadd.xlane.f32.xlu1 %v989_v40 }
 0x58e   : > { %v4227_v41 = vpop.eup %4226 }
 0x58f   : > { %v992_v42 = vsel %vm651_vm2, %v4227_v41, 0.0 }
 0x590   : > { %993 = vadd.xlane.f32.xlu1 %v992_v42 }
 0x5a1   : > { %1001 = vrot.lane.b32.xlu1 %v4827_v11, %s4527_s25 }
 0x5a5   : > { %1194 = vrot.lane.b32.xlu1 %v4827_v11, %s4529_s26 }
 0x5a9   : > { %1244 = vrot.lane.b32.xlu1 %v4831_v14, %s4529_s26 }
 0x5ad   : > { %1242 = vrot.lane.b32.xlu1 %v4831_v14, %s4528_s28 }
 0x619   : > { %v991_v43 = vpop.xlane.xlu1 %990 }
 0x61a   : > { %4228 = vrcp.f32 %v991_v43 }
 0x61d   : > { %v994_v44 = vpop.xlane.xlu1 %993 }
 0x61e   : > { %4230 = vrcp.f32 %v994_v44 }
 0x621   : > { %v1002_v45 = vpop.permute.xlu1 %1001 }
 0x622   : > { %v1007_v46 = vsel %vm780_vm5, %v1002_v45, 0 }
 0x623   : > { %3840 = vmatpush3.bf16.msra.mxu1 %v1007_v46 }
 0x624   : > { %v4229_v47 = vpop.eup %4228  ;;  %3851 = vmatprep.subr.bf16.mxu1 %v4521_v0 }
 0x625   : > { %v997_v49 = vmul.f32 %v4229_v47, %v4225_v39  ;;  %v1195_v57 = vpop.permute.xlu1 %1194 }
 0x626   : > { %v1200_v8 = vsel %vm651_vm2, %v1195_v57, 0 }
 0x627   : > { %v999_v50 = vpack.c.bf16 %v997_v49, %v997_v49 }
 0x628   : > { %v4231_v52 = vpop.eup %4230 }
 0x629   : > { %v998_v54 = vmul.f32 %v4231_v52, %v4227_v41  ;;  %3842 = vmatmul.mubr.msk.bf16.vlgmr.msra.gmra.mrb[16].mxu1 %vm651_vm2, %v999_v50  ;;  %v1245_v58 = vpop.permute.xlu1 %1244 }
 0x62a   : > { %3852 = vmatpush3.bf16.msra.mxu1 %v1102_v51  ;;  %3853 = vmatprep.mubr.msk.bf16.mxu1 %vm4522_vm0, %v4521_v0  ;;  %v1250_v59 = vsel %vm651_vm2, %v1245_v58, 0 }
 0x62b   : > { %v1000_v55 = vpack.c.bf16 %v998_v54, %v998_v54  ;;  %3863 = vmatprep.subr.bf16.mxu1 %v4521_v0 }
 0x62d   : > { %3848 = vmatmul.mubr.msk.bf16.vlgmr.msra.gmra.mrb[12].mxu0 %vm651_vm2, %v1000_v55  ;;  %v1243_v60 = vpop.permute.xlu1 %1242 }
 0x62e   : > { %3858 = vmatpush3.bf16.msra.mxu0 %v1149_v56  ;;  %3859 = vmatprep.mubr.msk.bf16.mxu0 %vm4522_vm0, %v4521_v0 }
 0x62f   : > { %3869 = vmatprep.subr.bf16.mxu0 %v4521_v0 }
 0x635   : > { %3860 = vmatmul.mubr.msk.bf16.vlgmr.msra.gmra.mrb[16].mxu0 %vm651_vm2, %v872_v9 }
 0x636   : > { %3871 = vmatprep.mubr.msk.bf16.mxu0 %vm4522_vm0, %v4521_v0 }
 0x637   : > { %3870 = vmatpush3.bf16.xpose.msra.mxu0 %v1250_v59 }
 0x638   : > { %3881 = vmatprep.subr.bf16.mxu0 %v4521_v0 }
 0x63e   : > { %3872 = vmatmul.mubr.msk.bf16.vlgmr.msra.gmra.mrb[20].mxu0 %vm651_vm2, %v1243_v60 }
 0x63f   : > { %3883 = vmatprep.mubr.msk.bf16.mxu0 %vm4522_vm0, %v4521_v0 }
 0x6fc   : > { %v1043_v61 = vpop.f32.mrb[16].mxu1 }
 0x6fd   : > { %v3843_v62 = vpop.f32.mrb[17].mxu1 }
 0x6fe   : > { %v1046_v63 = vpop.f32.mrb[18].mxu1 }
 0x6ff   : > { %v3844_v1 = vpop.f32.mrb[19].mxu1 }
 0x700   : > { %v1091_v2 = vpop.f32.mrb[12].mxu0  ;;  %v579_v1 = vld [vmem:[#allocation2 + $0x8] sm:$0xf] }
 0x701   : > { %v1097_v5 = vpack.c.bf16 %v1091_v2, %v1043_v61  ;;  %v3849_v6 = vpop.f32.mrb[13].mxu0  ;;  %v1421_v2 = vsel %vm780_vm5, %v579_v1, 0 }
 0x702   : > { %v1094_v7 = vpop.f32.mrb[14].mxu0 }
 0x703   : > { %v3850_v9 = vpop.f32.mrb[15].mxu0  ;;  %3854 = vmatmul.mubr.msk.bf16.vlgmr.msra.gmra.mrb[20].mxu1 %vm651_vm2, %v1097_v5 }
 0x704   : > { %3864 = vmatpush3.bf16.xpose.msra.mxu1 %v1200_v8  ;;  %3865 = vmatprep.mubr.msk.bf16.mxu1 %vm4522_vm0, %v4521_v0 }
 0x705   : > { %3875 = vmatprep.subr.bf16.mxu1 %v4521_v0 }
 0x708   : > { %v1185_v10 = vpop.f32.mrb[16].mxu0 }
 0x709   : > { %v3861_v12 = vpop.f32.mrb[17].mxu0 }
 0x70a   : > { %v1188_v15 = vpop.f32.mrb[18].mxu0 }
 0x70b   : > { %v3862_v16 = vpop.f32.mrb[19].mxu0  ;;  %3866 = vmatmul.mubr.msk.bf16.vlgmr.msra.gmra.mrb[24].mxu1 %vm651_vm2, %v1193_v13 }
 0x70c   : > { %3877 = vmatprep.mubr.msk.bf16.mxu1 %vm4522_vm0, %v4521_v0 }
 0x711   : > { %v1286_v17 = vpop.f32.mrb[20].mxu0 }
 0x712   : > { %v1293_v18 = vmul.f32 0.35355338, %v1286_v17  ;;  %v3873_v19 = vpop.f32.mrb[21].mxu0 }
 0x713   : > { %v1289_v20 = vpop.f32.mrb[22].mxu0 }
 0x714   : > { %v3874_v22 = vpop.f32.mrb[23].mxu0  ;;  %v1295_v23 = vadd.f32 %v1293_v18, %v4857_v28 }
 0x716   : > { %v1299_v24 = vsel %vm651_vm2, %v1295_v23, -inf }
 0x717   : > { %1300 = vmax.xlane.f32.xlu1 %v1299_v24 }
 0x728   : > { %1320 = vrot.lane.b32.xlu1 %v4827_v11, %s4530_s16 }
 0x72c   : > { %1468 = vrot.lane.b32.xlu1 %v4827_v11, %s5431_s19 }
 0x730   : > { %1518 = vrot.lane.b32.xlu1 %v4831_v14, %s5431_s19  ;;  %s5091_s19 = scalar_lea.vmem [#allocation11], %s3585_s14 }
 0x731   : > { %s3447_s12 = sshll.u32 %s5091_s19, 4  ;;  %s5343_s12 = int_to_ptr.vmem [resolvable:$true] %s3447_s12 }
 0x734   : > { %1516 = vrot.lane.b32.xlu1 %v4831_v14, %s5429_s13 }
 0x7a4   : > { %v1301_v25 = vpop.xlane.xlu1 %1300 }
 0x7a5   : > { %v1303_v29 = vsub.f32 %v1295_v23, %v1301_v25 }
 0x7a7   : > { %v1306_v30 = vmul.f32 1.442695, %v1303_v29 }
 0x7a8   : > { %v1321_v26 = vpop.permute.xlu1 %1320 }
 0x7a9   : > { %v1326_v27 = vsel %vm780_vm5, %v1321_v26, 0  ;;  %4232 = vpow2.f32 %v1306_v30 }
 0x7aa   : > { %3876 = vmatpush3.bf16.msra.mxu1 %v1326_v27 }
 0x7ab   : > { %3887 = vmatprep.subr.bf16.mxu1 %v4521_v0 }
 0x7ac   : > { %v1469_v59 = vpop.permute.xlu1 %1468 }
 0x7ad   : > { %v1474_v61 = vsel %vm651_vm2, %v1469_v59, 0 }
 0x7b0   : > { %v1519_v9 = vpop.permute.xlu1 %1518 }
 0x7b1   : > { %v1524_v16 = vsel %vm651_vm2, %v1519_v9, 0 }
 0x7b3   : > { %v4233_v44 = vpop.eup %4232 }
 0x7b4   : > { %v1311_v45 = vsel %vm651_vm2, %v4233_v44, 0.0  ;;  %v1517_v25 = vpop.permute.xlu1 %1516 }
 0x7d6   : > { %v1138_v31 = vpop.f32.mrb[20].mxu1 }
 0x7d7   : > { %v4965_v32 = vadd.f32 %v1185_v10, %v1138_v31  ;;  %v3855_v33 = vpop.f32.mrb[21].mxu1 }
 0x7d8   : > { %v1141_v34 = vpop.f32.mrb[22].mxu1 }
 0x7d9   : > { %v4967_v35 = vadd.f32 %v1188_v15, %v1141_v34  ;;  %v3856_v36 = vpop.f32.mrb[23].mxu1 }
 0x7de   : > { %v1236_v37 = vpop.f32.mrb[24].mxu1 }
 0x7df   : > { %v1292_v38 = vmul.f32 0.35355338, %v1236_v37  ;;  %v3867_v39 = vpop.f32.mrb[25].mxu1 }
 0x7e0   : > { %v1239_v40 = vpop.f32.mrb[26].mxu1 }
 0x7e1   : > { %v3868_v41 = vpop.f32.mrb[27].mxu1  ;;  %v1294_v42 = vadd.f32 %v1292_v38, %v4853_v21 }
 0x7e3   : > { %v1296_v43 = vsel %vm651_vm2, %v1294_v42, -inf }
 0x7e4   : > { %1297 = vmax.xlane.f32.xlu0 %v1296_v43 }
 0x7e8   : > { %1312 = vadd.xlane.f32.xlu0 %v1311_v45 }
 0x871   : > { %v1298_v46 = vpop.xlane.xlu0 %1297 }
 0x872   : > { %v1302_v47 = vsub.f32 %v1294_v42, %v1298_v46 }
 0x874   : > { %v1304_v48 = vmul.f32 1.442695, %v1302_v47 }
 0x875   : > { %v1313_v51 = vpop.xlane.xlu0 %1312 }
 0x876   : > { %4234 = vpow2.f32 %v1304_v48 }
 0x877   : > { %4236 = vrcp.f32 %v1313_v51 }
 0x880   : > { %v4235_v49 = vpop.eup %4234 }
 0x881   : > { %v1308_v50 = vsel %vm651_vm2, %v4235_v49, 0.0  ;;  %v4237_v52 = vpop.eup %4236 }
 0x882   : > { %1309 = vadd.xlane.f32.xlu0 %v1308_v50  ;;  %v1317_v54 = vmul.f32 %v4237_v52, %v4233_v44 }
 0x884   : > { %v1319_v57 = vpack.c.bf16 %v1317_v54, %v1317_v54 }
 0x898   : > { %1368 = vrot.lane.b32.xlu0 %v4831_v14, %s4530_s16 }
 0x89c   : > { %1466 = vrot.lane.b32.xlu0 %v4827_v11, %s5429_s13  ;;  %s5460_s13 = sld [smem:[#allocation25_spill]] }
 0x90f   : > { %v1310_v53 = vpop.xlane.xlu0 %1309 }
 0x910   : > { %4238 = vrcp.f32 %v1310_v53 }
 0x913   : > { %v1369_v55 = vpop.permute.xlu0 %1368 }
 0x914   : > { %v1374_v56 = vsel %vm780_vm5, %v1369_v55, 0 }
 0x915   : > { %3882 = vmatpush3.bf16.msra.mxu0 %v1374_v56  ;;  %v580_v56 = vld [vmem:[#allocation2 + $0xc] sm:$0xf] }
 0x916   : > { %3893 = vmatprep.subr.bf16.mxu0 %v4521_v0 }
 0x917   : > { %v1467_v63 = vpop.permute.xlu0 %1466 }
 0x918   : > { %3884 = vmatmul.mubr.msk.bf16.vlgmr.msra.gmra.mrb[24].mxu0 %vm651_vm2, %v1319_v57  ;;  %v1695_v57 = vsel %vm780_vm5, %v580_v56, 0  ;;  %v4206_v56 = vld [vmem:[%s5402_s10 + $0x10] sm:$0xff]  }
 0x919   : > { %3895 = vmatprep.mubr.msk.bf16.mxu0 %vm4522_vm0, %v4521_v0 }
 0x91a   : > { %v4239_v58 = vpop.eup %4238 }
 0x91b   : > { %v1316_v60 = vmul.f32 %v4239_v58, %v4235_v49 }
 0x91d   : > { %v1318_v62 = vpack.c.bf16 %v1316_v60, %v1316_v60 }
 0x91e   : > { %3894 = vmatpush3.bf16.xpose.msra.mxu0 %v1474_v61 }
 0x91f   : > { %3878 = vmatmul.mubr.msk.bf16.vlgmr.msra.gmra.mrb[28].mxu1 %vm651_vm2, %v1318_v62  ;;  %3905 = vmatprep.subr.bf16.mxu0 %v4521_v0 }
 0x920   : > { %3889 = vmatprep.mubr.msk.bf16.mxu1 %vm4522_vm0, %v4521_v0  ;;  %3888 = vmatpush3.bf16.msra.mxu1 %v1421_v2 }
 0x921   : > { %3899 = vmatprep.subr.bf16.mxu1 %v4521_v0 }
 0x925   : > { %3896 = vmatmul.mubr.msk.bf16.vlgmr.msra.gmra.mrb[28].mxu0 %vm651_vm2, %v1467_v63 }
 0x926   : > { %3907 = vmatprep.mubr.msk.bf16.mxu0 %vm4522_vm0, %v4521_v0 }
 0x9eb   : > { %v1410_v5 = vpop.f32.mrb[24].mxu0 }
 0x9ec   : > { %v3885_v6 = vpop.f32.mrb[25].mxu0 }
 0x9ed   : > { %v1413_v7 = vpop.f32.mrb[26].mxu0 }
 0x9ee   : > { %v3886_v8 = vpop.f32.mrb[27].mxu0 }
 0x9f2   : > { %v1362_v10 = vpop.f32.mrb[28].mxu1 }
 0x9f3   : > { %v1416_v12 = vpack.c.bf16 %v1410_v5, %v1362_v10  ;;  %v3879_v13 = vpop.f32.mrb[29].mxu1 }
 0x9f4   : > { %v1365_v15 = vpop.f32.mrb[30].mxu1  ;;  %v3614_v13 = vld [vmem:[%s5397_s5] ss:$0 sm:$0xff] }
 0x9f5   : > { %v3880_v17 = vpop.f32.mrb[31].mxu1  ;;  %3890 = vmatmul.mubr.msk.bf16.vlgmr.msra.gmra.mrb[32].mxu1 %vm651_vm2, %v1416_v12 }
 0x9f6   : > { %3900 = vmatpush3.bf16.xpose.msra.mxu1 %v1524_v16  ;;  %3901 = vmatprep.mubr.msk.bf16.mxu1 %vm4522_vm0, %v4521_v0 }
 0x9f7   : > { %3911 = vmatprep.subr.bf16.mxu1 %v4521_v0 }
 0x9f8   : > { %v1510_v18 = vpop.f32.mrb[28].mxu0 }
 0x9f9   : > { %v1566_v19 = vmul.f32 0.35355338, %v1510_v18  ;;  %v3897_v20 = vpop.f32.mrb[29].mxu0 }
 0x9fa   : > { %v1513_v22 = vpop.f32.mrb[30].mxu0 }
 0x9fb   : > { %v3898_v23 = vpop.f32.mrb[31].mxu0  ;;  %v1568_v24 = vadd.f32 %v1566_v19, %v4853_v21 }
 0x9fd   : > { %3902 = vmatmul.mubr.msk.bf16.vlgmr.msra.gmra.mrb[36].mxu1 %vm651_vm2, %v1517_v25  ;;  %v1570_v26 = vsel %vm651_vm2, %v1568_v24, -inf }
 0x9fe   : > { %1571 = vmax.xlane.f32.xlu0 %v1570_v26  ;;  %3913 = vmatprep.mubr.msk.bf16.mxu1 %vm4522_vm0, %v4521_v0 }
 0xa8b   : > { %v1572_v27 = vpop.xlane.xlu0 %1571 }
 0xa8c   : > { %v1576_v29 = vsub.f32 %v1568_v24, %v1572_v27 }
 0xa8e   : > { %v1578_v30 = vmul.f32 1.442695, %v1576_v29 }
 0xa90   : > { %4240 = vpow2.f32 %v1578_v30 }
 0xa9a   : > { %v4241_v31 = vpop.eup %4240 }
 0xa9b   : > { %v1582_v33 = vsel %vm651_vm2, %v4241_v31, 0.0 }
 0xa9c   : > { %1583 = vadd.xlane.f32.xlu0 %v1582_v33 }
 0xac8   : > { %v1457_v34 = vpop.f32.mrb[32].mxu1 }
 0xac9   : > { %v1464_v36 = vadd.f32 %v1457_v34, %v4965_v32  ;;  %v3891_v37 = vpop.f32.mrb[33].mxu1 }
 0xaca   : > { %v1460_v38 = vpop.f32.mrb[34].mxu1 }
 0xacb   : > { %v5005_v39 = vadd.f32 %v1460_v38, %v4967_v35  ;;  %v3892_v40 = vpop.f32.mrb[35].mxu1 }
 0xacc   : > { %v4204_v40 = vld [vmem:[%s5402_s10] sm:$0xff]  }
 0xad0   : > { %v1560_v41 = vpop.f32.mrb[36].mxu1 }
 0xad1   : > { %v1567_v42 = vmul.f32 0.35355338, %v1560_v41  ;;  %v3903_v43 = vpop.f32.mrb[37].mxu1  ;;  %v4205_v41 = vld [vmem:[%s5402_s10 + $0x8] sm:$0xff]  }
 0xad2   : > { %v1563_v44 = vpop.f32.mrb[38].mxu1 }
 0xad3   : > { %v3904_v45 = vpop.f32.mrb[39].mxu1  ;;  %v1569_v46 = vadd.f32 %v1567_v42, %v4857_v28 }
 0xad5   : > { %v1573_v47 = vsel %vm651_vm2, %v1569_v46, -inf }
 0xad6   : > { %1574 = vmax.xlane.f32.xlu1 %v1573_v47 }
 0xae7   : > { %1594 = vrot.lane.b32.xlu1 %v4827_v11, %s5427_s24 }
 0xb29   : > { %v1584_v32 = vpop.xlane.xlu0 %1583 }
 0xb2a   : > { %4242 = vrcp.f32 %v1584_v32 }
 0xb34   : > { %v4243_v48 = vpop.eup %4242 }
 0xb35   : > { %v1590_v50 = vmul.f32 %v4243_v48, %v4241_v31  ;;  %v3615_v48 = vld [vmem:[#allocation5] ss:$0 sm:$0xff] }
 0xb37   : > { %v1592_v54 = vpack.c.bf16 %v1590_v50, %v1590_v50 }
 0xb63   : > { %v1575_v35 = vpop.xlane.xlu1 %1574 }
 0xb64   : > { %v1577_v49 = vsub.f32 %v1569_v46, %v1575_v35 }
 0xb66   : > { %v1580_v51 = vmul.f32 1.442695, %v1577_v49 }
 0xb67   : > { %v1595_v52 = vpop.permute.xlu1 %1594 }
 0xb68   : > { %4244 = vpow2.f32 %v1580_v51  ;;  %v1600_v53 = vsel %vm780_vm5, %v1595_v52, 0  ;;  %v3616_v52 = vld [vmem:[#allocation7] ss:$0 sm:$0xff] }
 0xb69   : > { %3906 = vmatpush3.bf16.msra.mxu0 %v1600_v53 }
 0xb6a   : > { %3917 = vmatprep.subr.bf16.mxu0 %v4521_v0 }
 0xb6c   : > { %3908 = vmatmul.mubr.msk.bf16.vlgmr.msra.gmra.mrb[32].mxu0 %vm651_vm2, %v1592_v54 }
 0xb6d   : > { %3919 = vmatprep.mubr.msk.bf16.mxu0 %vm4522_vm0, %v4521_v0  ;;  %3918 = vmatpush3.bf16.msra.mxu0 %v1695_v57  ;;  %v4207_v57 = vld [vmem:[%s5402_s10 + $0x18] sm:$0xff]  }
 0xb6e   : > { %3931 = vmatprep.subr.bf16.mxu0 %v4521_v0 }
 0xb72   : > { %v4245_v11 = vpop.eup %4244 }
 0xb73   : > { %v1585_v55 = vsel %vm651_vm2, %v4245_v11, 0.0 }
 0xb74   : > { %1586 = vadd.xlane.f32.xlu0 %v1585_v55 }
 0xb8a   : > { %1642 = vrot.lane.b32.xlu0 %v4831_v14, %s5427_s24  ;;  %s5465_s24 = sld [smem:[#allocation26_spill]] }
 0xc01   : > { %v1587_v58 = vpop.xlane.xlu0 %1586 }
 0xc02   : > { %4246 = vrcp.f32 %v1587_v58  ;;  %v3617_v58 = vld [vmem:[#allocation10] ss:$0 sm:$0xff] }
 0xc05   : > { %v1643_v59 = vpop.permute.xlu0 %1642 }
 0xc06   : > { %v1648_v60 = vsel %vm780_vm5, %v1643_v59, 0 }
 0xc07   : > { %3912 = vmatpush3.bf16.msra.mxu1 %v1648_v60 }
 0xc08   : > { %3923 = vmatprep.subr.bf16.mxu1 %v4521_v0 }
 0xc0c   : > { %v4247_v61 = vpop.eup %4246 }
 0xc0d   : > { %v1591_v62 = vmul.f32 %v4247_v61, %v4245_v11 }
 0xc0f   : > { %v1593_v63 = vpack.c.bf16 %v1591_v62, %v1591_v62 }
 0xc11   : > { %3914 = vmatmul.mubr.msk.bf16.vlgmr.msra.gmra.mrb[40].mxu1 %vm651_vm2, %v1593_v63 }
 0xc12   : > { %3927 = vmatprep.mubr.msk.bf16.mxu1 %vm4522_vm0, %v4521_v0 }
 0xc3f   : > { %v1636_v14 = vpop.f32.mrb[32].mxu0 }
 0xc40   : > { %v3909_v1 = vpop.f32.mrb[33].mxu0 }
 0xc41   : > { %v1639_v2 = vpop.f32.mrb[34].mxu0 }
 0xc42   : > { %v3910_v5 = vpop.f32.mrb[35].mxu0 }
 0xce4   : > { %v1684_v6 = vpop.f32.mrb[40].mxu1 }
 0xce5   : > { %v1690_v7 = vpack.c.bf16 %v1684_v6, %v1636_v14  ;;  %v3915_v8 = vpop.f32.mrb[41].mxu1  ;;  %v3621_v6 = vld [vmem:[%s5403_s11] ss:$0 sm:$0xff] }
 0xce6   : > { %v1687_v9 = vpop.f32.mrb[42].mxu1 }
 0xce7   : > { %v3916_v10 = vpop.f32.mrb[43].mxu1  ;;  %3920 = vmatmul.mubr.msk.bf16.vlgmr.msra.gmra.mrb[36].mxu0 %vm651_vm2, %v1690_v7 }
 0xce8   : > { %3939 = vmatprep.mubr.msk.bf16.mxu0 %vm4522_vm0, %v4521_v0  ;;  %3932 = vmatpush3.bf16.msra.mxu0 %v4204_v40  ;;  %v3627_v40 = vld [vmem:[%s5459_s23] ss:$0 sm:$0xff] }
 0xce9   : > { %3933 = vmatprep.subr.bf16.mxu0 %v4521_v0 }
 0xcec   : > { %3934 = vmatpush3.bf16.msra.mxu0 %v4205_v41 }
 0xced   : > { %3935 = vmatprep.subr.bf16.mxu0 %v4521_v0 }
 0xcf0   : > { %3936 = vmatpush3.bf16.msra.mxu0 %v4206_v56 }
 0xcf1   : > { %3937 = vmatprep.subr.bf16.mxu0 %v4521_v0 }
 0xcf4   : > { %3938 = vmatpush3.bf16.msra.mxu0 %v4207_v57 }
 0xcf5   : > { %3957 = vmatprep.subr.bf16.mxu0 %v4521_v0 }
 0xdba   : > { %v1731_v12 = vpop.f32.mrb[36].mxu0 }
 0xdbb   : > { %v1738_v15 = vadd.f32 %v1731_v12, %v1464_v36  ;;  %v3921_v16 = vpop.f32.mrb[37].mxu0 }
 0xdbc   : > { %v1734_v17 = vpop.f32.mrb[38].mxu0 }
 0xdbd   : > { %v1747_v18 = vadd.f32 %v3614_v13, %v1738_v15  ;;  %v1739_v19 = vadd.f32 %v1734_v17, %v5005_v39  ;;  %v3922_v20 = vpop.f32.mrb[39].mxu0  ;;  %v4202_v39 = vld [vmem:[#allocation8] sm:$0xff]  }
 0xdbe   : > { %3924 = vmatpush3.bf16.msra.mxu1 %v4202_v39 }
 0xdbf   : > { %v1748_v22 = vadd.f32 %v3614_v13, %v1739_v19  ;;  %v1749_v23 = vadd.f32 %v1747_v18, %v4813_v3  ;;  %3925 = vmatprep.subr.bf16.mxu1 %v4521_v0 }
 0xdc1   : > { %v1753_v24 = vsel %vm601_vm1, %v1749_v23, 0.0  ;;  %v1750_v25 = vadd.f32 %v1748_v22, %v4815_v4  ;;  %v4203_v4 = vld [vmem:[#allocation8 + $0x8] sm:$0xff]  }
 0xdc2   : > { %1754 = vadd.xlane.f32.xlu1 %v1753_v24  ;;  %3926 = vmatpush3.bf16.msra.mxu1 %v4203_v4 }
 0xdc3   : > { %v1756_v26 = vsel %vm601_vm1, %v1750_v25, 0.0  ;;  %3943 = vmatprep.subr.bf16.mxu1 %v4521_v0 }
 0xdc4   : > { %1757 = vadd.xlane.f32.xlu0 %v1756_v26 }
 0xe4f   : > { %v1755_v27 = vpop.xlane.xlu1 %1754 }
 0xe50   : > { %v1760_v29 = vmul.f32 0.03125, %v1755_v27 }
 0xe51   : > { %v1758_v30 = vpop.xlane.xlu0 %1757 }
 0xe52   : > { %v1762_v31 = vsub.f32 %v1749_v23, %v1760_v29  ;;  %v1761_v33 = vmul.f32 0.03125, %v1758_v30 }
 0xe54   : > { %v1763_v34 = vsub.f32 %v1750_v25, %v1761_v33  ;;  %v1764_v36 = vmul.f32 %v1762_v31, %v1762_v31  ;;  %v4209_v33 = vld [vmem:[%s5394_s2 + $0x18] sm:$0xff]  }
 0xe56   : > { %v1766_v37 = vsel %vm601_vm1, %v1764_v36, 0.0  ;;  %v1765_v38 = vmul.f32 %v1763_v34, %v1763_v34 }
 0xe57   : > { %1767 = vadd.xlane.f32.xlu1 %v1766_v37 }
 0xe58   : > { %v1769_v3 = vsel %vm601_vm1, %v1765_v38, 0.0 }
 0xe59   : > { %1770 = vadd.xlane.f32.xlu0 %v1769_v3 }
 0xee4   : > { %v1768_v42 = vpop.xlane.xlu1 %1767 }
 0xee5   : > { %v1772_v43 = vmul.f32 0.03125, %v1768_v42 }
 0xee6   : > { %v1771_v44 = vpop.xlane.xlu0 %1770 }
 0xee7   : > { %v1774_v45 = vadd.f32 1e-05, %v1772_v43  ;;  %v1773_v46 = vmul.f32 0.03125, %v1771_v44  ;;  %v3628_v43 = vld [vmem:[%s5460_s13] ss:$0 sm:$0xff] }
 0xee9   : > { %4248 = vrsqrt.f32 %v1774_v45  ;;  %v1775_v47 = vadd.f32 1e-05, %v1773_v46 }
 0xeeb   : > { %4250 = vrsqrt.f32 %v1775_v47 }
 0xef3   : > { %v4249_v32 = vpop.eup %4248 }
 0xef4   : > { %v1778_v35 = vmul.f32 %v4249_v32, %v1762_v31  ;;  %v4208_v31 = vld [vmem:[%s5394_s2 + $0x10] sm:$0xff]  }
 0xef5   : > { %v4251_v49 = vpop.eup %4250 }
 0xef6   : > { %v1786_v50 = vmul.f32 %v3615_v48, %v1778_v35  ;;  %v1779_v51 = vmul.f32 %v4251_v49, %v1763_v34  ;;  %v3634_v35 = vld [vmem:[%s5395_s3 + $0x1] ss:$0 sm:$0xff] }
 0xef8   : > { %v1787_v53 = vmul.f32 %v3615_v48, %v1779_v51  ;;  %v1794_v54 = vadd.f32 %v3616_v52, %v1786_v50 }
 0xefa   : > { %v1795_v11 = vadd.f32 %v3616_v52, %v1787_v53 }
 0xefc   : > { %v1796_v55 = vpack.c.bf16 %v1795_v11, %v1794_v54 }
 0xefe   : > { %3928 = vmatmul.mubr.msk.bf16.vlgmr.msra.gmra.mrb[44].mxu1 %vm601_vm1, %v1796_v55 }
 0xeff   : > { %3947 = vmatprep.mubr.msk.bf16.mxu1 %vm4522_vm0, %v4521_v0  ;;  %3944 = vmatpush3.bf16.msra.mxu1 %v4208_v31 }
 0xf00   : > { %3945 = vmatprep.subr.bf16.mxu1 %v4521_v0 }
 0xf03   : > { %3946 = vmatpush3.bf16.msra.mxu1 %v4209_v33 }
 0xf04   : > { %3951 = vmatprep.subr.bf16.mxu1 %v4521_v0 }
 0xfd1   : > { %v1857_v59 = vpop.f32.mrb[44].mxu1 }
 0xfd2   : > { %v1858_v60 = vadd.f32 %v3617_v58, %v1857_v59  ;;  %v3929_v61 = vpop.f32.mrb[45].mxu1 }
 0xfd3   : > { %v1860_v62 = vpop.f32.mrb[46].mxu1 }
 0xfd4   : > { %v1861_v63 = vadd.f32 %v3617_v58, %v1860_v62  ;;  %v3930_v14 = vpop.f32.mrb[47].mxu1  ;;  %v1864_v1 = vmax.f32 %v1858_v60, 0.0 }
 0xfd6   : > { %v1865_v2 = vmax.f32 %v1861_v63, 0.0 }
 0xfd8   : > { %v1866_v5 = vpack.c.bf16 %v1865_v2, %v1864_v1 }
 0xfda   : > { %3940 = vmatmul.mubr.msk.bf16.vlgmr.msra.gmra.mrb[40].mxu0 %vm1906_vm6, %v1866_v5 }
 0xfdb   : > { %3959 = vmatprep.mubr.msk.bf16.mxu0 %vm4522_vm0, %v4521_v0 }
0x10ad   : > { %v1944_v7 = vpop.f32.mrb[40].mxu0 }
0x10ae   : > { %v1945_v8 = vadd.f32 %v3621_v6, %v1944_v7  ;;  %v3941_v9 = vpop.f32.mrb[41].mxu0 }
0x10af   : > { %v1947_v10 = vpop.f32.mrb[42].mxu0 }
0x10b0   : > { %v1948_v12 = vadd.f32 %v3621_v6, %v1947_v10  ;;  %v3942_v13 = vpop.f32.mrb[43].mxu0  ;;  %v1951_v15 = vadd.f32 %v1945_v8, %v1794_v54 }
0x10b2   : > { %v1955_v16 = vsel %vm601_vm1, %v1951_v15, 0.0  ;;  %v1952_v17 = vadd.f32 %v1948_v12, %v1795_v11 }
0x10b3   : > { %1956 = vadd.xlane.f32.xlu1 %v1955_v16 }
0x10b4   : > { %v1958_v18 = vsel %vm601_vm1, %v1952_v17, 0.0 }
0x10b5   : > { %1959 = vadd.xlane.f32.xlu0 %v1958_v18 }
0x1140   : > { %v1957_v19 = vpop.xlane.xlu1 %1956 }
0x1141   : > { %v1961_v20 = vmul.f32 0.03125, %v1957_v19 }
0x1142   : > { %v1960_v22 = vpop.xlane.xlu0 %1959 }
0x1143   : > { %v1963_v23 = vsub.f32 %v1951_v15, %v1961_v20  ;;  %v1962_v24 = vmul.f32 0.03125, %v1960_v22 }
0x1145   : > { %v1964_v25 = vsub.f32 %v1952_v17, %v1962_v24  ;;  %v1965_v26 = vmul.f32 %v1963_v23, %v1963_v23 }
0x1147   : > { %v1967_v27 = vsel %vm601_vm1, %v1965_v26, 0.0  ;;  %v1966_v29 = vmul.f32 %v1964_v25, %v1964_v25 }
0x1148   : > { %1968 = vadd.xlane.f32.xlu1 %v1967_v27 }
0x1149   : > { %v1970_v30 = vsel %vm601_vm1, %v1966_v29, 0.0 }
0x114a   : > { %1971 = vadd.xlane.f32.xlu0 %v1970_v30 }
0x11d5   : > { %v1969_v34 = vpop.xlane.xlu1 %1968 }
0x11d6   : > { %v1973_v36 = vmul.f32 0.03125, %v1969_v34 }
0x11d7   : > { %v1972_v37 = vpop.xlane.xlu0 %1971 }
0x11d8   : > { %v1975_v38 = vadd.f32 1e-05, %v1973_v36  ;;  %v1974_v3 = vmul.f32 0.03125, %v1972_v37 }
0x11da   : > { %4252 = vrsqrt.f32 %v1975_v38  ;;  %v1976_v39 = vadd.f32 1e-05, %v1974_v3 }
0x11dc   : > { %4254 = vrsqrt.f32 %v1976_v39 }
0x11e4   : > { %v4253_v4 = vpop.eup %4252 }
0x11e5   : > { %v1979_v41 = vmul.f32 %v4253_v4, %v1963_v23 }
0x11e6   : > { %v4255_v42 = vpop.eup %4254 }
0x11e7   : > { %v1987_v44 = vmul.f32 %v3627_v40, %v1979_v41  ;;  %v1980_v45 = vmul.f32 %v4255_v42, %v1964_v25 }
0x11e9   : > { %v1988_v46 = vmul.f32 %v3627_v40, %v1980_v45  ;;  %v5087_v47 = vadd.f32 %v3628_v43, %v1987_v44 }
0x11eb   : > { %v5089_v32 = vadd.f32 %v3628_v43, %v1988_v46  ;;  %3428 = vst.msk [vmem:[%s5091_s19] sm:$0xff] %vm601_vm1, %v5087_v47 }
0x11ed   : > { %v2007_v48 = vpack.c.bf16 %v5089_v32, %v5087_v47  ;;  %3430 = vst.msk [vmem:[%s5091_s19 + $0x10] sm:$0xff] %vm601_vm1, %v5089_v32 }
0x11ef   : > { %3948 = vmatmul.mubr.msk.bf16.vlgmr.msra.gmra.mrb[48].mxu1 %vm601_vm1, %v2007_v48 }
0x11f0   : > { %3953 = vmatprep.mubr.msk.bf16.mxu1 %vm4522_vm0, %v4521_v0 }
0x12c2   : > { %v2065_v49 = vpop.f32.mrb[48].mxu1 }
0x12c3   : > { %v2066_v50 = vadd.f32 %v3634_v35, %v2065_v49  ;;  %v3949_v51 = vpop.f32.mrb[49].mxu1 }
0x12c4   : > { %v2068_v52 = vpop.f32.mrb[50].mxu1 }
0x12c5   : > { %v5107_v53 = vpack.c.bf16 %v2066_v50, %v2066_v50  ;;  %v2069_v54 = vadd.f32 %v3634_v35, %v2068_v52  ;;  %v3950_v11 = vpop.f32.mrb[51].mxu1 }
0x12c7   : > { %v5109_v55 = vpack.c.bf16 %v2069_v54, %v2069_v54  ;;  %2075 = vrot.lane.b32.xlu1 %v5107_v53, %s4523_s21 }
0x12c9   : > { %2124 = vrot.lane.b32.xlu0 %v5109_v55, %s4523_s21  ;;  %s5461_s21 = smov 72  }
0x1339   : > { %v2076_v56 = vpop.permute.xlu1 %2075 }
0x133a   : > { %v2081_v57 = vsel %vm651_vm2, %v2076_v56, 0 }
0x133b   : > { %3952 = vmatpush3.bf16.xpose.msra.mxu1 %v2081_v57  ;;  %v2125_v58 = vpop.permute.xlu0 %2124 }
0x133c   : > { %v2130_v59 = vsel %vm651_vm2, %v2125_v58, 0  ;;  %3963 = vmatprep.subr.bf16.mxu1 %v4521_v0 }
0x133d   : > { %3958 = vmatpush3.bf16.xpose.msra.mxu0 %v2130_v59 }
0x133e   : > { %3969 = vmatprep.subr.bf16.mxu0 %v4521_v0 }
0x1342   : > { %3954 = vmatmul.mubr.msk.bf16.vlgmr.msra.gmra.mrb[52].mxu1 %vm651_vm2, %v5107_v53 }
0x1343   : > { %3965 = vmatprep.mubr.msk.bf16.mxu1 %vm4522_vm0, %v4521_v0 }
0x1344   : > { %3960 = vmatmul.mubr.msk.bf16.vlgmr.msra.gmra.mrb[44].mxu0 %vm651_vm2, %v5109_v55 }
0x1345   : > { %3971 = vmatprep.mubr.msk.bf16.mxu0 %vm4522_vm0, %v4521_v0 }
0x1415   : > { %v2117_v60 = vpop.f32.mrb[52].mxu1 }
0x1416   : > { %v2172_v61 = vmul.f32 0.35355338, %v2117_v60  ;;  %v3955_v62 = vpop.f32.mrb[53].mxu1 }
0x1417   : > { %v2120_v63 = vpop.f32.mrb[54].mxu1  ;;  %v2166_v14 = vpop.f32.mrb[44].mxu0 }
0x1418   : > { %v2173_v1 = vmul.f32 0.35355338, %v2166_v14  ;;  %v3956_v2 = vpop.f32.mrb[55].mxu1  ;;  %v3961_v5 = vpop.f32.mrb[45].mxu0  ;;  %v2174_v6 = vadd.f32 %v2172_v61, %v4853_v21 }
0x1419   : > { %v2169_v7 = vpop.f32.mrb[46].mxu0 }
0x141a   : > { %v3962_v8 = vpop.f32.mrb[47].mxu0  ;;  %v2176_v9 = vsel %vm651_vm2, %v2174_v6, -inf  ;;  %v2175_v10 = vadd.f32 %v2173_v1, %v4857_v28 }
0x141b   : > { %2177 = vmax.xlane.f32.xlu1 %v2176_v9 }
0x141c   : > { %v2179_v12 = vsel %vm651_vm2, %v2175_v10, -inf }
0x141d   : > { %2180 = vmax.xlane.f32.xlu0 %v2179_v12 }
0x142c   : > { %2200 = vrot.lane.b32.xlu1 %v5107_v53, %s4524_s20 }
0x14a8   : > { %v2178_v13 = vpop.xlane.xlu1 %2177 }
0x14a9   : > { %v2182_v15 = vsub.f32 %v2174_v6, %v2178_v13 }
0x14aa   : > { %v2181_v16 = vpop.xlane.xlu0 %2180 }
0x14ab   : > { %v2184_v17 = vmul.f32 1.442695, %v2182_v15  ;;  %v2183_v18 = vsub.f32 %v2175_v10, %v2181_v16 }
0x14ac   : > { %v2201_v19 = vpop.permute.xlu1 %2200 }
0x14ad   : > { %4256 = vpow2.f32 %v2184_v17  ;;  %v2186_v20 = vmul.f32 1.442695, %v2183_v18  ;;  %v2206_v22 = vsel %vm780_vm5, %v2201_v19, 0 }
0x14ae   : > { %3964 = vmatpush3.bf16.msra.mxu1 %v2206_v22 }
0x14af   : > { %4258 = vpow2.f32 %v2186_v20  ;;  %3975 = vmatprep.subr.bf16.mxu1 %v4521_v0 }
0x14b7   : > { %v4257_v23 = vpop.eup %4256 }
0x14b8   : > { %v2188_v24 = vsel %vm651_vm2, %v4257_v23, 0.0 }
0x14b9   : > { %v4259_v25 = vpop.eup %4258  ;;  %2189 = vadd.xlane.f32.xlu1 %v2188_v24 }
0x14ba   : > { %v2191_v26 = vsel %vm651_vm2, %v4259_v25, 0.0 }
0x14bb   : > { %2192 = vadd.xlane.f32.xlu0 %v2191_v26  ;;  %v2004_v26 = vld [vmem:[#allocation2 + $0x14] sm:$0xf] }
0x14ca   : > { %2299 = vrot.lane.b32.xlu1 %v5107_v53, %s4525_s29 }
0x14ce   : > { %2349 = vrot.lane.b32.xlu1 %v5109_v55, %s4525_s29  ;;  %s5463_s29 = smov 40  }
0x14d1   : > { %2248 = vrot.lane.b32.xlu0 %v5109_v55, %s4524_s20  ;;  %s5462_s20 = smov 104  }
0x14d2   : > { %2347 = vrot.lane.b32.xlu1 %v5109_v55, %s4526_s18 }
0x14d5   : > { %2297 = vrot.lane.b32.xlu0 %v5107_v53, %s4526_s18 }
0x1546   : > { %v2190_v27 = vpop.xlane.xlu1 %2189 }
0x1547   : > { %4260 = vrcp.f32 %v2190_v27 }
0x1548   : > { %v2193_v29 = vpop.xlane.xlu0 %2192 }
0x1549   : > { %4262 = vrcp.f32 %v2193_v29 }
0x154a   : > { %v2300_v33 = vpop.permute.xlu1 %2299 }
0x154b   : > { %v2305_v4 = vsel %vm651_vm2, %v2300_v33, 0  ;;  %v2003_v33 = vld [vmem:[#allocation2 + $0x10] sm:$0xf] }
0x154c   : > { %v2249_v30 = vpop.permute.xlu0 %2248 }
0x154d   : > { %v2254_v31 = vsel %vm780_vm5, %v2249_v30, 0  ;;  %v2526_v30 = vsel %vm780_vm5, %v2004_v26, 0 }
0x154e   : > { %3970 = vmatpush3.bf16.msra.mxu0 %v2254_v31  ;;  %v2350_v39 = vpop.permute.xlu1 %2349 }
0x154f   : > { %3981 = vmatprep.subr.bf16.mxu0 %v4521_v0  ;;  %v2355_v41 = vsel %vm651_vm2, %v2350_v39, 0 }
0x1550   : > { %v2298_v42 = vpop.permute.xlu0 %2297 }
0x1551   : > { %v4261_v34 = vpop.eup %4260 }
0x1552   : > { %v2196_v36 = vmul.f32 %v4261_v34, %v4257_v23  ;;  %v2348_v43 = vpop.permute.xlu1 %2347 }
0x1553   : > { %v4263_v37 = vpop.eup %4262 }
0x1554   : > { %v2197_v38 = vmul.f32 %v4263_v37, %v4259_v25  ;;  %v2198_v3 = vpack.c.bf16 %v2196_v36, %v2196_v36  ;;  %v2573_v37 = vsel %vm780_vm5, %v2003_v33, 0 }
0x1556   : > { %3966 = vmatmul.mubr.msk.bf16.vlgmr.msra.gmra.mrb[56].mxu1 %vm651_vm2, %v2198_v3  ;;  %v2199_v40 = vpack.c.bf16 %v2197_v38, %v2197_v38 }
0x1557   : > { %3976 = vmatpush3.bf16.xpose.msra.mxu1 %v2305_v4  ;;  %3977 = vmatprep.mubr.msk.bf16.mxu1 %vm4522_vm0, %v4521_v0 }
0x1558   : > { %3972 = vmatmul.mubr.msk.bf16.vlgmr.msra.gmra.mrb[48].mxu0 %vm651_vm2, %v2199_v40  ;;  %3987 = vmatprep.subr.bf16.mxu1 %v4521_v0 }
0x1559   : > { %3982 = vmatpush3.bf16.xpose.msra.mxu0 %v2355_v41  ;;  %3983 = vmatprep.mubr.msk.bf16.mxu0 %vm4522_vm0, %v4521_v0 }
0x155a   : > { %3993 = vmatprep.subr.bf16.mxu0 %v4521_v0 }
0x155e   : > { %3978 = vmatmul.mubr.msk.bf16.vlgmr.msra.gmra.mrb[60].mxu1 %vm651_vm2, %v2298_v42 }
0x155f   : > { %3989 = vmatprep.mubr.msk.bf16.mxu1 %vm4522_vm0, %v4521_v0 }
0x1560   : > { %3984 = vmatmul.mubr.msk.bf16.vlgmr.msra.gmra.mrb[52].mxu0 %vm651_vm2, %v2348_v43 }
0x1561   : > { %3995 = vmatprep.mubr.msk.bf16.mxu0 %vm4522_vm0, %v4521_v0 }
0x1629   : > { %v5165_v44 = vpop.f32.mrb[56].mxu1 }
0x162a   : > { %v3967_v45 = vpop.f32.mrb[57].mxu1 }
0x162b   : > { %v2245_v46 = vpop.f32.mrb[58].mxu1  ;;  %v5167_v48 = vpop.f32.mrb[48].mxu0 }
0x162c   : > { %v2296_v35 = vpack.c.bf16 %v5167_v48, %v5165_v44  ;;  %v3968_v49 = vpop.f32.mrb[59].mxu1  ;;  %v3973_v50 = vpop.f32.mrb[49].mxu0 }
0x162d   : > { %v2293_v51 = vpop.f32.mrb[50].mxu0 }
0x162e   : > { %v3974_v52 = vpop.f32.mrb[51].mxu0 }
0x1631   : > { %v2341_v54 = vpop.f32.mrb[60].mxu1 }
0x1632   : > { %v2397_v11 = vmul.f32 0.35355338, %v2341_v54  ;;  %v3979_v56 = vpop.f32.mrb[61].mxu1 }
0x1633   : > { %v2344_v57 = vpop.f32.mrb[62].mxu1  ;;  %v2391_v58 = vpop.f32.mrb[52].mxu0 }
0x1634   : > { %v2398_v59 = vmul.f32 0.35355338, %v2391_v58  ;;  %v3980_v60 = vpop.f32.mrb[63].mxu1  ;;  %v3985_v61 = vpop.f32.mrb[53].mxu0  ;;  %v2399_v62 = vadd.f32 %v2397_v11, %v4853_v21 }
0x1635   : > { %v2394_v63 = vpop.f32.mrb[54].mxu0 }
0x1636   : > { %v3986_v14 = vpop.f32.mrb[55].mxu0  ;;  %v2401_v1 = vsel %vm651_vm2, %v2399_v62, -inf  ;;  %v2400_v2 = vadd.f32 %v2398_v59, %v4857_v28 }
0x1637   : > { %2402 = vmax.xlane.f32.xlu0 %v2401_v1 }
0x1638   : > { %v2404_v5 = vsel %vm651_vm2, %v2400_v2, -inf }
0x1639   : > { %2405 = vmax.xlane.f32.xlu1 %v2404_v5 }
0x164a   : > { %2425 = vrot.lane.b32.xlu1 %v5107_v53, %s4527_s25 }
0x164e   : > { %2618 = vrot.lane.b32.xlu1 %v5107_v53, %s4529_s26 }
0x1652   : > { %2668 = vrot.lane.b32.xlu1 %v5109_v55, %s4529_s26  ;;  %s5464_s26 = sld [smem:[#allocation22_spill]] }
0x1656   : > { %2666 = vrot.lane.b32.xlu1 %v5109_v55, %s4528_s28 }
0x1658   : > { %p5466_p3 = scmp.ne.s32.totalorder %s5464_s26, 0 }
0x16c4   : > { %v2403_v6 = vpop.xlane.xlu0 %2402 }
0x16c5   : > { %v2407_v7 = vsub.f32 %v2399_v62, %v2403_v6 }
0x16c6   : > { %v2406_v8 = vpop.xlane.xlu1 %2405 }
0x16c7   : > { %v2409_v9 = vmul.f32 1.442695, %v2407_v7  ;;  %v2408_v10 = vsub.f32 %v2400_v2, %v2406_v8 }
0x16c9   : > { %4264 = vpow2.f32 %v2409_v9  ;;  %v2411_v12 = vmul.f32 1.442695, %v2408_v10 }
0x16ca   : > { %v2426_v13 = vpop.permute.xlu1 %2425 }
0x16cb   : > { %4266 = vpow2.f32 %v2411_v12  ;;  %v2431_v15 = vsel %vm780_vm5, %v2426_v13, 0 }
0x16cc   : > { %3988 = vmatpush3.bf16.msra.mxu1 %v2431_v15 }
0x16cd   : > { %3999 = vmatprep.subr.bf16.mxu1 %v4521_v0 }
0x16ce   : > { %v2619_v38 = vpop.permute.xlu1 %2618 }
0x16d2   : > { %v2669_v3 = vpop.permute.xlu1 %2668 }
0x16d3   : > { %v4265_v16 = vpop.eup %4264  ;;  %v2674_v39 = vsel %vm651_vm2, %v2669_v3, 0 }
0x16d4   : > { %v2413_v17 = vsel %vm651_vm2, %v4265_v16, 0.0 }
0x16d5   : > { %v4267_v18 = vpop.eup %4266  ;;  %2414 = vadd.xlane.f32.xlu0 %v2413_v17 }
0x16d6   : > { %v2416_v19 = vsel %vm651_vm2, %v4267_v18, 0.0  ;;  %v2667_v4 = vpop.permute.xlu1 %2666 }
0x16d9   : > { %2417 = vadd.xlane.f32.xlu0 %v2416_v19 }
0x16ef   : > { %2473 = vrot.lane.b32.xlu0 %v5109_v55, %s4527_s25 }
0x16f3   : > { %2616 = vrot.lane.b32.xlu0 %v5107_v53, %s4528_s28 }
0x1762   : > { %v2415_v20 = vpop.xlane.xlu0 %2414 }
0x1763   : > { %4268 = vrcp.f32 %v2415_v20 }
0x1766   : > { %v2418_v22 = vpop.xlane.xlu0 %2417 }
0x1767   : > { %4270 = vrcp.f32 %v2418_v22 }
0x176a   : > { %v2474_v23 = vpop.permute.xlu0 %2473 }
0x176b   : > { %v2479_v24 = vsel %vm780_vm5, %v2474_v23, 0 }
0x176c   : > { %3994 = vmatpush3.bf16.msra.mxu0 %v2479_v24 }
0x176d   : > { %v4269_v25 = vpop.eup %4268  ;;  %4005 = vmatprep.subr.bf16.mxu0 %v4521_v0 }
0x176e   : > { %v2421_v27 = vmul.f32 %v4269_v25, %v4265_v16  ;;  %v2617_v52 = vpop.permute.xlu0 %2616 }
0x1770   : > { %v2423_v29 = vpack.c.bf16 %v2421_v27, %v2421_v27 }
0x1771   : > { %v4271_v31 = vpop.eup %4270 }
0x1772   : > { %v2422_v34 = vmul.f32 %v4271_v31, %v4267_v18  ;;  %3990 = vmatmul.mubr.msk.bf16.vlgmr.msra.gmra.mrb[64].mxu1 %vm651_vm2, %v2423_v29 }
0x1773   : > { %4000 = vmatpush3.bf16.msra.mxu1 %v2526_v30  ;;  %4001 = vmatprep.mubr.msk.bf16.mxu1 %vm4522_vm0, %v4521_v0 }
0x1774   : > { %v2424_v36 = vpack.c.bf16 %v2422_v34, %v2422_v34  ;;  %4011 = vmatprep.subr.bf16.mxu1 %v4521_v0 }
0x1776   : > { %3996 = vmatmul.mubr.msk.bf16.vlgmr.msra.gmra.mrb[56].mxu0 %vm651_vm2, %v2424_v36 }
0x1777   : > { %4006 = vmatpush3.bf16.msra.mxu0 %v2573_v37  ;;  %4007 = vmatprep.mubr.msk.bf16.mxu0 %vm4522_vm0, %v4521_v0 }
0x1778   : > { %4017 = vmatprep.subr.bf16.mxu0 %v4521_v0 }
0x177e   : > { %4008 = vmatmul.mubr.msk.bf16.vlgmr.msra.gmra.mrb[60].mxu0 %vm651_vm2, %v2296_v35  ;;  %v2624_v35 = vsel %vm651_vm2, %v2619_v38, 0 }
0x177f   : > { %4019 = vmatprep.mubr.msk.bf16.mxu0 %vm4522_vm0, %v4521_v0 }
0x1780   : > { %4018 = vmatpush3.bf16.xpose.msra.mxu0 %v2674_v39 }
0x1781   : > { %4029 = vmatprep.subr.bf16.mxu0 %v4521_v0 }
0x1787   : > { %4020 = vmatmul.mubr.msk.bf16.vlgmr.msra.gmra.mrb[64].mxu0 %vm651_vm2, %v2667_v4 }
0x1788   : > { %4031 = vmatprep.mubr.msk.bf16.mxu0 %vm4522_vm0, %v4521_v0 }
0x1845   : > { %v2467_v40 = vpop.f32.mrb[64].mxu1 }
0x1846   : > { %v3991_v41 = vpop.f32.mrb[65].mxu1 }
0x1847   : > { %v2470_v42 = vpop.f32.mrb[66].mxu1 }
0x1848   : > { %v3992_v43 = vpop.f32.mrb[67].mxu1 }
0x1849   : > { %v2515_v44 = vpop.f32.mrb[56].mxu0  ;;  %v2005_v43 = vld [vmem:[#allocation2 + $0x18] sm:$0xf] }
0x184a   : > { %v2521_v45 = vpack.c.bf16 %v2515_v44, %v2467_v40  ;;  %v3997_v46 = vpop.f32.mrb[57].mxu0  ;;  %v2845_v44 = vsel %vm780_vm5, %v2005_v43, 0 }
0x184b   : > { %v2518_v48 = vpop.f32.mrb[58].mxu0 }
0x184c   : > { %v3998_v49 = vpop.f32.mrb[59].mxu0  ;;  %4002 = vmatmul.mubr.msk.bf16.vlgmr.msra.gmra.mrb[68].mxu1 %vm651_vm2, %v2521_v45 }
0x184d   : > { %4012 = vmatpush3.bf16.xpose.msra.mxu1 %v2624_v35  ;;  %4013 = vmatprep.mubr.msk.bf16.mxu1 %vm4522_vm0, %v4521_v0 }
0x184e   : > { %4023 = vmatprep.subr.bf16.mxu1 %v4521_v0 }
0x1851   : > { %v2609_v50 = vpop.f32.mrb[60].mxu0 }
0x1852   : > { %v4009_v51 = vpop.f32.mrb[61].mxu0 }
0x1853   : > { %v2612_v54 = vpop.f32.mrb[62].mxu0 }
0x1854   : > { %v4010_v11 = vpop.f32.mrb[63].mxu0  ;;  %4014 = vmatmul.mubr.msk.bf16.vlgmr.msra.gmra.mrb[72].mxu1 %vm651_vm2, %v2617_v52 }
0x1855   : > { %4025 = vmatprep.mubr.msk.bf16.mxu1 %vm4522_vm0, %v4521_v0 }
0x185a   : > { %v2710_v56 = vpop.f32.mrb[64].mxu0 }
0x185b   : > { %v2717_v57 = vmul.f32 0.35355338, %v2710_v56  ;;  %v4021_v58 = vpop.f32.mrb[65].mxu0 }
0x185c   : > { %v2713_v59 = vpop.f32.mrb[66].mxu0 }
0x185d   : > { %v4022_v60 = vpop.f32.mrb[67].mxu0  ;;  %v2719_v61 = vadd.f32 %v2717_v57, %v4857_v28 }
0x185f   : > { %v2723_v62 = vsel %vm651_vm2, %v2719_v61, -inf }
0x1860   : > { %2724 = vmax.xlane.f32.xlu1 %v2723_v62 }
0x1871   : > { %2744 = vrot.lane.b32.xlu1 %v5107_v53, %s4530_s16 }
0x1875   : > { %2892 = vrot.lane.b32.xlu1 %v5107_v53, %s5461_s21 }
0x1879   : > { %2942 = vrot.lane.b32.xlu1 %v5109_v55, %s5461_s21  ;;  %s4436_s21 = scalar_lea.vmem %s5343_s12, 512 }
0x187a   : > { %p4437_p2 = scmp.ne.s32.totalorder %s5343_s12, %s4436_s21 }
0x187c   : > { %p4438_p4 = pnand %p4437_p2, %p5466_p3 }
0x187d   : > { %2940 = vrot.lane.b32.xlu1 %v5109_v55, %s5462_s20 }
0x187e   : > { %p4439_p7 = pneg %p4438_p4 }
0x18ed   : > { %v2725_v63 = vpop.xlane.xlu1 %2724 }
0x18ee   : > { %v2727_v2 = vsub.f32 %v2719_v61, %v2725_v63 }
0x18f0   : > { %v2730_v5 = vmul.f32 1.442695, %v2727_v2 }
0x18f1   : > { %v2745_v14 = vpop.permute.xlu1 %2744 }
0x18f2   : > { %v2750_v1 = vsel %vm780_vm5, %v2745_v14, 0  ;;  %4272 = vpow2.f32 %v2730_v5 }
0x18f3   : > { %4024 = vmatpush3.bf16.msra.mxu1 %v2750_v1 }
0x18f4   : > { %4035 = vmatprep.subr.bf16.mxu1 %v4521_v0 }
0x18f5   : > { %v2893_v39 = vpop.permute.xlu1 %2892 }
0x18f6   : > { %v2898_v40 = vsel %vm651_vm2, %v2893_v39, 0 }
0x18f9   : > { %v2943_v49 = vpop.permute.xlu1 %2942 }
0x18fa   : > { %v2948_v11 = vsel %vm651_vm2, %v2943_v49, 0 }
0x18fc   : > { %v4273_v22 = vpop.eup %4272 }
0x18fd   : > { %v2735_v23 = vsel %vm651_vm2, %v4273_v22, 0.0  ;;  %v2941_v63 = vpop.permute.xlu1 %2940 }
0x191f   : > { %v2562_v6 = vpop.f32.mrb[68].mxu1 }
0x1920   : > { %v5234_v7 = vadd.f32 %v2609_v50, %v2562_v6  ;;  %v4003_v8 = vpop.f32.mrb[69].mxu1 }
0x1921   : > { %v2565_v9 = vpop.f32.mrb[70].mxu1 }
0x1922   : > { %v5236_v10 = vadd.f32 %v2612_v54, %v2565_v9  ;;  %v4004_v12 = vpop.f32.mrb[71].mxu1 }
0x1927   : > { %v2660_v13 = vpop.f32.mrb[72].mxu1 }
0x1928   : > { %v2716_v15 = vmul.f32 0.35355338, %v2660_v13  ;;  %v4015_v16 = vpop.f32.mrb[73].mxu1 }
0x1929   : > { %v2663_v17 = vpop.f32.mrb[74].mxu1 }
0x192a   : > { %v4016_v18 = vpop.f32.mrb[75].mxu1  ;;  %v2718_v19 = vadd.f32 %v2716_v15, %v4853_v21 }
0x192c   : > { %v2720_v20 = vsel %vm651_vm2, %v2718_v19, -inf }
0x192d   : > { %2721 = vmax.xlane.f32.xlu0 %v2720_v20 }
0x1931   : > { %2736 = vadd.xlane.f32.xlu0 %v2735_v23 }
0x19ba   : > { %v2722_v24 = vpop.xlane.xlu0 %2721 }
0x19bb   : > { %v2726_v25 = vsub.f32 %v2718_v19, %v2722_v24 }
0x19bd   : > { %v2728_v26 = vmul.f32 1.442695, %v2726_v25 }
0x19be   : > { %v2737_v30 = vpop.xlane.xlu0 %2736 }
0x19bf   : > { %4274 = vpow2.f32 %v2728_v26 }
0x19c0   : > { %4276 = vrcp.f32 %v2737_v30 }
0x19c9   : > { %v4275_v27 = vpop.eup %4274 }
0x19ca   : > { %v2732_v29 = vsel %vm651_vm2, %v4275_v27, 0.0  ;;  %v4277_v31 = vpop.eup %4276 }
0x19cb   : > { %2733 = vadd.xlane.f32.xlu0 %v2732_v29  ;;  %v2741_v34 = vmul.f32 %v4277_v31, %v4273_v22 }
0x19cd   : > { %v2743_v38 = vpack.c.bf16 %v2741_v34, %v2741_v34  ;;  %v2006_v34 = vld [vmem:[#allocation2 + $0x1c] sm:$0xf] }
0x19e1   : > { %2792 = vrot.lane.b32.xlu0 %v5109_v55, %s4530_s16  ;;  %s3692_s16 = sshll.u32 %s4633_s17, 9  ;;  %s5351_s17 = scalar_lea.sflag [#allocation4], %s548_s15 }
0x19e2   : > { %s5341_s22 = scalar_lea.hbm %s5465_s24, %s3692_s16 }
0x19e5   : > { %2890 = vrot.lane.b32.xlu0 %v5107_v53, %s5462_s20  ;;  %s4534_s20 = smov [#allocation11]  }
0x1a58   : > { %v2734_v33 = vpop.xlane.xlu0 %2733 }
0x1a59   : > { %4278 = vrcp.f32 %v2734_v33 }
0x1a5c   : > { %v2793_v36 = vpop.permute.xlu0 %2792 }
0x1a5d   : > { %v2798_v37 = vsel %vm780_vm5, %v2793_v36, 0  ;;  %v3119_v36 = vsel %vm780_vm5, %v2006_v34, 0  ;;  %v3662_v34 = vld [vmem:[#allocation10 + $0x1] ss:$0 sm:$0xff] }
0x1a5e   : > { %4030 = vmatpush3.bf16.msra.mxu0 %v2798_v37 }
0x1a5f   : > { %4041 = vmatprep.subr.bf16.mxu0 %v4521_v0 }
0x1a60   : > { %v2891_v42 = vpop.permute.xlu0 %2890 }
0x1a61   : > { %4032 = vmatmul.mubr.msk.bf16.vlgmr.msra.gmra.mrb[68].mxu0 %vm651_vm2, %v2743_v38 }
0x1a62   : > { %4043 = vmatprep.mubr.msk.bf16.mxu0 %vm4522_vm0, %v4521_v0 }
0x1a63   : > { %v4279_v3 = vpop.eup %4278 }
0x1a64   : > { %v2740_v4 = vmul.f32 %v4279_v3, %v4275_v27 }
0x1a66   : > { %v2742_v41 = vpack.c.bf16 %v2740_v4, %v2740_v4 }
0x1a67   : > { %4042 = vmatpush3.bf16.xpose.msra.mxu0 %v2898_v40 }
0x1a68   : > { %4026 = vmatmul.mubr.msk.bf16.vlgmr.msra.gmra.mrb[76].mxu1 %vm651_vm2, %v2742_v41  ;;  %4053 = vmatprep.subr.bf16.mxu0 %v4521_v0 }
0x1a69   : > { %4037 = vmatprep.mubr.msk.bf16.mxu1 %vm4522_vm0, %v4521_v0  ;;  %4036 = vmatpush3.bf16.msra.mxu1 %v2845_v44 }
0x1a6a   : > { %4047 = vmatprep.subr.bf16.mxu1 %v4521_v0 }
0x1a6e   : > { %4044 = vmatmul.mubr.msk.bf16.vlgmr.msra.gmra.mrb[72].mxu0 %vm651_vm2, %v2891_v42 }
0x1a6f   : > { %4055 = vmatprep.mubr.msk.bf16.mxu0 %vm4522_vm0, %v4521_v0 }
0x1b34   : > { %v2834_v45 = vpop.f32.mrb[68].mxu0 }
0x1b35   : > { %v4033_v46 = vpop.f32.mrb[69].mxu0 }
0x1b36   : > { %v2837_v48 = vpop.f32.mrb[70].mxu0 }
0x1b37   : > { %v4034_v35 = vpop.f32.mrb[71].mxu0 }
0x1b3b   : > { %v2786_v50 = vpop.f32.mrb[76].mxu1 }
0x1b3c   : > { %v2840_v51 = vpack.c.bf16 %v2834_v45, %v2786_v50  ;;  %v4027_v52 = vpop.f32.mrb[77].mxu1  ;;  %v3659_v50 = vld [vmem:[%s5397_s5 + $0x1] ss:$0 sm:$0xff] }
0x1b3d   : > { %v2789_v54 = vpop.f32.mrb[78].mxu1 }
0x1b3e   : > { %v4028_v56 = vpop.f32.mrb[79].mxu1  ;;  %4038 = vmatmul.mubr.msk.bf16.vlgmr.msra.gmra.mrb[80].mxu1 %vm651_vm2, %v2840_v51 }
0x1b3f   : > { %4048 = vmatpush3.bf16.xpose.msra.mxu1 %v2948_v11  ;;  %4049 = vmatprep.mubr.msk.bf16.mxu1 %vm4522_vm0, %v4521_v0 }
0x1b40   : > { %4059 = vmatprep.subr.bf16.mxu1 %v4521_v0 }
0x1b41   : > { %v2934_v57 = vpop.f32.mrb[72].mxu0 }
0x1b42   : > { %v2990_v58 = vmul.f32 0.35355338, %v2934_v57  ;;  %v4045_v59 = vpop.f32.mrb[73].mxu0 }
0x1b43   : > { %v2937_v60 = vpop.f32.mrb[74].mxu0 }
0x1b44   : > { %v4046_v61 = vpop.f32.mrb[75].mxu0  ;;  %v2992_v62 = vadd.f32 %v2990_v58, %v4853_v21 }
0x1b46   : > { %4050 = vmatmul.mubr.msk.bf16.vlgmr.msra.gmra.mrb[84].mxu1 %vm651_vm2, %v2941_v63  ;;  %v2994_v14 = vsel %vm651_vm2, %v2992_v62, -inf }
0x1b47   : > { %2995 = vmax.xlane.f32.xlu0 %v2994_v14  ;;  %4061 = vmatprep.mubr.msk.bf16.mxu1 %vm4522_vm0, %v4521_v0 }
0x1bd4   : > { %v2996_v1 = vpop.xlane.xlu0 %2995 }
0x1bd5   : > { %v3000_v2 = vsub.f32 %v2992_v62, %v2996_v1 }
0x1bd7   : > { %v3002_v5 = vmul.f32 1.442695, %v3000_v2 }
0x1bd9   : > { %4280 = vpow2.f32 %v3002_v5 }
0x1be3   : > { %v4281_v6 = vpop.eup %4280 }
0x1be4   : > { %v3006_v8 = vsel %vm651_vm2, %v4281_v6, 0.0 }
0x1be5   : > { %3007 = vadd.xlane.f32.xlu0 %v3006_v8 }
0x1c11   : > { %v2881_v9 = vpop.f32.mrb[80].mxu1 }
0x1c12   : > { %v2888_v21 = vadd.f32 %v2881_v9, %v5234_v7  ;;  %v4039_v12 = vpop.f32.mrb[81].mxu1 }
0x1c13   : > { %v2884_v13 = vpop.f32.mrb[82].mxu1  ;;  %v4210_v12 = vld [vmem:[#allocation8 + $0x10] sm:$0xff]  }
0x1c14   : > { %v2889_v15 = vadd.f32 %v2884_v13, %v5236_v10  ;;  %v4040_v16 = vpop.f32.mrb[83].mxu1  ;;  %v4212_v13 = vld [vmem:[%s5402_s10 + $0x20] sm:$0xff]  }
0x1c19   : > { %v2984_v17 = vpop.f32.mrb[84].mxu1 }
0x1c1a   : > { %v2991_v18 = vmul.f32 0.35355338, %v2984_v17  ;;  %v4051_v19 = vpop.f32.mrb[85].mxu1 }
0x1c1b   : > { %v2987_v20 = vpop.f32.mrb[86].mxu1 }
0x1c1c   : > { %v4052_v22 = vpop.f32.mrb[87].mxu1  ;;  %v2993_v23 = vadd.f32 %v2991_v18, %v4857_v28 }
0x1c1e   : > { %v2997_v24 = vsel %vm651_vm2, %v2993_v23, -inf }
0x1c1f   : > { %2998 = vmax.xlane.f32.xlu1 %v2997_v24  ;;  %v3660_v24 = vld [vmem:[#allocation5 + $0x1] ss:$0 sm:$0xff] }
0x1c30   : > { %3018 = vrot.lane.b32.xlu1 %v5107_v53, %s5463_s29 }
0x1c72   : > { %v3008_v25 = vpop.xlane.xlu0 %3007 }
0x1c73   : > { %4282 = vrcp.f32 %v3008_v25 }
0x1c7d   : > { %v4283_v7 = vpop.eup %4282 }
0x1c7e   : > { %v3014_v10 = vmul.f32 %v4283_v7, %v4281_v6 }
0x1c80   : > { %v3016_v33 = vpack.c.bf16 %v3014_v10, %v3014_v10  ;;  %v3661_v10 = vld [vmem:[#allocation7 + $0x1] ss:$0 sm:$0xff] }
0x1cac   : > { %v2999_v26 = vpop.xlane.xlu1 %2998 }
0x1cad   : > { %v3001_v27 = vsub.f32 %v2993_v23, %v2999_v26 }
0x1caf   : > { %v3004_v29 = vmul.f32 1.442695, %v3001_v27 }
0x1cb0   : > { %v3019_v30 = vpop.permute.xlu1 %3018 }
0x1cb1   : > { %4284 = vpow2.f32 %v3004_v29  ;;  %v3024_v31 = vsel %vm780_vm5, %v3019_v30, 0 }
0x1cb2   : > { %4054 = vmatpush3.bf16.msra.mxu0 %v3024_v31 }
0x1cb3   : > { %4065 = vmatprep.subr.bf16.mxu0 %v4521_v0 }
0x1cb5   : > { %4056 = vmatmul.mubr.msk.bf16.vlgmr.msra.gmra.mrb[76].mxu0 %vm651_vm2, %v3016_v33 }
0x1cb6   : > { %4067 = vmatprep.mubr.msk.bf16.mxu0 %vm4522_vm0, %v4521_v0  ;;  %4066 = vmatpush3.bf16.msra.mxu0 %v3119_v36 }
0x1cb7   : > { %4079 = vmatprep.subr.bf16.mxu0 %v4521_v0 }
0x1cbb   : > { %v4285_v28 = vpop.eup %4284 }
0x1cbc   : > { %v3009_v53 = vsel %vm651_vm2, %v4285_v28, 0.0 }
0x1cbd   : > { %3010 = vadd.xlane.f32.xlu0 %v3009_v53  ;;  %v4215_v53 = vld [vmem:[%s5402_s10 + $0x38] sm:$0xff]  }
0x1cd3   : > { %3066 = vrot.lane.b32.xlu0 %v5109_v55, %s5463_s29  ;;  %s4440_s29 = sshll.u32 %s4534_s20, 4  ;;  %s4441_s29 = int_to_ptr.vmem [resolvable:$false] %s4440_s29 }
0x1cd4   : > { %s4442_s18 = scalar_lea.vmem %s4441_s29, 1024  ;;  %p4443_p8 = scmp.lt.s32.totalorder %s5343_s12, %s4441_s29 }
0x1cd5   : > { %p4444_p11 = scmp.lt.s32.totalorder %s4442_s18, %s4436_s21 }
0x1cd7   : > { %p4445_p5 = por %p4444_p11, %p4443_p8 }
0x1cd9   : > { %p4446_p0 = pnand %p4445_p5, %p4439_p7 }
0x1d4a   : > { %v3011_v37 = vpop.xlane.xlu0 %3010 }
0x1d4b   : > { %4286 = vrcp.f32 %v3011_v37 }
0x1d4e   : > { %v3067_v38 = vpop.permute.xlu0 %3066 }
0x1d4f   : > { %v3072_v3 = vsel %vm780_vm5, %v3067_v38, 0 }
0x1d50   : > { %4060 = vmatpush3.bf16.msra.mxu1 %v3072_v3 }
0x1d51   : > { %4071 = vmatprep.subr.bf16.mxu1 %v4521_v0 }
0x1d55   : > { %v4287_v39 = vpop.eup %4286 }
0x1d56   : > { %v3015_v4 = vmul.f32 %v4287_v39, %v4285_v28  ;;  %v4214_v28 = vld [vmem:[%s5402_s10 + $0x30] sm:$0xff]  }
0x1d58   : > { %v3017_v40 = vpack.c.bf16 %v3015_v4, %v3015_v4 }
0x1d5a   : > { %4062 = vmatmul.mubr.msk.bf16.vlgmr.msra.gmra.mrb[88].mxu1 %vm651_vm2, %v3017_v40 }
0x1d5b   : > { %4075 = vmatprep.mubr.msk.bf16.mxu1 %vm4522_vm0, %v4521_v0  ;;  %4072 = vmatpush3.bf16.msra.mxu1 %v4210_v12  ;;  %v3684_v12 = vld [vmem:[%s5460_s13 + $0x1] ss:$0 sm:$0xff] }
0x1d5c   : > { %4073 = vmatprep.subr.bf16.mxu1 %v4521_v0 }
0x1d88   : > { %v3060_v55 = vpop.f32.mrb[76].mxu0 }
0x1d89   : > { %v4057_v41 = vpop.f32.mrb[77].mxu0 }
0x1d8a   : > { %v3063_v42 = vpop.f32.mrb[78].mxu0 }
0x1d8b   : > { %v4058_v43 = vpop.f32.mrb[79].mxu0 }
0x1e2d   : > { %v3108_v44 = vpop.f32.mrb[88].mxu1 }
0x1e2e   : > { %v3114_v45 = vpack.c.bf16 %v3108_v44, %v3060_v55  ;;  %v4063_v46 = vpop.f32.mrb[89].mxu1 }
0x1e2f   : > { %v3111_v48 = vpop.f32.mrb[90].mxu1 }
0x1e30   : > { %v4064_v35 = vpop.f32.mrb[91].mxu1  ;;  %4068 = vmatmul.mubr.msk.bf16.vlgmr.msra.gmra.mrb[80].mxu0 %vm651_vm2, %v3114_v45 }
0x1e31   : > { %4087 = vmatprep.mubr.msk.bf16.mxu0 %vm4522_vm0, %v4521_v0  ;;  %4080 = vmatpush3.bf16.msra.mxu0 %v4212_v13 }
0x1e32   : > { %4081 = vmatprep.subr.bf16.mxu0 %v4521_v0 }
0x1f03   : > { %v3155_v49 = vpop.f32.mrb[80].mxu0 }
0x1f04   : > { %v3162_v51 = vadd.f32 %v3155_v49, %v2888_v21  ;;  %v4069_v52 = vpop.f32.mrb[81].mxu0 }
0x1f05   : > { %v3158_v54 = vpop.f32.mrb[82].mxu0 }
0x1f06   : > { %v3172_v11 = vadd.f32 %v3659_v50, %v3162_v51  ;;  %v3163_v56 = vadd.f32 %v3158_v54, %v2889_v15  ;;  %v4070_v57 = vpop.f32.mrb[83].mxu0  ;;  %v4213_v15 = vld [vmem:[%s5402_s10 + $0x28] sm:$0xff]  }
0x1f07   : > { %4082 = vmatpush3.bf16.msra.mxu0 %v4213_v15 }
0x1f08   : > { %v3173_v58 = vadd.f32 %v3659_v50, %v3163_v56  ;;  %v3174_v59 = vadd.f32 %v3172_v11, %v5087_v47  ;;  %4083 = vmatprep.subr.bf16.mxu0 %v4521_v0 }
0x1f0a   : > { %v3180_v60 = vsel %vm601_vm1, %v3174_v59, 0.0  ;;  %v3175_v61 = vadd.f32 %v3173_v58, %v5089_v32  ;;  %v4211_v32 = vld [vmem:[#allocation8 + $0x18] sm:$0xff]  }
0x1f0b   : > { %3181 = vadd.xlane.f32.xlu1 %v3180_v60  ;;  %4074 = vmatpush3.bf16.msra.mxu1 %v4211_v32 }
0x1f0c   : > { %v3183_v62 = vsel %vm601_vm1, %v3175_v61, 0.0  ;;  %4084 = vmatpush3.bf16.msra.mxu0 %v4214_v28 }
0x1f0d   : > { %3184 = vadd.xlane.f32.xlu0 %v3183_v62  ;;  %4085 = vmatprep.subr.bf16.mxu0 %v4521_v0  ;;  %v3675_v0 = vld [vmem:[%s5403_s11 + $0x1] ss:$0 sm:$0xff] }
0x1f10   : > { %4086 = vmatpush3.bf16.msra.mxu0 %v4215_v53 }
0x1f98   : > { %v3182_v63 = vpop.xlane.xlu1 %3181 }
0x1f99   : > { %v3186_v14 = vmul.f32 0.03125, %v3182_v63 }
0x1f9a   : > { %v3185_v1 = vpop.xlane.xlu0 %3184 }
0x1f9b   : > { %v3188_v2 = vsub.f32 %v3174_v59, %v3186_v14  ;;  %v3187_v5 = vmul.f32 0.03125, %v3185_v1 }
0x1f9d   : > { %v3189_v6 = vsub.f32 %v3175_v61, %v3187_v5  ;;  %v3190_v8 = vmul.f32 %v3188_v2, %v3188_v2 }
0x1f9f   : > { %v3192_v9 = vsel %vm601_vm1, %v3190_v8, 0.0  ;;  %v3191_v21 = vmul.f32 %v3189_v6, %v3189_v6 }
0x1fa0   : > { %3193 = vadd.xlane.f32.xlu1 %v3192_v9  ;;  %v3683_v9 = vld [vmem:[%s5459_s23 + $0x1] ss:$0 sm:$0xff] }
0x1fa1   : > { %v3195_v47 = vsel %vm601_vm1, %v3191_v21, 0.0 }
0x1fa2   : > { %3196 = vadd.xlane.f32.xlu0 %v3195_v47 }
0x202d   : > { %v3194_v16 = vpop.xlane.xlu1 %3193 }
0x202e   : > { %v3198_v17 = vmul.f32 0.03125, %v3194_v16 }
0x202f   : > { %v3197_v18 = vpop.xlane.xlu0 %3196 }
0x2030   : > { %v3200_v19 = vadd.f32 1e-05, %v3198_v17  ;;  %v3199_v20 = vmul.f32 0.03125, %v3197_v18 }
0x2032   : > { %4288 = vrsqrt.f32 %v3200_v19  ;;  %v3201_v22 = vadd.f32 1e-05, %v3199_v20 }
0x2034   : > { %4290 = vrsqrt.f32 %v3201_v22 }
0x203c   : > { %v4289_v23 = vpop.eup %4288 }
0x203d   : > { %v3204_v25 = vmul.f32 %v4289_v23, %v3188_v2 }
0x203e   : > { %v4291_v7 = vpop.eup %4290 }
0x203f   : > { %v3212_v26 = vmul.f32 %v3660_v24, %v3204_v25  ;;  %v3205_v27 = vmul.f32 %v4291_v7, %v3189_v6 }
0x2041   : > { %v3213_v29 = vmul.f32 %v3660_v24, %v3205_v27  ;;  %v3220_v30 = vadd.f32 %v3661_v10, %v3212_v26 }
0x2043   : > { %v3221_v31 = vadd.f32 %v3661_v10, %v3213_v29 }
0x2045   : > { %v3222_v33 = vpack.c.bf16 %v3221_v31, %v3220_v30 }
0x2047   : > { %4076 = vmatmul.mubr.msk.bf16.vlgmr.msra.gmra.mrb[92].mxu1 %vm601_vm1, %v3222_v33 }
0x211a   : > { %v3285_v36 = vpop.f32.mrb[92].mxu1 }
0x211b   : > { %v3286_v37 = vadd.f32 %v3662_v34, %v3285_v36  ;;  %v4077_v38 = vpop.f32.mrb[93].mxu1 }
0x211c   : > { %v3288_v3 = vpop.f32.mrb[94].mxu1 }
0x211d   : > { %v3289_v39 = vadd.f32 %v3662_v34, %v3288_v3  ;;  %v4078_v4 = vpop.f32.mrb[95].mxu1  ;;  %v3292_v40 = vmax.f32 %v3286_v37, 0.0 }
0x211f   : > { %v3293_v55 = vmax.f32 %v3289_v39, 0.0 }
0x2121   : > { %v3294_v41 = vpack.c.bf16 %v3293_v55, %v3292_v40 }
0x2123   : > { %4088 = vmatmul.mubr.msk.bf16.vlgmr.msra.gmra.mrb[84].mxu0 %vm1906_vm6, %v3294_v41 }
0x21f6   : > { %v3373_v42 = vpop.f32.mrb[84].mxu0 }
0x21f7   : > { %v3374_v43 = vadd.f32 %v3675_v0, %v3373_v42  ;;  %v4089_v44 = vpop.f32.mrb[85].mxu0 }
0x21f8   : > { %v3376_v45 = vpop.f32.mrb[86].mxu0 }
0x21f9   : > { %v3377_v46 = vadd.f32 %v3675_v0, %v3376_v45  ;;  %v4090_v48 = vpop.f32.mrb[87].mxu0  ;;  %v3380_v35 = vadd.f32 %v3374_v43, %v3220_v30 }
0x21fb   : > { %v3386_v49 = vsel %vm601_vm1, %v3380_v35, 0.0  ;;  %v3381_v50 = vadd.f32 %v3377_v46, %v3221_v31 }
0x21fc   : > { %3387 = vadd.xlane.f32.xlu1 %v3386_v49 }
0x21fd   : > { %v3389_v51 = vsel %vm601_vm1, %v3381_v50, 0.0 }
0x21fe   : > { %3390 = vadd.xlane.f32.xlu0 %v3389_v51 }
0x2289   : > { %v3388_v52 = vpop.xlane.xlu1 %3387 }
0x228a   : > { %v3392_v54 = vmul.f32 0.03125, %v3388_v52 }
0x228b   : > { %v3391_v11 = vpop.xlane.xlu0 %3390 }
0x228c   : > { %v3394_v56 = vsub.f32 %v3380_v35, %v3392_v54  ;;  %v3393_v57 = vmul.f32 0.03125, %v3391_v11 }
0x228e   : > { %v3395_v58 = vsub.f32 %v3381_v50, %v3393_v57  ;;  %v3396_v59 = vmul.f32 %v3394_v56, %v3394_v56 }
0x2290   : > { %v3398_v60 = vsel %vm601_vm1, %v3396_v59, 0.0  ;;  %v3397_v61 = vmul.f32 %v3395_v58, %v3395_v58 }
0x2291   : > { %3399 = vadd.xlane.f32.xlu1 %v3398_v60 }
0x2292   : > { %v3401_v62 = vsel %vm601_vm1, %v3397_v61, 0.0 }
0x2293   : > { %3402 = vadd.xlane.f32.xlu0 %v3401_v62 }
0x231e   : > { %v3400_v63 = vpop.xlane.xlu1 %3399 }
0x231f   : > { %v3404_v14 = vmul.f32 0.03125, %v3400_v63 }
0x2320   : > { %v3403_v1 = vpop.xlane.xlu0 %3402 }
0x2321   : > { %v3406_v2 = vadd.f32 1e-05, %v3404_v14  ;;  %v3405_v5 = vmul.f32 0.03125, %v3403_v1 }
0x2323   : > { %4292 = vrsqrt.f32 %v3406_v2  ;;  %v3407_v6 = vadd.f32 1e-05, %v3405_v5 }
0x2325   : > { %4294 = vrsqrt.f32 %v3407_v6 }
0x232d   : > { %v4293_v8 = vpop.eup %4292 }
0x232e   : > { %v3410_v21 = vmul.f32 %v4293_v8, %v3394_v56 }
0x232f   : > { %v4295_v47 = vpop.eup %4294 }
0x2330   : > { %v3418_v32 = vmul.f32 %v3683_v9, %v3410_v21  ;;  %v3411_v13 = vmul.f32 %v4295_v47, %v3395_v58 }
0x2332   : > { %v3426_v15 = vadd.f32 %v3684_v12, %v3418_v32  ;;  %v3419_v16 = vmul.f32 %v3683_v9, %v3411_v13 }
0x2334   : > { %3429 = vst.msk [vmem:[%s5091_s19 + $0x8] sm:$0xff] %vm601_vm1, %v3426_v15  ;;  %v3427_v17 = vadd.f32 %v3684_v12, %v3419_v16 }
0x2336   : > { %3431 = vst.msk [vmem:[%s5091_s19 + $0x18] sm:$0xff] %vm601_vm1, %v3427_v17 }
0x2337   : > { %4449 = shalt.err (!%p4446_p0)
}
0x2338   : > { %s4450_s19 = scalar_lea.hbm %s5341_s22, 512  ;;  %s4454_s25 = scalar_lea.hbm %s5465_s24, 1024 }
0x2339   : > { %p4451_p6 = scmp.ne.s32.totalorder %s5341_s22, %s4450_s19  ;;  %p4455_p13 = scmp.lt.u32.totalorder %s5341_s22, %s5465_s24 }
0x233a   : > { %p4456_p12 = scmp.lt.u32.totalorder %s4454_s25, %s4450_s19  ;;  %p4458_p2 = scmp.lt.u32.totalorder %s4450_s19, %s5341_s22 }
0x233b   : > { %p4452_p9 = pnand %p4451_p6, %p5466_p3 }
0x233c   : > { %p4457_p1 = por %p4456_p12, %p4455_p13 }
0x233d   : > { %p4453_p10 = pneg %p4452_p9 }
0x233e   : > { %p4459_p4 = por %p4458_p2, %p4457_p1 }
0x2340   : > { %p4460_p7 = pnand %p4459_p4, %p4453_p10 }
0x2342   : > { %4463 = shalt.err (!%p4460_p7)
}
0x2343   : > { %s4535_s14 = smov 128   ;;  %s4536_s30 = smov 8  }
0x2344   : > { %4111 = dma.vmem_to_hbm [thread:$0]  (%p5466_p3), %s5343_s12, 512, %s5341_s22, %s5351_s17, %s4535_s14, %s4535_s14, %s4536_s30  }
0x2345 PF: > { %s5467_s21 = sld [smem:[#allocation19_spill]]  ;;  %s5468_s20 = sld [smem:[#allocation16_spill]] }
0x2346   : > { %s5469_s29 = sld [smem:[#allocation23_spill]] }
0x234b   : > { %p4143_p8 = scmp.ge.s32.totalorder %s5467_s21, 2  ;;  %s3462_s18 = sand.u32 1, %s5468_s20  }
0x234c   : > { %p5470_p11 = scmp.ne.s32.totalorder %s5469_s29, 0  ;;  %s3463_s19 = scalar_lea.sflag [#allocation4], %s3462_s18 }
0x234e   : > { %p4130_p5 = pnand %p4143_p8, %p5470_p11 }
0x2350   : > { %4493 = dma.done.wait (!%p4130_p5), %s3463_s19, 512  }
0x2351   : > { %4495 = vsyncadd (!%p4130_p5), %s3463_s19, 4294966784  ;;  %s5471_s16 = sld [smem:[#allocation20_spill]]  ;;  %s5472_s29 = sld [smem:[#allocation17_spill]] }
0x2352   : > { %s5473_s30 = sld [smem:[#allocation18_spill]]  ;;  %s5474_s15 = sld [smem:[#allocation21_spill]] }
0x2357   : > { %p27_p0 = scmp.ge.s32.totalorder %s5471_s16, 4  }
0x2359   :  { %29 = sbr.rel (!%p27_p0) target bundleno = 10 (0xa), region = 147 }
0x2360   :  { %3468 = vsyncpa [#allocation3], 1 }
0x2361   :  { %3470 = vsyncpa [#allocation3 + $0x1], 1 }
0x2362   :  { %3471 = vsyncpa [#allocation6], 1 }
0x2363   :  { %3472 = vsyncpa [#allocation9], 1 }
0x2364   :  { %3473 = vsyncpa [#allocation4], 1 }
0x2365   :  { %3475 = vsyncpa [#allocation4 + $0x1], 1 }

</bundles_post_ra>
